<compile_context>
chip_gen: v7x
topology: tpu7x:2x2x1
jax: 0.10.0
libtpu: 0.0.40
codegen_flags: <defaults>
</compile_context>

<pallas_src>
import numpy as np
import jax
import jax.numpy as jnp
from jax import lax
from jax.experimental import pallas as pl
from jax.experimental.pallas import tpu as pltpu

MLP_ALIGNMENT = 16
PRIMES = (1, 2654435761, 805459861)  # only 3 input dims used

# ------------------------- small, module-consistent config -------------------------
N_INPUT_DIMS = 3
N_OUTPUT_DIMS = 1
N_LEVELS = 4
N_FEATURES = 4            # n_features_per_level
LOG2_HASHMAP = 12
BASE_RES = 4
PER_LEVEL_SCALE = 1.5
N_NEURONS = 32
N_HIDDEN_LAYERS = 3

D_ENC = N_LEVELS * N_FEATURES                                   # 16
D_PAD = (D_ENC + MLP_ALIGNMENT - 1) // MLP_ALIGNMENT * MLP_ALIGNMENT
O_PAD = (N_OUTPUT_DIMS + MLP_ALIGNMENT - 1) // MLP_ALIGNMENT * MLP_ALIGNMENT
D_IN = 8 * D_PAD                                                # 128 (lane-dense)
TN_MAX = 8192             # max points per grid step (~2 MiB bf16 input chunk)

CORNERS = np.array(
    [[0, 0, 0], [0, 0, 1], [0, 1, 0], [0, 1, 1],
     [1, 0, 0], [1, 0, 1], [1, 1, 0], [1, 1, 1]], dtype=np.int32)


# ------------------------- HashEmbedder static metadata (numpy, trace-time) -------------------------
def grid_scale(level):
    return (np.power(np.float32(2), np.float32(level) * np.log2(np.float32(PER_LEVEL_SCALE)))
            * np.float32(BASE_RES) - np.float32(1.0))


def grid_resolution(scale):
    return int(np.int32(np.ceil(np.float32(scale))) + 1)


def build_level_meta():
    offsets, lengths = [], []
    off = 0
    for i in range(N_LEVELS):
        s = grid_scale(i)
        r = grid_resolution(s)
        length = r ** N_INPUT_DIMS
        length = (length + 8 - 1) // 8 * 8
        length = min(length, 1 << LOG2_HASHMAP)
        offsets.append(off)
        lengths.append(length)
        off += length
    return offsets, lengths, off


# ------------------------- encoder glue (index math + gather, plain JAX) -------------------------
def hash_encode(coords, table):
    """coords: (N, 3) f32 in [0,1); table: (total_entries, F) f32.
    Returns corner embeddings (N, L, 8, F) and trilinear weights (N, L, 8)."""
    _, lengths, _ = build_level_meta()
    embeds_levels, weights_levels = [], []
    corners = jnp.asarray(CORNERS)
    for lvl in range(N_LEVELS):
        scale = grid_scale(lvl)
        res = grid_resolution(scale)
        hm = lengths[lvl]

        pos = coords * jnp.float32(scale) + jnp.float32(0.5)
        idx = jnp.floor(pos).astype(jnp.int32)
        frac = pos - idx.astype(jnp.float32)                      # (N, 3)
        corner_idx = idx[:, None, :] + corners[None, :, :]        # (N, 8, 3)

        # linear index with early break (static python branching, as in torch)
        stride = 1
        lin = jnp.zeros(corner_idx.shape[:-1], dtype=jnp.int32)
        for d in range(N_INPUT_DIMS):
            lin = lin + corner_idx[..., d] * jnp.int32(stride)
            stride = stride * res
            if stride > hm:
                break
        if hm < stride:
            # coherent prime hash path (uint32 wraparound semantics)
            x = jnp.zeros(corner_idx.shape[:-1], dtype=jnp.uint32)
            for d in range(N_INPUT_DIMS):
                x = x ^ (corner_idx[..., d].astype(jnp.uint32) * np.uint32(PRIMES[d]))
            offs = (x % np.uint32(hm)).astype(jnp.int32)
        else:
            offs = (lin.astype(jnp.uint32) % np.uint32(hm)).astype(jnp.int32)

        emb = jnp.take(table, offs, axis=0)                       # (N, 8, F)

        wx, wy, wz = frac[..., 0], frac[..., 1], frac[..., 2]
        c = jnp.stack([
            (1 - wx) * (1 - wy) * (1 - wz),
            (1 - wx) * (1 - wy) * wz,
            (1 - wx) * wy * (1 - wz),
            (1 - wx) * wy * wz,
            wx * (1 - wy) * (1 - wz),
            wx * (1 - wy) * wz,
            wx * wy * (1 - wz),
            wx * wy * wz,
        ], axis=-1)                                               # (N, 8)

        embeds_levels.append(emb)
        weights_levels.append(c)

    embeds = jnp.stack(embeds_levels, axis=1)    # (N, L, 8, F)
    weights = jnp.stack(weights_levels, axis=1)  # (N, L, 8)
    return embeds, weights


def prepare_kernel_inputs(embeds, weights):
    """Fold trilinear weights into the embeddings and pack the 8 corners on the
    lane axis: returns we of shape (N, 8*D_PAD) in bf16 (lane-dense transport;
    the kernel feeds it straight to the MXU and accumulates in f32)."""
    n = embeds.shape[0]
    we = weights[..., None] * embeds                              # (N, L, 8, F)
    we = jnp.transpose(we, (0, 2, 1, 3)).reshape(n, 8, D_ENC)     # corner-major
    pad = D_PAD - D_ENC
    if pad:
        we = jnp.pad(we, ((0, 0), (0, 0), (0, pad)))
    we = we.reshape(n, 8 * D_PAD)                                 # (N, 128)
    return we.astype(jnp.bfloat16)


def prepare_network_params(params):
    """One-time weight preparation (hoisted out of the per-call forward):
    tile W1 eight times to fold the corner reduction into the K=128 matmul,
    slice/transpose the real output column, and cast all resident MLP weights
    to bf16 (native MXU input dtype)."""
    table, w1, wh, wl = params
    w1f = jnp.tile(w1, (8, 1)).astype(jnp.bfloat16)               # (128, N_NEURONS)
    wh_b = wh.astype(jnp.bfloat16)                                # (H-1, 32, 32)
    wl_cols = wl[:, :N_OUTPUT_DIMS].T.astype(jnp.bfloat16)        # (N_OUT, N_NEURONS)
    return table, w1f, wh_b, wl_cols


# ------------------------- Pallas kernel: fused corner-reduce + ReLU MLP -------------------------
def inr_kernel(we_ref, w1f_ref, wh_ref, wl_ref, o_ref):
    # we_ref: (TN, 8*D_PAD) bf16 — corner-packed, trilinear-weighted embeddings.
    # w1f_ref: (8*D_PAD, N_NEURONS) bf16 — W1 tiled 8x, folds the corner reduction.
    # wh_ref: (N_HIDDEN_LAYERS-1, N_NEURONS, N_NEURONS) bf16.
    # wl_ref: (N_OUTPUT_DIMS, N_NEURONS) bf16 — only the real output columns.
    # All matmuls take bf16 operands on the MXU; accumulation is f32.
    x = jnp.dot(we_ref[...], w1f_ref[...], preferred_element_type=jnp.float32)
    x = jnp.maximum(x, 0.0).astype(jnp.bfloat16)
    for k in range(N_HIDDEN_LAYERS - 1):                          # tiny 32x32 layers
        x = jnp.dot(x, wh_ref[k], preferred_element_type=jnp.float32)
        x = jnp.maximum(x, 0.0).astype(jnp.bfloat16)
    # Lane-dense output: (N_OUT, TN) with points on the lane axis (unmasked vst).
    o_ref[...] = lax.dot_general(
        wl_ref[...], x, (((1,), (1,)), ((), ())),
        preferred_element_type=jnp.float32)


def _pick_tile(n, tn_max=TN_MAX):
    """Point-axis tile: lane-aligned (multiple of 128), as large as possible
    (<= tn_max) to amortize the ~0.35 us/step overhead; prefer >= 2 balanced
    grid steps so v7x megacore shards the 'parallel' axis across both TCs."""
    n128 = (n + 127) // 128 * 128
    tn = min(tn_max, n128)
    if n128 >= 1024 and n128 // tn < 2:
        tn = (n128 // 2 + 127) // 128 * 128
    n_pad = (n128 + tn - 1) // tn * tn
    return tn, n_pad


def inr_forward(coords, table, w1f, wh, wl_cols):
    embeds, weights = hash_encode(coords, table)
    we = prepare_kernel_inputs(embeds, weights)                   # (N, 128) bf16

    n = coords.shape[0]
    tn, n_pad = _pick_tile(n)
    if n_pad != n:
        we = jnp.pad(we, ((0, n_pad - n), (0, 0)))                # zero rows -> zero output

    out = pl.pallas_call(
        inr_kernel,
        out_shape=jax.ShapeDtypeStruct((N_OUTPUT_DIMS, n_pad), jnp.float32),
        grid_spec=pltpu.PrefetchScalarGridSpec(
            num_scalar_prefetch=0,
            grid=(n_pad // tn,),
            in_specs=[
                pl.BlockSpec((tn, D_IN), lambda i: (i, 0)),
                pl.BlockSpec((D_IN, N_NEURONS), lambda i: (0, 0)),
                pl.BlockSpec((N_HIDDEN_LAYERS - 1, N_NEURONS, N_NEURONS),
                             lambda i: (0, 0, 0)),
                pl.BlockSpec((N_OUTPUT_DIMS, N_NEURONS), lambda i: (0, 0)),
            ],
            out_specs=pl.BlockSpec((N_OUTPUT_DIMS, tn), lambda i: (0, i)),
        ),
        compiler_params=pltpu.CompilerParams(dimension_semantics=("parallel",)),
    )(we, w1f, wh, wl_cols)
    return out[:, :n].T                                           # (N, N_OUTPUT_DIMS)


# ------------------------- deterministic parameter init -------------------------
def init_params(key):
    _, _, total = build_level_meta()
    k0, k1, k2, k3 = jax.random.split(key, 4)
    # HashEmbedderNative: uniform(-1e-4, 1e-4) over (total * F) entries
    table = jax.random.uniform(k0, (total, N_FEATURES), jnp.float32, -1e-4, 1e-4)

    def linear(k, fan_in, fan_out):
        bound = 1.0 / np.sqrt(fan_in)
        return jax.random.uniform(k, (fan_in, fan_out), jnp.float32, -bound, bound)

    w1 = linear(k1, D_PAD, N_NEURONS)
    kh = jax.random.split(k2, N_HIDDEN_LAYERS - 1)
    wh = jnp.stack([linear(kk, N_NEURONS, N_NEURONS) for kk in kh])
    wl = linear(k3, N_NEURONS, O_PAD)
    return table, w1, wh, wl


# ------------------------- pure-JAX f32 reference (sanity check) -------------------------
def reference_forward(coords, params):
    table, w1, wh, wl = params
    embeds, weights = hash_encode(coords, table)
    h = jnp.sum(weights[..., None] * embeds, axis=-2).reshape(coords.shape[0], -1)
    h = jnp.pad(h, ((0, 0), (0, D_PAD - D_ENC)))
    x = jax.nn.relu(jnp.dot(h, w1, precision=lax.Precision.HIGHEST))
    for k in range(N_HIDDEN_LAYERS - 1):
        x = jax.nn.relu(jnp.dot(x, wh[k], precision=lax.Precision.HIGHEST))
    out = jnp.dot(x, wl, precision=lax.Precision.HIGHEST)
    return out[..., :N_OUTPUT_DIMS]


if __name__ == "__main__":
    key = jax.random.PRNGKey(0)
    kp, kc = jax.random.split(key)
    params = init_params(kp)
    # One-time weight prep (tile/transpose/bf16 cast) — hoisted out of forward.
    table, w1f, wh_b, wl_cols = prepare_network_params(params)

    # x: (N, 3) 3-D coordinates in [0, 1)
    N_POINTS = 4096
    coords = jax.random.uniform(kc, (N_POINTS, N_INPUT_DIMS), jnp.float32)

    fwd = jax.jit(inr_forward)
    out = jax.block_until_ready(fwd(coords, table, w1f, wh_b, wl_cols))
    assert out.shape == (N_POINTS, N_OUTPUT_DIMS) and out.dtype == jnp.float32

    ref = reference_forward(coords, params)
    # bf16 transport of the weighted embeddings + bf16 MLP weights/activations
    # cost ~0.2-1% relative error vs the all-f32 reference; accumulation stays
    # f32 inside the kernel (outputs are ~1e-5..1e-4 in magnitude).
    np.testing.assert_allclose(np.asarray(out), np.asarray(ref),
                               rtol=2e-2, atol=2e-6)
    print("KERNEL_OK")
</pallas_src>

<mosaic_0001>
module attributes {stable_mosaic.version = 11 : i64} {
  func.func @inr_kernel(%arg0: i32, %arg1: memref<2048x128xbf16, #tpu.memory_space<vmem>>, %arg2: memref<128x32xbf16, #tpu.memory_space<vmem>>, %arg3: memref<2x32x32xbf16, #tpu.memory_space<vmem>>, %arg4: memref<1x32xbf16, #tpu.memory_space<vmem>>, %arg5: memref<1x2048xf32, #tpu.memory_space<vmem>>) attributes {dimension_semantics = [#tpu.dimension_semantics<parallel>], iteration_bounds = array<i64: 2>, scalar_prefetch = 0 : i64, scratch_operands = 0 : i64, tpu.core_type = #tpu.core_type<tc>, window_params = [{transform_indices = @transform_0, window_bounds = array<i64: 2048, 128>}, {pipeline_mode = #tpu.pipeline_mode<synchronous>, transform_indices = @transform_1, window_bounds = array<i64: 128, 32>}, {pipeline_mode = #tpu.pipeline_mode<synchronous>, transform_indices = @transform_2, window_bounds = array<i64: 2, 32, 32>}, {pipeline_mode = #tpu.pipeline_mode<synchronous>, transform_indices = @transform_3, window_bounds = array<i64: 1, 32>}, {transform_indices = @transform_4, window_bounds = array<i64: 1, 2048>}]} {
    %c0 = arith.constant 0 : index
    %c0_0 = arith.constant 0 : index
    %0 = vector.load %arg1[%c0, %c0_0] : memref<2048x128xbf16, #tpu.memory_space<vmem>>, vector<2048x128xbf16>
    %c0_1 = arith.constant 0 : index
    %c0_2 = arith.constant 0 : index
    %1 = vector.load %arg2[%c0_1, %c0_2] : memref<128x32xbf16, #tpu.memory_space<vmem>>, vector<128x32xbf16>
    %cst = arith.constant dense<0.000000e+00> : vector<2048x32xf32>
    %2 = tpu.matmul %0, %1, %cst {dimension_numbers = #tpu.dot_dimension_numbers<[1], [0], [0], [1], [0, 0, 1, 1], [], []>} : vector<2048x128xbf16>, vector<128x32xbf16>, vector<2048x32xf32> -> vector<2048x32xf32>
    %cst_3 = arith.constant 0.000000e+00 : f32
    %3 = vector.broadcast %cst_3 : f32 to vector<2048x32xf32>
    %4 = arith.maximumf %2, %3 : vector<2048x32xf32>
    %5 = arith.truncf %4 : vector<2048x32xf32> to vector<2048x32xbf16>
    %c0_4 = arith.constant 0 : index
    %c0_5 = arith.constant 0 : index
    %c0_6 = arith.constant 0 : index
    %6 = vector.load %arg3[%c0_4, %c0_5, %c0_6] : memref<2x32x32xbf16, #tpu.memory_space<vmem>>, vector<1x32x32xbf16>
    %7 = vector.shape_cast %6 : vector<1x32x32xbf16> to vector<32x32xbf16>
    %cst_7 = arith.constant dense<0.000000e+00> : vector<2048x32xf32>
    %8 = tpu.matmul %5, %7, %cst_7 {dimension_numbers = #tpu.dot_dimension_numbers<[1], [0], [0], [1], [0, 0, 1, 1], [], []>} : vector<2048x32xbf16>, vector<32x32xbf16>, vector<2048x32xf32> -> vector<2048x32xf32>
    %cst_8 = arith.constant 0.000000e+00 : f32
    %9 = vector.broadcast %cst_8 : f32 to vector<2048x32xf32>
    %10 = arith.maximumf %8, %9 : vector<2048x32xf32>
    %11 = arith.truncf %10 : vector<2048x32xf32> to vector<2048x32xbf16>
    %c1 = arith.constant 1 : index
    %c0_9 = arith.constant 0 : index
    %c0_10 = arith.constant 0 : index
    %12 = vector.load %arg3[%c1, %c0_9, %c0_10] : memref<2x32x32xbf16, #tpu.memory_space<vmem>>, vector<1x32x32xbf16>
    %13 = vector.shape_cast %12 : vector<1x32x32xbf16> to vector<32x32xbf16>
    %cst_11 = arith.constant dense<0.000000e+00> : vector<2048x32xf32>
    %14 = tpu.matmul %11, %13, %cst_11 {dimension_numbers = #tpu.dot_dimension_numbers<[1], [0], [0], [1], [0, 0, 1, 1], [], []>} : vector<2048x32xbf16>, vector<32x32xbf16>, vector<2048x32xf32> -> vector<2048x32xf32>
    %cst_12 = arith.constant 0.000000e+00 : f32
    %15 = vector.broadcast %cst_12 : f32 to vector<2048x32xf32>
    %16 = arith.maximumf %14, %15 : vector<2048x32xf32>
    %17 = arith.truncf %16 : vector<2048x32xf32> to vector<2048x32xbf16>
    %c0_13 = arith.constant 0 : index
    %c0_14 = arith.constant 0 : index
    %18 = vector.load %arg4[%c0_13, %c0_14] : memref<1x32xbf16, #tpu.memory_space<vmem>>, vector<1x32xbf16>
    %cst_15 = arith.constant dense<0.000000e+00> : vector<1x2048xf32>
    %19 = tpu.matmul %18, %17, %cst_15 {dimension_numbers = #tpu.dot_dimension_numbers<[1], [1], [0], [0], [0, 0, 1, 0], [], []>} : vector<1x32xbf16>, vector<2048x32xbf16>, vector<1x2048xf32> -> vector<1x2048xf32>
    %c0_16 = arith.constant 0 : index
    %c0_17 = arith.constant 0 : index
    %20 = vector.load %arg5[%c0_16, %c0_17] : memref<1x2048xf32, #tpu.memory_space<vmem>>, vector<1x2048xf32>
    tpu.vector_store %arg5[%c0_16, %c0_17], %19 {strides = array<i32>} : memref<1x2048xf32, #tpu.memory_space<vmem>>, vector<1x2048xf32>,
    return
  }
  func.func @transform_0(%arg0: i32) -> (i32, i32) {
    %c0_i32 = arith.constant 0 : i32
    %c0_i32_0 = arith.constant 0 : i32
    return %arg0, %c0_i32 : i32, i32
  }
  func.func @transform_1(%arg0: i32) -> (i32, i32) {
    %c0_i32 = arith.constant 0 : i32
    %c0_i32_0 = arith.constant 0 : i32
    %c0_i32_1 = arith.constant 0 : i32
    return %c0_i32, %c0_i32_0 : i32, i32
  }
  func.func @transform_2(%arg0: i32) -> (i32, i32, i32) {
    %c0_i32 = arith.constant 0 : i32
    %c0_i32_0 = arith.constant 0 : i32
    %c0_i32_1 = arith.constant 0 : i32
    %c0_i32_2 = arith.constant 0 : i32
    return %c0_i32, %c0_i32_0, %c0_i32_1 : i32, i32, i32
  }
  func.func @transform_3(%arg0: i32) -> (i32, i32) {
    %c0_i32 = arith.constant 0 : i32
    %c0_i32_0 = arith.constant 0 : i32
    %c0_i32_1 = arith.constant 0 : i32
    return %c0_i32, %c0_i32_0 : i32, i32
  }
  func.func @transform_4(%arg0: i32) -> (i32, i32) {
    %c0_i32 = arith.constant 0 : i32
    %c0_i32_0 = arith.constant 0 : i32
    return %c0_i32, %arg0 : i32, i32
  }
}

</mosaic_0001>

<bundles_post_ra>
// kernel: inr_forward.1
= control target key start
LH: loop header
LB: loop body
LE: loop exit
PB: predicated region body
PF: predicated region fallthrough
CT: control target
= control target key end

     0   :  { %9 = vsyncpa [#allocation3], 0  ;;  %s10715_s0 = inlined_call_operand.vmem [shape: bf16[4096,128], index: 0, kind: input, shape index: {}]   ;;  %s10716_s1 = inlined_call_operand.vmem [shape: bf16[128,32], index: 1, kind: input, shape index: {}]   ;;  %s10717_s2 = inlined_call_operand.vmem [shape: bf16[2,32,32], index: 2, kind: input, shape index: {}]   ;;  %s10718_s3 = inlined_call_operand.vmem [shape: bf16[1,32], index: 3, kind: input, shape index: {}]   ;;  %s10719_s4 = inlined_call_operand.hbm [shape: f32[1,4096], index: 4, kind: output, shape index: {}]  }
   0x1   :  { %11 = vsyncpa [#allocation3 + $0x1], 0  ;;  %s9410_s15 = smov 0   ;;  %s9412_s16 = smov 0  }
   0x2   :  { %s9414_s17 = smov 0   ;;  %s9416_s18 = smov 0  }
   0x3 LB: > { %s7320_s19 = sadd.s32 4294967295, %s9381_s18   ;;  %s7321_s20 = sadd.s32 4294967294, %s9381_s18   ;;  %s9381_s18 = sphi %s9416_s18, %s10821_s18   ;;  %s9377_s17 = sphi %s9414_s17, %s10820_s17   ;;  %s9373_s16 = sphi %s9412_s16, %s10819_s16   ;;  %s9369_s15 = sphi %s9410_s15, %s10818_s15  }
   0x4   : > { %s9433_s21 = sadd.s32 1, %s9381_s18   ;;  %s113_s22 = sadd.s32 1, %s9377_s17 }
   0x5   : > { %s110_s23 = ssub.s32 %s9381_s18, %s9433_s21  ;;  %p123_p0 = scmp.ne.s32.totalorder %s9377_s17, %s9373_s16 }
   0x6   : > { %p111_p1 = scmp.eq.s32.totalorder %s110_s23, 0  ;;  %p124_p2 = scmp.eq.s32.totalorder %s7320_s19, 1 }
   0x7   : > { %p129_p3 = scmp.ne.s32.totalorder %s9373_s16, %s9369_s15  ;;  %p130_p4 = scmp.eq.s32.totalorder %s7321_s20, 1 }
   0x8   : > { %s9443_s24 = scalar_select %p111_p1, %s9377_s17, %s113_s22  }
   0x9   : > { %p9445_p5 = por %p124_p2, %p123_p0  ;;  %p9449_p6 = por %p130_p4, %p129_p3 }
   0xa   : > { %p7324_p7 = scmp.ge.s32.totalorder %s9381_s18, 1  ;;  %p166_p8 = scmp.lt.s32.totalorder %s9381_s18, 3 }
   0xc   : > { %p167_p9 = pnand %p7324_p7, %p166_p8 }
   0xe   : > { %170 = sbr.rel (%p167_p9) target bundleno = 1786 (0x6fa), region = 36 }
  0x15   : > { %v9178_v0 = vld [vmem:[%s10716_s1] sm:$0xff]   ;;  %s9458_s29 = sshll.u32 %s7320_s19, 8  ;;  %v9179_v1 = vld [vmem:[%s10716_s1 + $0x8] sm:$0xff]   ;;  %v9180_v2 = vld [vmem:[%s10716_s1 + $0x10] sm:$0xff]   ;;  %vm2745_vm0 = vcmask 261120   ;;  %s189_s23 = sand.u32 1, %s9373_s16  }
  0x16   : > { %p193_p10 = scmp.lt.s32.totalorder %s9458_s29, 511  ;;  %8282 = vmatprep.subr.bf16.mxu0 %v9178_v0  ;;  %v9181_v3 = vld [vmem:[%s10716_s1 + $0x18] sm:$0xff]   ;;  %v9182_v5 = vld [vmem:[%s10716_s1 + $0x20] sm:$0xff]   ;;  %v9183_v6 = vld [vmem:[%s10716_s1 + $0x28] sm:$0xff]   ;;  %s7325_s27 = sshll.u32 %s189_s23, 4 }
  0x17   : > { %8283 = vmatpush3.bf16.msra.mxu0 %v9178_v0  ;;  %v9184_v7 = vld [vmem:[%s10716_s1 + $0x30] sm:$0xff]   ;;  %v9185_v8 = vld [vmem:[%s10716_s1 + $0x38] sm:$0xff]   ;;  %v9240_v31 = vld [vmem:[%s10717_s2] sm:$0xff]   ;;  %s10643_s28 = scalar_lea.vmem [#allocation2], %s7325_s27  ;;  %s10670_s7 = scalar_lea.hbm %s10719_s4, %s9458_s29 }
  0x18   : > { %s194_s6 = scalar_select %p193_p10, %s9458_s29, 511  ;;  %8284 = vmatprep.subr.bf16.mxu0 %v9179_v1  ;;  %8554 = vmatprep.subr.bf16.mxu1 %v9240_v31  ;;  %v9243_v34 = vld [vmem:[%s10717_s2 + $0x8] sm:$0xff]  }
  0x19   : > { %8555 = vmatpush3.bf16.msra.mxu1 %v9240_v31  ;;  %s7262_s30 = sshll.u32 %s10643_s28, 4  ;;  %s7248_s8 = scalar_lea.sflag [#allocation3], %s189_s23  ;;  %s10672_s30 = int_to_ptr.vmem [resolvable:$true] %s7262_s30 }
  0x1a   : > { %s7327_s9 = sshll.u32 %s194_s6, 2  ;;  %8556 = vmatprep.subr.bf16.mxu1 %v9243_v34  ;;  %s9384_s10 = smov [#allocation2]  }
  0x1b   : > { %s9471_s12 = scalar_lea.vmem %s10715_s0, %s7327_s9  ;;  %8285 = vmatpush3.bf16.msra.mxu0 %v9179_v1  ;;  %s9319_s9 = scalar_lea.vmem %s10672_s30, 256 }
  0x1c   : > { %8286 = vmatprep.subr.bf16.mxu0 %v9180_v2  ;;  %v9186_v4 = vld [vmem:[%s9471_s12] sm:$0xff]   ;;  %v9187_v9 = vld [vmem:[%s9471_s12 + $0x8] sm:$0xff]   ;;  %v9188_v10 = vld [vmem:[%s9471_s12 + $0x10] sm:$0xff]   ;;  %p9320_p11 = scmp.ne.s32.totalorder %s10672_s30, %s9319_s9  ;;  %s9323_s11 = sshll.u32 %s9384_s10, 4  ;;  %s9324_s11 = int_to_ptr.vmem [resolvable:$false] %s9323_s11 }
  0x1d   : > { %8298 = vmatprep.mubr.bf16.mxu0 %v9186_v4  ;;  %v9189_v11 = vld [vmem:[%s9471_s12 + $0x18] sm:$0xff]   ;;  %v9190_v12 = vld [vmem:[%s9471_s12 + $0x20] sm:$0xff]   ;;  %v9191_v13 = vld [vmem:[%s9471_s12 + $0x28] sm:$0xff]   ;;  %8557 = vmatpush3.bf16.msra.mxu1 %v9243_v34  ;;  %p9326_p0 = scmp.lt.s32.totalorder %s10672_s30, %s9324_s11 }
  0x1e   : > { %v9192_v14 = vld [vmem:[%s9471_s12 + $0x30] sm:$0xff]   ;;  %v9193_v15 = vld [vmem:[%s9471_s12 + $0x38] sm:$0xff]   ;;  %v9194_v16 = vld [vmem:[%s9471_s12 + $0x40] sm:$0xff]   ;;  %p9321_p12 = pnand %p9320_p11, %p9445_p5 }
  0x1f   : > { %8287 = vmatpush3.bf16.msra.mxu0 %v9180_v2  ;;  %v9195_v17 = vld [vmem:[%s9471_s12 + $0x48] sm:$0xff]   ;;  %v9196_v18 = vld [vmem:[%s9471_s12 + $0x50] sm:$0xff]   ;;  %v9197_v19 = vld [vmem:[%s9471_s12 + $0x58] sm:$0xff]  }
  0x20   : > { %8288 = vmatprep.subr.bf16.mxu0 %v9181_v3  ;;  %v9198_v20 = vld [vmem:[%s9471_s12 + $0x60] sm:$0xff]   ;;  %v9199_v21 = vld [vmem:[%s9471_s12 + $0x68] sm:$0xff]   ;;  %v9200_v22 = vld [vmem:[%s9471_s12 + $0x70] sm:$0xff]   ;;  %p9322_p13 = pneg %p9321_p12 }
  0x21   : > { %v9201_v23 = vld [vmem:[%s9471_s12 + $0x78] sm:$0xff]   ;;  %v9202_v24 = vld [vmem:[%s9471_s12 + $0x80] sm:$0xff]   ;;  %v9203_v25 = vld [vmem:[%s9471_s12 + $0x88] sm:$0xff]  }
  0x22   : > { %v9204_v26 = vld [vmem:[%s9471_s12 + $0x90] sm:$0xff]   ;;  %v9205_v27 = vld [vmem:[%s9471_s12 + $0x98] sm:$0xff]   ;;  %v9206_v28 = vld [vmem:[%s9471_s12 + $0xa0] sm:$0xff]  }
  0x23   : > { %8289 = vmatpush3.bf16.msra.mxu0 %v9181_v3  ;;  %v9207_v29 = vld [vmem:[%s9471_s12 + $0xa8] sm:$0xff]   ;;  %v9208_v30 = vld [vmem:[%s9471_s12 + $0xb0] sm:$0xff]   ;;  %v9209_v32 = vld [vmem:[%s9471_s12 + $0xb8] sm:$0xff]  }
  0x24   : > { %8290 = vmatprep.subr.bf16.mxu0 %v9182_v5  ;;  %v9210_v33 = vld [vmem:[%s9471_s12 + $0xc0] sm:$0xff]   ;;  %v9211_v35 = vld [vmem:[%s9471_s12 + $0xc8] sm:$0xff]   ;;  %v9212_v36 = vld [vmem:[%s9471_s12 + $0xd0] sm:$0xff]  }
  0x25   : > { %v9213_v37 = vld [vmem:[%s9471_s12 + $0xd8] sm:$0xff]   ;;  %v9214_v38 = vld [vmem:[%s9471_s12 + $0xe0] sm:$0xff]   ;;  %v9215_v39 = vld [vmem:[%s9471_s12 + $0xe8] sm:$0xff]  }
  0x26   : > { %v9216_v40 = vld [vmem:[%s9471_s12 + $0xf0] sm:$0xff]   ;;  %v9217_v41 = vld [vmem:[%s9471_s12 + $0xf8] sm:$0xff]   ;;  %v9218_v42 = vld [vmem:[%s9471_s12 + $0x100] sm:$0xff]  }
  0x27   : > { %8291 = vmatpush3.bf16.msra.mxu0 %v9182_v5  ;;  %v9219_v43 = vld [vmem:[%s9471_s12 + $0x108] sm:$0xff]   ;;  %v9220_v44 = vld [vmem:[%s9471_s12 + $0x110] sm:$0xff]   ;;  %v9221_v45 = vld [vmem:[%s9471_s12 + $0x118] sm:$0xff]  }
  0x28   : > { %8292 = vmatprep.subr.bf16.mxu0 %v9183_v6  ;;  %v9222_v46 = vld [vmem:[%s9471_s12 + $0x120] sm:$0xff]   ;;  %v9223_v47 = vld [vmem:[%s9471_s12 + $0x128] sm:$0xff]   ;;  %v9224_v48 = vld [vmem:[%s9471_s12 + $0x130] sm:$0xff]  }
  0x29   : > { %v9225_v49 = vld [vmem:[%s9471_s12 + $0x138] sm:$0xff]   ;;  %v9226_v50 = vld [vmem:[%s9471_s12 + $0x140] sm:$0xff]   ;;  %v9227_v51 = vld [vmem:[%s9471_s12 + $0x148] sm:$0xff]  }
  0x2a   : > { %v9228_v52 = vld [vmem:[%s9471_s12 + $0x150] sm:$0xff]   ;;  %v9229_v53 = vld [vmem:[%s9471_s12 + $0x158] sm:$0xff]   ;;  %v9230_v54 = vld [vmem:[%s9471_s12 + $0x160] sm:$0xff]  }
  0x2b   : > { %8293 = vmatpush3.bf16.msra.mxu0 %v9183_v6  ;;  %v9231_v55 = vld [vmem:[%s9471_s12 + $0x168] sm:$0xff]   ;;  %v9232_v56 = vld [vmem:[%s9471_s12 + $0x170] sm:$0xff]   ;;  %v9233_v57 = vld [vmem:[%s9471_s12 + $0x178] sm:$0xff]  }
  0x2c   : > { %8294 = vmatprep.subr.bf16.mxu0 %v9184_v7  ;;  %v9234_v58 = vld [vmem:[%s9471_s12 + $0x180] sm:$0xff]   ;;  %v9235_v59 = vld [vmem:[%s9471_s12 + $0x188] sm:$0xff]   ;;  %v9236_v60 = vld [vmem:[%s9471_s12 + $0x190] sm:$0xff]  }
  0x2d   : > { %v9237_v61 = vld [vmem:[%s9471_s12 + $0x198] sm:$0xff]   ;;  %v9238_v62 = vld [vmem:[%s9471_s12 + $0x1a0] sm:$0xff]   ;;  %v9239_v63 = vld [vmem:[%s9471_s12 + $0x1a8] sm:$0xff]  }
  0x2e   : > { %v9241_v0 = vld [vmem:[%s9471_s12 + $0x1b0] sm:$0xff]   ;;  %v9242_v3 = vld [vmem:[%s9471_s12 + $0x1b8] sm:$0xff]   ;;  %v9244_v5 = vld [vmem:[%s9471_s12 + $0x1c0] sm:$0xff]  }
  0x2f   : > { %8295 = vmatpush3.bf16.msra.mxu0 %v9184_v7 }
  0x30   : > { %8296 = vmatprep.subr.bf16.mxu0 %v9185_v8 }
  0x33   : > { %8297 = vmatpush3.bf16.msra.mxu0 %v9185_v8 }
  0x36   : > { %8299 = vmatmul.mubr.bf16.vlgmr.msra.gmra.mrb[0].mxu0 %v9187_v9 }
  0x37   : > { %8302 = vmatprep.mubr.bf16.mxu0 %v9188_v10 }
  0x3e   : > { %8303 = vmatmul.mubr.bf16.gmra.mrb[4].mxu0 %v9189_v11 }
  0x3f   : > { %8306 = vmatprep.mubr.bf16.mxu0 %v9190_v12 }
  0x46   : > { %8307 = vmatmul.mubr.bf16.gmra.mrb[8].mxu0 %v9191_v13 }
  0x47   : > { %8310 = vmatprep.mubr.bf16.mxu0 %v9192_v14 }
  0x4e   : > { %8311 = vmatmul.mubr.bf16.gmra.mrb[12].mxu0 %v9193_v15  ;;  %v9245_v15 = vld [vmem:[%s9471_s12 + $0x1c8] sm:$0xff]  }
  0x4f   : > { %8314 = vmatprep.mubr.bf16.mxu0 %v9194_v16 }
  0x56   : > { %8315 = vmatmul.mubr.bf16.gmra.mrb[16].mxu0 %v9195_v17  ;;  %v9246_v17 = vld [vmem:[%s9471_s12 + $0x1d0] sm:$0xff]  }
  0x57   : > { %8318 = vmatprep.mubr.bf16.mxu0 %v9196_v18 }
  0x5e   : > { %8319 = vmatmul.mubr.bf16.gmra.mrb[20].mxu0 %v9197_v19 }
  0x5f   : > { %8322 = vmatprep.mubr.bf16.mxu0 %v9198_v20 }
  0x66   : > { %8323 = vmatmul.mubr.bf16.gmra.mrb[24].mxu0 %v9199_v21 }
  0x67   : > { %8326 = vmatprep.mubr.bf16.mxu0 %v9200_v22 }
  0x6e   : > { %8327 = vmatmul.mubr.bf16.gmra.mrb[28].mxu0 %v9201_v23 }
  0x6f   : > { %8330 = vmatprep.mubr.bf16.mxu0 %v9202_v24 }
  0x76   : > { %8331 = vmatmul.mubr.bf16.gmra.mrb[32].mxu0 %v9203_v25 }
  0x77   : > { %8334 = vmatprep.mubr.bf16.mxu0 %v9204_v26 }
  0x7e   : > { %8335 = vmatmul.mubr.bf16.gmra.mrb[36].mxu0 %v9205_v27  ;;  %v9247_v27 = vld [vmem:[%s9471_s12 + $0x1d8] sm:$0xff]  }
  0x7f   : > { %8338 = vmatprep.mubr.bf16.mxu0 %v9206_v28 }
  0x86   : > { %8339 = vmatmul.mubr.bf16.gmra.mrb[40].mxu0 %v9207_v29  ;;  %v9248_v29 = vld [vmem:[%s9471_s12 + $0x1e0] sm:$0xff]  }
  0x87   : > { %8342 = vmatprep.mubr.bf16.mxu0 %v9208_v30 }
  0x8e   : > { %8343 = vmatmul.mubr.bf16.gmra.mrb[44].mxu0 %v9209_v32 }
  0x8f   : > { %8346 = vmatprep.mubr.bf16.mxu0 %v9210_v33 }
  0x96   : > { %8347 = vmatmul.mubr.bf16.gmra.mrb[48].mxu0 %v9211_v35 }
  0x97   : > { %8350 = vmatprep.mubr.bf16.mxu0 %v9212_v36 }
  0x9e   : > { %8351 = vmatmul.mubr.bf16.gmra.mrb[52].mxu0 %v9213_v37 }
  0x9f   : > { %8354 = vmatprep.mubr.bf16.mxu0 %v9214_v38 }
  0xa6   : > { %8355 = vmatmul.mubr.bf16.gmra.mrb[56].mxu0 %v9215_v39  ;;  %v9249_v39 = vld [vmem:[%s9471_s12 + $0x1e8] sm:$0xff]  }
  0xa7   : > { %8358 = vmatprep.mubr.bf16.mxu0 %v9216_v40 }
  0xae   : > { %8359 = vmatmul.mubr.bf16.gmra.mrb[60].mxu0 %v9217_v41  ;;  %v9250_v41 = vld [vmem:[%s9471_s12 + $0x1f0] sm:$0xff]  }
  0xaf   : > { %8362 = vmatprep.mubr.bf16.mxu0 %v9218_v42 }
  0xb6   : > { %8363 = vmatmul.mubr.bf16.gmra.mrb[64].mxu0 %v9219_v43 }
  0xb7   : > { %8366 = vmatprep.mubr.bf16.mxu0 %v9220_v44 }
  0xbe   : > { %8367 = vmatmul.mubr.bf16.gmra.mrb[68].mxu0 %v9221_v45 }
  0xbf   : > { %8370 = vmatprep.mubr.bf16.mxu0 %v9222_v46 }
  0xc6   : > { %8371 = vmatmul.mubr.bf16.gmra.mrb[72].mxu0 %v9223_v47 }
  0xc7   : > { %8374 = vmatprep.mubr.bf16.mxu0 %v9224_v48 }
  0xce   : > { %8375 = vmatmul.mubr.bf16.gmra.mrb[76].mxu0 %v9225_v49 }
  0xcf   : > { %8378 = vmatprep.mubr.bf16.mxu0 %v9226_v50 }
  0xd6   : > { %8379 = vmatmul.mubr.bf16.gmra.mrb[80].mxu0 %v9227_v51  ;;  %v9251_v51 = vld [vmem:[%s9471_s12 + $0x1f8] sm:$0xff]  }
  0xd7   : > { %8382 = vmatprep.mubr.bf16.mxu0 %v9228_v52 }
  0xde   : > { %8383 = vmatmul.mubr.bf16.gmra.mrb[84].mxu0 %v9229_v53  ;;  %v9252_v53 = vld [vmem:[%s9471_s12 + $0x200] sm:$0xff]  }
  0xdf   : > { %8386 = vmatprep.mubr.bf16.mxu0 %v9230_v54 }
  0xe6   : > { %8387 = vmatmul.mubr.bf16.gmra.mrb[88].mxu0 %v9231_v55 }
  0xe7   : > { %8390 = vmatprep.mubr.bf16.mxu0 %v9232_v56 }
  0xee   : > { %8391 = vmatmul.mubr.bf16.gmra.mrb[92].mxu0 %v9233_v57 }
  0xef   : > { %8394 = vmatprep.mubr.bf16.mxu0 %v9234_v58 }
  0xf6   : > { %8395 = vmatmul.mubr.bf16.gmra.mrb[96].mxu0 %v9235_v59 }
  0xf7   : > { %8398 = vmatprep.mubr.bf16.mxu0 %v9236_v60 }
  0xfe   : > { %8399 = vmatmul.mubr.bf16.gmra.mrb[100].mxu0 %v9237_v61 }
  0xff   : > { %8402 = vmatprep.mubr.bf16.mxu0 %v9238_v62 }
 0x106   : > { %8403 = vmatmul.mubr.bf16.gmra.mrb[104].mxu0 %v9239_v63  ;;  %v9253_v63 = vld [vmem:[%s9471_s12 + $0x208] sm:$0xff]  }
 0x107   : > { %8406 = vmatprep.mubr.bf16.mxu0 %v9241_v0 }
 0x109   : > { %v8300_v1 = vpop.f32.mrb[0].mxu0 }
 0x10a   : > { %v1322_v2 = vpop.f32.mrb[1].mxu0  ;;  %v2347_v6 = vmax.f32 %v8300_v1, 0.0  ;;  %v9254_v1 = vld [vmem:[%s9471_s12 + $0x210] sm:$0xff]  }
 0x10b   : > { %v8301_v4 = vpop.f32.mrb[2].mxu0  ;;  %v2345_v9 = vmax.f32 %v1322_v2, 0.0 }
 0x10c   : > { %v2348_v7 = vmax.f32 %v8301_v4, 0.0  ;;  %v1325_v8 = vpop.f32.mrb[3].mxu0 }
 0x10d   : > { %v2346_v10 = vmax.f32 %v1325_v8, 0.0 }
 0x10e   : > { %v2602_v11 = vpack.c.bf16 %v2348_v7, %v2347_v6  ;;  %8407 = vmatmul.mubr.bf16.gmra.mrb[108].mxu0 %v9242_v3 }
 0x10f   : > { %v2601_v12 = vpack.c.bf16 %v2346_v10, %v2345_v9  ;;  %8410 = vmatprep.mubr.bf16.mxu0 %v9244_v5 }
 0x111   : > { %v8304_v13 = vpop.f32.mrb[4].mxu0  ;;  %8558 = vmatprep.mubr.msk.bf16.mxu1 %vm2745_vm0, %v2601_v12 }
 0x112   : > { %v1338_v14 = vpop.f32.mrb[5].mxu0  ;;  %8559 = vmatmul.mubr.msk.bf16.vlgmr.msra.gmra.mrb[0].mxu1 %vm2745_vm0, %v2602_v11  ;;  %v2351_v18 = vmax.f32 %v8304_v13, 0.0  ;;  %v9255_v11 = vld [vmem:[%s9471_s12 + $0x218] sm:$0xff]   ;;  %v9256_v13 = vld [vmem:[%s9471_s12 + $0x220] sm:$0xff]  }
 0x113   : > { %v8305_v16 = vpop.f32.mrb[6].mxu0  ;;  %v2349_v21 = vmax.f32 %v1338_v14, 0.0 }
 0x114   : > { %v2352_v19 = vmax.f32 %v8305_v16, 0.0  ;;  %v1341_v20 = vpop.f32.mrb[7].mxu0 }
 0x115   : > { %v2350_v22 = vmax.f32 %v1341_v20, 0.0 }
 0x116   : > { %v2604_v23 = vpack.c.bf16 %v2352_v19, %v2351_v18  ;;  %8411 = vmatmul.mubr.bf16.gmra.mrb[112].mxu0 %v9245_v15 }
 0x117   : > { %v2603_v24 = vpack.c.bf16 %v2350_v22, %v2349_v21  ;;  %8414 = vmatprep.mubr.bf16.mxu0 %v9246_v17 }
 0x119   : > { %v8308_v25 = vpop.f32.mrb[8].mxu0  ;;  %8562 = vmatprep.mubr.msk.bf16.mxu1 %vm2745_vm0, %v2603_v24 }
 0x11a   : > { %v1354_v26 = vpop.f32.mrb[9].mxu0  ;;  %8563 = vmatmul.mubr.msk.bf16.gmra.mrb[4].mxu1 %vm2745_vm0, %v2604_v23  ;;  %v2355_v30 = vmax.f32 %v8308_v25, 0.0  ;;  %v9257_v23 = vld [vmem:[%s9471_s12 + $0x228] sm:$0xff]   ;;  %v9258_v25 = vld [vmem:[%s9471_s12 + $0x230] sm:$0xff]  }
 0x11b   : > { %v8309_v28 = vpop.f32.mrb[10].mxu0  ;;  %v2353_v33 = vmax.f32 %v1354_v26, 0.0 }
 0x11c   : > { %v2356_v31 = vmax.f32 %v8309_v28, 0.0  ;;  %v1357_v32 = vpop.f32.mrb[11].mxu0 }
 0x11d   : > { %v2354_v34 = vmax.f32 %v1357_v32, 0.0 }
 0x11e   : > { %v2606_v35 = vpack.c.bf16 %v2356_v31, %v2355_v30  ;;  %8415 = vmatmul.mubr.bf16.gmra.mrb[116].mxu0 %v9247_v27 }
 0x11f   : > { %v2605_v36 = vpack.c.bf16 %v2354_v34, %v2353_v33  ;;  %8418 = vmatprep.mubr.bf16.mxu0 %v9248_v29 }
 0x121   : > { %v8312_v37 = vpop.f32.mrb[12].mxu0  ;;  %8566 = vmatprep.mubr.msk.bf16.mxu1 %vm2745_vm0, %v2605_v36 }
 0x122   : > { %v1370_v38 = vpop.f32.mrb[13].mxu0  ;;  %8567 = vmatmul.mubr.msk.bf16.gmra.mrb[8].mxu1 %vm2745_vm0, %v2606_v35  ;;  %v2359_v42 = vmax.f32 %v8312_v37, 0.0  ;;  %v9259_v35 = vld [vmem:[%s9471_s12 + $0x238] sm:$0xff]   ;;  %v9260_v37 = vld [vmem:[%s9471_s12 + $0x240] sm:$0xff]  }
 0x123   : > { %v8313_v40 = vpop.f32.mrb[14].mxu0  ;;  %v2357_v45 = vmax.f32 %v1370_v38, 0.0 }
 0x124   : > { %v2360_v43 = vmax.f32 %v8313_v40, 0.0  ;;  %v1373_v44 = vpop.f32.mrb[15].mxu0 }
 0x125   : > { %v2358_v46 = vmax.f32 %v1373_v44, 0.0 }
 0x126   : > { %v2608_v47 = vpack.c.bf16 %v2360_v43, %v2359_v42  ;;  %8419 = vmatmul.mubr.bf16.gmra.mrb[120].mxu0 %v9249_v39 }
 0x127   : > { %v2607_v48 = vpack.c.bf16 %v2358_v46, %v2357_v45  ;;  %8422 = vmatprep.mubr.bf16.mxu0 %v9250_v41 }
 0x129   : > { %v8316_v49 = vpop.f32.mrb[16].mxu0  ;;  %8570 = vmatprep.mubr.msk.bf16.mxu1 %vm2745_vm0, %v2607_v48 }
 0x12a   : > { %v1386_v50 = vpop.f32.mrb[17].mxu0  ;;  %8571 = vmatmul.mubr.msk.bf16.gmra.mrb[12].mxu1 %vm2745_vm0, %v2608_v47  ;;  %v2363_v54 = vmax.f32 %v8316_v49, 0.0  ;;  %v9261_v47 = vld [vmem:[%s9471_s12 + $0x248] sm:$0xff]   ;;  %v9262_v49 = vld [vmem:[%s9471_s12 + $0x250] sm:$0xff]  }
 0x12b   : > { %v8317_v52 = vpop.f32.mrb[18].mxu0  ;;  %v2361_v57 = vmax.f32 %v1386_v50, 0.0 }
 0x12c   : > { %v2364_v55 = vmax.f32 %v8317_v52, 0.0  ;;  %v1389_v56 = vpop.f32.mrb[19].mxu0 }
 0x12d   : > { %v2362_v58 = vmax.f32 %v1389_v56, 0.0 }
 0x12e   : > { %v2610_v59 = vpack.c.bf16 %v2364_v55, %v2363_v54  ;;  %8423 = vmatmul.mubr.bf16.gmra.mrb[124].mxu0 %v9251_v51 }
 0x12f   : > { %v2609_v60 = vpack.c.bf16 %v2362_v58, %v2361_v57  ;;  %8426 = vmatprep.mubr.bf16.mxu0 %v9252_v53 }
 0x131   : > { %v8320_v61 = vpop.f32.mrb[20].mxu0  ;;  %8574 = vmatprep.mubr.msk.bf16.mxu1 %vm2745_vm0, %v2609_v60 }
 0x132   : > { %v1402_v62 = vpop.f32.mrb[21].mxu0  ;;  %8575 = vmatmul.mubr.msk.bf16.gmra.mrb[16].mxu1 %vm2745_vm0, %v2610_v59  ;;  %v2367_v2 = vmax.f32 %v8320_v61, 0.0  ;;  %v9263_v59 = vld [vmem:[%s9471_s12 + $0x258] sm:$0xff]   ;;  %v9264_v61 = vld [vmem:[%s9471_s12 + $0x260] sm:$0xff]  }
 0x133   : > { %v8321_v0 = vpop.f32.mrb[22].mxu0  ;;  %v2365_v5 = vmax.f32 %v1402_v62, 0.0 }
 0x134   : > { %v2368_v3 = vmax.f32 %v8321_v0, 0.0  ;;  %v1405_v4 = vpop.f32.mrb[23].mxu0 }
 0x135   : > { %v2366_v6 = vmax.f32 %v1405_v4, 0.0 }
 0x136   : > { %v2612_v7 = vpack.c.bf16 %v2368_v3, %v2367_v2  ;;  %8427 = vmatmul.mubr.bf16.gmra.mrb[128].mxu0 %v9253_v63 }
 0x137   : > { %v2611_v8 = vpack.c.bf16 %v2366_v6, %v2365_v5  ;;  %8430 = vmatprep.mubr.bf16.mxu0 %v9254_v1 }
 0x139   : > { %v8324_v9 = vpop.f32.mrb[24].mxu0  ;;  %8578 = vmatprep.mubr.msk.bf16.mxu1 %vm2745_vm0, %v2611_v8 }
 0x13a   : > { %v1418_v10 = vpop.f32.mrb[25].mxu0  ;;  %8579 = vmatmul.mubr.msk.bf16.gmra.mrb[20].mxu1 %vm2745_vm0, %v2612_v7  ;;  %v2371_v14 = vmax.f32 %v8324_v9, 0.0  ;;  %v9265_v7 = vld [vmem:[%s9471_s12 + $0x268] sm:$0xff]   ;;  %v9266_v9 = vld [vmem:[%s9471_s12 + $0x270] sm:$0xff]  }
 0x13b   : > { %v8325_v12 = vpop.f32.mrb[26].mxu0  ;;  %v2369_v17 = vmax.f32 %v1418_v10, 0.0 }
 0x13c   : > { %v2372_v15 = vmax.f32 %v8325_v12, 0.0  ;;  %v1421_v16 = vpop.f32.mrb[27].mxu0 }
 0x13d   : > { %v2370_v18 = vmax.f32 %v1421_v16, 0.0 }
 0x13e   : > { %v2614_v19 = vpack.c.bf16 %v2372_v15, %v2371_v14  ;;  %8431 = vmatmul.mubr.bf16.gmra.mrb[132].mxu0 %v9255_v11 }
 0x13f   : > { %v2613_v20 = vpack.c.bf16 %v2370_v18, %v2369_v17  ;;  %8434 = vmatprep.mubr.bf16.mxu0 %v9256_v13 }
 0x141   : > { %v8328_v21 = vpop.f32.mrb[28].mxu0  ;;  %8582 = vmatprep.mubr.msk.bf16.mxu1 %vm2745_vm0, %v2613_v20 }
 0x142   : > { %v1434_v22 = vpop.f32.mrb[29].mxu0  ;;  %8583 = vmatmul.mubr.msk.bf16.gmra.mrb[24].mxu1 %vm2745_vm0, %v2614_v19  ;;  %v2375_v26 = vmax.f32 %v8328_v21, 0.0  ;;  %v9267_v19 = vld [vmem:[%s9471_s12 + $0x278] sm:$0xff]   ;;  %v9268_v21 = vld [vmem:[%s9471_s12 + $0x280] sm:$0xff]  }
 0x143   : > { %v8329_v24 = vpop.f32.mrb[30].mxu0  ;;  %v2373_v29 = vmax.f32 %v1434_v22, 0.0 }
 0x144   : > { %v2376_v27 = vmax.f32 %v8329_v24, 0.0  ;;  %v1437_v28 = vpop.f32.mrb[31].mxu0 }
 0x145   : > { %v2374_v30 = vmax.f32 %v1437_v28, 0.0 }
 0x146   : > { %v2616_v31 = vpack.c.bf16 %v2376_v27, %v2375_v26  ;;  %8435 = vmatmul.mubr.bf16.gmra.mrb[136].mxu0 %v9257_v23 }
 0x147   : > { %v2615_v32 = vpack.c.bf16 %v2374_v30, %v2373_v29  ;;  %8438 = vmatprep.mubr.bf16.mxu0 %v9258_v25 }
 0x149   : > { %v8332_v33 = vpop.f32.mrb[32].mxu0  ;;  %8586 = vmatprep.mubr.msk.bf16.mxu1 %vm2745_vm0, %v2615_v32 }
 0x14a   : > { %v1450_v34 = vpop.f32.mrb[33].mxu0  ;;  %8587 = vmatmul.mubr.msk.bf16.gmra.mrb[28].mxu1 %vm2745_vm0, %v2616_v31  ;;  %v2379_v38 = vmax.f32 %v8332_v33, 0.0  ;;  %v9269_v31 = vld [vmem:[%s9471_s12 + $0x288] sm:$0xff]   ;;  %v9270_v33 = vld [vmem:[%s9471_s12 + $0x290] sm:$0xff]  }
 0x14b   : > { %v8333_v36 = vpop.f32.mrb[34].mxu0  ;;  %v2377_v41 = vmax.f32 %v1450_v34, 0.0 }
 0x14c   : > { %v2380_v39 = vmax.f32 %v8333_v36, 0.0  ;;  %v1453_v40 = vpop.f32.mrb[35].mxu0 }
 0x14d   : > { %v2378_v42 = vmax.f32 %v1453_v40, 0.0 }
 0x14e   : > { %v2618_v43 = vpack.c.bf16 %v2380_v39, %v2379_v38  ;;  %8439 = vmatmul.mubr.bf16.gmra.mrb[140].mxu0 %v9259_v35 }
 0x14f   : > { %v2617_v44 = vpack.c.bf16 %v2378_v42, %v2377_v41  ;;  %8442 = vmatprep.mubr.bf16.mxu0 %v9260_v37 }
 0x151   : > { %v8336_v45 = vpop.f32.mrb[36].mxu0  ;;  %8590 = vmatprep.mubr.msk.bf16.mxu1 %vm2745_vm0, %v2617_v44 }
 0x152   : > { %v1466_v46 = vpop.f32.mrb[37].mxu0  ;;  %8591 = vmatmul.mubr.msk.bf16.gmra.mrb[32].mxu1 %vm2745_vm0, %v2618_v43  ;;  %v2383_v50 = vmax.f32 %v8336_v45, 0.0  ;;  %v9271_v43 = vld [vmem:[%s9471_s12 + $0x298] sm:$0xff]   ;;  %v9272_v45 = vld [vmem:[%s9471_s12 + $0x2a0] sm:$0xff]  }
 0x153   : > { %v8337_v48 = vpop.f32.mrb[38].mxu0  ;;  %v2381_v53 = vmax.f32 %v1466_v46, 0.0 }
 0x154   : > { %v2384_v51 = vmax.f32 %v8337_v48, 0.0  ;;  %v1469_v52 = vpop.f32.mrb[39].mxu0 }
 0x155   : > { %v2382_v54 = vmax.f32 %v1469_v52, 0.0 }
 0x156   : > { %v2620_v55 = vpack.c.bf16 %v2384_v51, %v2383_v50  ;;  %8443 = vmatmul.mubr.bf16.gmra.mrb[144].mxu0 %v9261_v47 }
 0x157   : > { %v2619_v56 = vpack.c.bf16 %v2382_v54, %v2381_v53  ;;  %8446 = vmatprep.mubr.bf16.mxu0 %v9262_v49 }
 0x159   : > { %v8340_v57 = vpop.f32.mrb[40].mxu0  ;;  %8594 = vmatprep.mubr.msk.bf16.mxu1 %vm2745_vm0, %v2619_v56 }
 0x15a   : > { %v1482_v58 = vpop.f32.mrb[41].mxu0  ;;  %8595 = vmatmul.mubr.msk.bf16.gmra.mrb[36].mxu1 %vm2745_vm0, %v2620_v55  ;;  %v2387_v62 = vmax.f32 %v8340_v57, 0.0  ;;  %v9273_v55 = vld [vmem:[%s9471_s12 + $0x2a8] sm:$0xff]   ;;  %v9274_v57 = vld [vmem:[%s9471_s12 + $0x2b0] sm:$0xff]  }
 0x15b   : > { %v8341_v60 = vpop.f32.mrb[42].mxu0  ;;  %v2385_v1 = vmax.f32 %v1482_v58, 0.0 }
 0x15c   : > { %v2388_v63 = vmax.f32 %v8341_v60, 0.0  ;;  %v1485_v0 = vpop.f32.mrb[43].mxu0 }
 0x15d   : > { %v2386_v2 = vmax.f32 %v1485_v0, 0.0 }
 0x15e   : > { %v2622_v3 = vpack.c.bf16 %v2388_v63, %v2387_v62  ;;  %8447 = vmatmul.mubr.bf16.gmra.mrb[148].mxu0 %v9263_v59 }
 0x15f   : > { %v2621_v4 = vpack.c.bf16 %v2386_v2, %v2385_v1  ;;  %8450 = vmatprep.mubr.bf16.mxu0 %v9264_v61 }
 0x161   : > { %v8344_v5 = vpop.f32.mrb[44].mxu0  ;;  %8598 = vmatprep.mubr.msk.bf16.mxu1 %vm2745_vm0, %v2621_v4 }
 0x162   : > { %v1498_v6 = vpop.f32.mrb[45].mxu0  ;;  %8599 = vmatmul.mubr.msk.bf16.gmra.mrb[40].mxu1 %vm2745_vm0, %v2622_v3  ;;  %v2391_v10 = vmax.f32 %v8344_v5, 0.0  ;;  %v9275_v3 = vld [vmem:[%s9471_s12 + $0x2b8] sm:$0xff]   ;;  %v9276_v5 = vld [vmem:[%s9471_s12 + $0x2c0] sm:$0xff]  }
 0x163   : > { %v8345_v8 = vpop.f32.mrb[46].mxu0  ;;  %v2389_v13 = vmax.f32 %v1498_v6, 0.0 }
 0x164   : > { %v2392_v11 = vmax.f32 %v8345_v8, 0.0  ;;  %v1501_v12 = vpop.f32.mrb[47].mxu0 }
 0x165   : > { %v2390_v14 = vmax.f32 %v1501_v12, 0.0 }
 0x166   : > { %v2624_v15 = vpack.c.bf16 %v2392_v11, %v2391_v10  ;;  %8451 = vmatmul.mubr.bf16.gmra.mrb[152].mxu0 %v9265_v7 }
 0x167   : > { %v2623_v16 = vpack.c.bf16 %v2390_v14, %v2389_v13  ;;  %8454 = vmatprep.mubr.bf16.mxu0 %v9266_v9 }
 0x169   : > { %v8348_v17 = vpop.f32.mrb[48].mxu0  ;;  %8602 = vmatprep.mubr.msk.bf16.mxu1 %vm2745_vm0, %v2623_v16 }
 0x16a   : > { %v1514_v18 = vpop.f32.mrb[49].mxu0  ;;  %8603 = vmatmul.mubr.msk.bf16.gmra.mrb[44].mxu1 %vm2745_vm0, %v2624_v15  ;;  %v2395_v22 = vmax.f32 %v8348_v17, 0.0  ;;  %v9277_v15 = vld [vmem:[%s9471_s12 + $0x2c8] sm:$0xff]   ;;  %v9278_v17 = vld [vmem:[%s9471_s12 + $0x2d0] sm:$0xff]  }
 0x16b   : > { %v8349_v20 = vpop.f32.mrb[50].mxu0  ;;  %v2393_v25 = vmax.f32 %v1514_v18, 0.0 }
 0x16c   : > { %v2396_v23 = vmax.f32 %v8349_v20, 0.0  ;;  %v1517_v24 = vpop.f32.mrb[51].mxu0 }
 0x16d   : > { %v2394_v26 = vmax.f32 %v1517_v24, 0.0 }
 0x16e   : > { %v2626_v27 = vpack.c.bf16 %v2396_v23, %v2395_v22  ;;  %8455 = vmatmul.mubr.bf16.gmra.mrb[156].mxu0 %v9267_v19 }
 0x16f   : > { %v2625_v28 = vpack.c.bf16 %v2394_v26, %v2393_v25  ;;  %8458 = vmatprep.mubr.bf16.mxu0 %v9268_v21 }
 0x171   : > { %v8352_v29 = vpop.f32.mrb[52].mxu0  ;;  %8606 = vmatprep.mubr.msk.bf16.mxu1 %vm2745_vm0, %v2625_v28 }
 0x172   : > { %v1530_v30 = vpop.f32.mrb[53].mxu0  ;;  %8607 = vmatmul.mubr.msk.bf16.gmra.mrb[48].mxu1 %vm2745_vm0, %v2626_v27  ;;  %v2399_v34 = vmax.f32 %v8352_v29, 0.0  ;;  %v9279_v27 = vld [vmem:[%s9471_s12 + $0x2d8] sm:$0xff]   ;;  %v9280_v29 = vld [vmem:[%s9471_s12 + $0x2e0] sm:$0xff]  }
 0x173   : > { %v8353_v32 = vpop.f32.mrb[54].mxu0  ;;  %v2397_v37 = vmax.f32 %v1530_v30, 0.0 }
 0x174   : > { %v2400_v35 = vmax.f32 %v8353_v32, 0.0  ;;  %v1533_v36 = vpop.f32.mrb[55].mxu0 }
 0x175   : > { %v2398_v38 = vmax.f32 %v1533_v36, 0.0 }
 0x176   : > { %v2628_v39 = vpack.c.bf16 %v2400_v35, %v2399_v34  ;;  %8459 = vmatmul.mubr.bf16.gmra.mrb[160].mxu0 %v9269_v31 }
 0x177   : > { %v2627_v40 = vpack.c.bf16 %v2398_v38, %v2397_v37  ;;  %8462 = vmatprep.mubr.bf16.mxu0 %v9270_v33 }
 0x179   : > { %v8356_v41 = vpop.f32.mrb[56].mxu0  ;;  %8610 = vmatprep.mubr.msk.bf16.mxu1 %vm2745_vm0, %v2627_v40 }
 0x17a   : > { %v1546_v42 = vpop.f32.mrb[57].mxu0  ;;  %8611 = vmatmul.mubr.msk.bf16.gmra.mrb[52].mxu1 %vm2745_vm0, %v2628_v39  ;;  %v2403_v46 = vmax.f32 %v8356_v41, 0.0  ;;  %v9281_v39 = vld [vmem:[%s9471_s12 + $0x2e8] sm:$0xff]   ;;  %v9282_v41 = vld [vmem:[%s9471_s12 + $0x2f0] sm:$0xff]  }
 0x17b   : > { %v8357_v44 = vpop.f32.mrb[58].mxu0  ;;  %v2401_v49 = vmax.f32 %v1546_v42, 0.0 }
 0x17c   : > { %v2404_v47 = vmax.f32 %v8357_v44, 0.0  ;;  %v1549_v48 = vpop.f32.mrb[59].mxu0 }
 0x17d   : > { %v2402_v50 = vmax.f32 %v1549_v48, 0.0 }
 0x17e   : > { %v2630_v51 = vpack.c.bf16 %v2404_v47, %v2403_v46  ;;  %8463 = vmatmul.mubr.bf16.gmra.mrb[164].mxu0 %v9271_v43 }
 0x17f   : > { %v2629_v52 = vpack.c.bf16 %v2402_v50, %v2401_v49  ;;  %8466 = vmatprep.mubr.bf16.mxu0 %v9272_v45 }
 0x181   : > { %v8360_v53 = vpop.f32.mrb[60].mxu0  ;;  %8614 = vmatprep.mubr.msk.bf16.mxu1 %vm2745_vm0, %v2629_v52 }
 0x182   : > { %v1562_v54 = vpop.f32.mrb[61].mxu0  ;;  %8615 = vmatmul.mubr.msk.bf16.gmra.mrb[56].mxu1 %vm2745_vm0, %v2630_v51  ;;  %v2407_v58 = vmax.f32 %v8360_v53, 0.0  ;;  %v9283_v51 = vld [vmem:[%s9471_s12 + $0x2f8] sm:$0xff]   ;;  %v9284_v53 = vld [vmem:[%s9471_s12 + $0x300] sm:$0xff]  }
 0x183   : > { %v8361_v56 = vpop.f32.mrb[62].mxu0  ;;  %v2405_v61 = vmax.f32 %v1562_v54, 0.0 }
 0x184   : > { %v2408_v59 = vmax.f32 %v8361_v56, 0.0  ;;  %v1565_v60 = vpop.f32.mrb[63].mxu0 }
 0x185   : > { %v2406_v62 = vmax.f32 %v1565_v60, 0.0 }
 0x186   : > { %v2632_v63 = vpack.c.bf16 %v2408_v59, %v2407_v58  ;;  %8467 = vmatmul.mubr.bf16.gmra.mrb[168].mxu0 %v9273_v55 }
 0x187   : > { %v2631_v0 = vpack.c.bf16 %v2406_v62, %v2405_v61  ;;  %8470 = vmatprep.mubr.bf16.mxu0 %v9274_v57 }
 0x189   : > { %v8364_v1 = vpop.f32.mrb[64].mxu0  ;;  %8618 = vmatprep.mubr.msk.bf16.mxu1 %vm2745_vm0, %v2631_v0 }
 0x18a   : > { %v1578_v2 = vpop.f32.mrb[65].mxu0  ;;  %8619 = vmatmul.mubr.msk.bf16.gmra.mrb[60].mxu1 %vm2745_vm0, %v2632_v63  ;;  %v2411_v6 = vmax.f32 %v8364_v1, 0.0  ;;  %v9285_v63 = vld [vmem:[%s9471_s12 + $0x308] sm:$0xff]   ;;  %v9286_v1 = vld [vmem:[%s9471_s12 + $0x310] sm:$0xff]  }
 0x18b   : > { %v8365_v4 = vpop.f32.mrb[66].mxu0  ;;  %v2409_v9 = vmax.f32 %v1578_v2, 0.0 }
 0x18c   : > { %v2412_v7 = vmax.f32 %v8365_v4, 0.0  ;;  %v1581_v8 = vpop.f32.mrb[67].mxu0 }
 0x18d   : > { %v2410_v10 = vmax.f32 %v1581_v8, 0.0 }
 0x18e   : > { %v2634_v11 = vpack.c.bf16 %v2412_v7, %v2411_v6  ;;  %8471 = vmatmul.mubr.bf16.gmra.mrb[172].mxu0 %v9275_v3 }
 0x18f   : > { %v2633_v12 = vpack.c.bf16 %v2410_v10, %v2409_v9  ;;  %8474 = vmatprep.mubr.bf16.mxu0 %v9276_v5 }
 0x191   : > { %v8368_v13 = vpop.f32.mrb[68].mxu0  ;;  %8622 = vmatprep.mubr.msk.bf16.mxu1 %vm2745_vm0, %v2633_v12 }
 0x192   : > { %v1594_v14 = vpop.f32.mrb[69].mxu0  ;;  %8623 = vmatmul.mubr.msk.bf16.gmra.mrb[64].mxu1 %vm2745_vm0, %v2634_v11  ;;  %v2415_v18 = vmax.f32 %v8368_v13, 0.0  ;;  %v9287_v11 = vld [vmem:[%s9471_s12 + $0x318] sm:$0xff]   ;;  %v9288_v13 = vld [vmem:[%s9471_s12 + $0x320] sm:$0xff]  }
 0x193   : > { %v8369_v16 = vpop.f32.mrb[70].mxu0  ;;  %v2413_v21 = vmax.f32 %v1594_v14, 0.0 }
 0x194   : > { %v2416_v19 = vmax.f32 %v8369_v16, 0.0  ;;  %v1597_v20 = vpop.f32.mrb[71].mxu0 }
 0x195   : > { %v2414_v22 = vmax.f32 %v1597_v20, 0.0 }
 0x196   : > { %v2636_v23 = vpack.c.bf16 %v2416_v19, %v2415_v18  ;;  %8475 = vmatmul.mubr.bf16.gmra.mrb[176].mxu0 %v9277_v15 }
 0x197   : > { %v2635_v24 = vpack.c.bf16 %v2414_v22, %v2413_v21  ;;  %8478 = vmatprep.mubr.bf16.mxu0 %v9278_v17 }
 0x199   : > { %v8372_v25 = vpop.f32.mrb[72].mxu0  ;;  %8626 = vmatprep.mubr.msk.bf16.mxu1 %vm2745_vm0, %v2635_v24 }
 0x19a   : > { %v1610_v26 = vpop.f32.mrb[73].mxu0  ;;  %8627 = vmatmul.mubr.msk.bf16.gmra.mrb[68].mxu1 %vm2745_vm0, %v2636_v23  ;;  %v2419_v30 = vmax.f32 %v8372_v25, 0.0  ;;  %v9289_v23 = vld [vmem:[%s9471_s12 + $0x328] sm:$0xff]   ;;  %v9290_v25 = vld [vmem:[%s9471_s12 + $0x330] sm:$0xff]  }
 0x19b   : > { %v8373_v28 = vpop.f32.mrb[74].mxu0  ;;  %v2417_v33 = vmax.f32 %v1610_v26, 0.0 }
 0x19c   : > { %v2420_v31 = vmax.f32 %v8373_v28, 0.0  ;;  %v1613_v32 = vpop.f32.mrb[75].mxu0 }
 0x19d   : > { %v2418_v34 = vmax.f32 %v1613_v32, 0.0 }
 0x19e   : > { %v2638_v35 = vpack.c.bf16 %v2420_v31, %v2419_v30  ;;  %8479 = vmatmul.mubr.bf16.gmra.mrb[180].mxu0 %v9279_v27 }
 0x19f   : > { %v2637_v36 = vpack.c.bf16 %v2418_v34, %v2417_v33  ;;  %8482 = vmatprep.mubr.bf16.mxu0 %v9280_v29 }
 0x1a1   : > { %v8376_v37 = vpop.f32.mrb[76].mxu0  ;;  %8630 = vmatprep.mubr.msk.bf16.mxu1 %vm2745_vm0, %v2637_v36 }
 0x1a2   : > { %v1626_v38 = vpop.f32.mrb[77].mxu0  ;;  %8631 = vmatmul.mubr.msk.bf16.gmra.mrb[72].mxu1 %vm2745_vm0, %v2638_v35  ;;  %v2423_v42 = vmax.f32 %v8376_v37, 0.0  ;;  %v9291_v35 = vld [vmem:[%s9471_s12 + $0x338] sm:$0xff]   ;;  %v9292_v37 = vld [vmem:[%s9471_s12 + $0x340] sm:$0xff]  }
 0x1a3   : > { %v8377_v40 = vpop.f32.mrb[78].mxu0  ;;  %v2421_v45 = vmax.f32 %v1626_v38, 0.0 }
 0x1a4   : > { %v2424_v43 = vmax.f32 %v8377_v40, 0.0  ;;  %v1629_v44 = vpop.f32.mrb[79].mxu0 }
 0x1a5   : > { %v2422_v46 = vmax.f32 %v1629_v44, 0.0 }
 0x1a6   : > { %v2640_v47 = vpack.c.bf16 %v2424_v43, %v2423_v42  ;;  %8483 = vmatmul.mubr.bf16.gmra.mrb[184].mxu0 %v9281_v39 }
 0x1a7   : > { %v2639_v48 = vpack.c.bf16 %v2422_v46, %v2421_v45  ;;  %8486 = vmatprep.mubr.bf16.mxu0 %v9282_v41 }
 0x1a9   : > { %v8380_v49 = vpop.f32.mrb[80].mxu0  ;;  %8634 = vmatprep.mubr.msk.bf16.mxu1 %vm2745_vm0, %v2639_v48 }
 0x1aa   : > { %v1642_v50 = vpop.f32.mrb[81].mxu0  ;;  %8635 = vmatmul.mubr.msk.bf16.gmra.mrb[76].mxu1 %vm2745_vm0, %v2640_v47  ;;  %v2427_v54 = vmax.f32 %v8380_v49, 0.0  ;;  %v9293_v47 = vld [vmem:[%s9471_s12 + $0x348] sm:$0xff]   ;;  %v9294_v49 = vld [vmem:[%s9471_s12 + $0x350] sm:$0xff]  }
 0x1ab   : > { %v8381_v52 = vpop.f32.mrb[82].mxu0  ;;  %v2425_v57 = vmax.f32 %v1642_v50, 0.0 }
 0x1ac   : > { %v2428_v55 = vmax.f32 %v8381_v52, 0.0  ;;  %v1645_v56 = vpop.f32.mrb[83].mxu0 }
 0x1ad   : > { %v2426_v58 = vmax.f32 %v1645_v56, 0.0 }
 0x1ae   : > { %v2642_v59 = vpack.c.bf16 %v2428_v55, %v2427_v54  ;;  %8487 = vmatmul.mubr.bf16.gmra.mrb[188].mxu0 %v9283_v51 }
 0x1af   : > { %v2641_v60 = vpack.c.bf16 %v2426_v58, %v2425_v57  ;;  %8490 = vmatprep.mubr.bf16.mxu0 %v9284_v53 }
 0x1b1   : > { %v8384_v61 = vpop.f32.mrb[84].mxu0  ;;  %8638 = vmatprep.mubr.msk.bf16.mxu1 %vm2745_vm0, %v2641_v60 }
 0x1b2   : > { %v1658_v62 = vpop.f32.mrb[85].mxu0  ;;  %8639 = vmatmul.mubr.msk.bf16.gmra.mrb[80].mxu1 %vm2745_vm0, %v2642_v59  ;;  %v2431_v2 = vmax.f32 %v8384_v61, 0.0  ;;  %v9295_v59 = vld [vmem:[%s9471_s12 + $0x358] sm:$0xff]   ;;  %v9296_v61 = vld [vmem:[%s9471_s12 + $0x360] sm:$0xff]  }
 0x1b3   : > { %v8385_v0 = vpop.f32.mrb[86].mxu0  ;;  %v2429_v5 = vmax.f32 %v1658_v62, 0.0 }
 0x1b4   : > { %v2432_v3 = vmax.f32 %v8385_v0, 0.0  ;;  %v1661_v4 = vpop.f32.mrb[87].mxu0 }
 0x1b5   : > { %v2430_v6 = vmax.f32 %v1661_v4, 0.0 }
 0x1b6   : > { %v2644_v7 = vpack.c.bf16 %v2432_v3, %v2431_v2  ;;  %8491 = vmatmul.mubr.bf16.gmra.mrb[192].mxu0 %v9285_v63 }
 0x1b7   : > { %v2643_v8 = vpack.c.bf16 %v2430_v6, %v2429_v5  ;;  %8494 = vmatprep.mubr.bf16.mxu0 %v9286_v1 }
 0x1b9   : > { %v8388_v9 = vpop.f32.mrb[88].mxu0  ;;  %8642 = vmatprep.mubr.msk.bf16.mxu1 %vm2745_vm0, %v2643_v8 }
 0x1ba   : > { %v1674_v10 = vpop.f32.mrb[89].mxu0  ;;  %8643 = vmatmul.mubr.msk.bf16.gmra.mrb[84].mxu1 %vm2745_vm0, %v2644_v7  ;;  %v2435_v14 = vmax.f32 %v8388_v9, 0.0  ;;  %v9297_v7 = vld [vmem:[%s9471_s12 + $0x368] sm:$0xff]   ;;  %v9298_v9 = vld [vmem:[%s9471_s12 + $0x370] sm:$0xff]  }
 0x1bb   : > { %v8389_v12 = vpop.f32.mrb[90].mxu0  ;;  %v2433_v17 = vmax.f32 %v1674_v10, 0.0 }
 0x1bc   : > { %v2436_v15 = vmax.f32 %v8389_v12, 0.0  ;;  %v1677_v16 = vpop.f32.mrb[91].mxu0 }
 0x1bd   : > { %v2434_v18 = vmax.f32 %v1677_v16, 0.0 }
 0x1be   : > { %v2646_v19 = vpack.c.bf16 %v2436_v15, %v2435_v14  ;;  %8495 = vmatmul.mubr.bf16.gmra.mrb[196].mxu0 %v9287_v11 }
 0x1bf   : > { %v2645_v20 = vpack.c.bf16 %v2434_v18, %v2433_v17  ;;  %8498 = vmatprep.mubr.bf16.mxu0 %v9288_v13 }
 0x1c1   : > { %v8392_v21 = vpop.f32.mrb[92].mxu0  ;;  %8646 = vmatprep.mubr.msk.bf16.mxu1 %vm2745_vm0, %v2645_v20 }
 0x1c2   : > { %v1690_v22 = vpop.f32.mrb[93].mxu0  ;;  %8647 = vmatmul.mubr.msk.bf16.gmra.mrb[88].mxu1 %vm2745_vm0, %v2646_v19  ;;  %v2439_v26 = vmax.f32 %v8392_v21, 0.0 }
 0x1c3   : > { %v8393_v24 = vpop.f32.mrb[94].mxu0  ;;  %v2437_v29 = vmax.f32 %v1690_v22, 0.0 }
 0x1c4   : > { %v2440_v27 = vmax.f32 %v8393_v24, 0.0  ;;  %v1693_v28 = vpop.f32.mrb[95].mxu0 }
 0x1c5   : > { %v2438_v30 = vmax.f32 %v1693_v28, 0.0  ;;  %v9299_v28 = vld [vmem:[%s9471_s12 + $0x378] sm:$0xff]  }
 0x1c6   : > { %v2648_v31 = vpack.c.bf16 %v2440_v27, %v2439_v26  ;;  %8499 = vmatmul.mubr.bf16.gmra.mrb[200].mxu0 %v9289_v23 }
 0x1c7   : > { %v2647_v32 = vpack.c.bf16 %v2438_v30, %v2437_v29  ;;  %8502 = vmatprep.mubr.bf16.mxu0 %v9290_v25 }
 0x1c9   : > { %v8396_v33 = vpop.f32.mrb[96].mxu0  ;;  %8650 = vmatprep.mubr.msk.bf16.mxu1 %vm2745_vm0, %v2647_v32 }
 0x1ca   : > { %v1706_v34 = vpop.f32.mrb[97].mxu0  ;;  %8651 = vmatmul.mubr.msk.bf16.gmra.mrb[92].mxu1 %vm2745_vm0, %v2648_v31  ;;  %v2443_v38 = vmax.f32 %v8396_v33, 0.0  ;;  %v9300_v31 = vld [vmem:[%s9471_s12 + $0x380] sm:$0xff]  }
 0x1cb   : > { %v8397_v36 = vpop.f32.mrb[98].mxu0  ;;  %v2441_v41 = vmax.f32 %v1706_v34, 0.0 }
 0x1cc   : > { %v2444_v39 = vmax.f32 %v8397_v36, 0.0  ;;  %v1709_v40 = vpop.f32.mrb[99].mxu0 }
 0x1cd   : > { %v2442_v42 = vmax.f32 %v1709_v40, 0.0 }
 0x1ce   : > { %v2650_v43 = vpack.c.bf16 %v2444_v39, %v2443_v38  ;;  %8503 = vmatmul.mubr.bf16.gmra.mrb[204].mxu0 %v9291_v35 }
 0x1cf   : > { %v2649_v44 = vpack.c.bf16 %v2442_v42, %v2441_v41  ;;  %8506 = vmatprep.mubr.bf16.mxu0 %v9292_v37 }
 0x1d1   : > { %v8400_v45 = vpop.f32.mrb[100].mxu0  ;;  %8654 = vmatprep.mubr.msk.bf16.mxu1 %vm2745_vm0, %v2649_v44 }
 0x1d2   : > { %v1722_v46 = vpop.f32.mrb[101].mxu0  ;;  %8655 = vmatmul.mubr.msk.bf16.gmra.mrb[96].mxu1 %vm2745_vm0, %v2650_v43  ;;  %v2447_v50 = vmax.f32 %v8400_v45, 0.0 }
 0x1d3   : > { %v8401_v48 = vpop.f32.mrb[102].mxu0  ;;  %v2445_v53 = vmax.f32 %v1722_v46, 0.0 }
 0x1d4   : > { %v2448_v51 = vmax.f32 %v8401_v48, 0.0  ;;  %v1725_v52 = vpop.f32.mrb[103].mxu0 }
 0x1d5   : > { %v2446_v54 = vmax.f32 %v1725_v52, 0.0 }
 0x1d6   : > { %v2652_v55 = vpack.c.bf16 %v2448_v51, %v2447_v50  ;;  %8507 = vmatmul.mubr.bf16.gmra.mrb[208].mxu0 %v9293_v47  ;;  %v9301_v50 = vld [vmem:[%s9471_s12 + $0x388] sm:$0xff]  }
 0x1d7   : > { %v2651_v56 = vpack.c.bf16 %v2446_v54, %v2445_v53  ;;  %8510 = vmatprep.mubr.bf16.mxu0 %v9294_v49  ;;  %v9302_v53 = vld [vmem:[%s9471_s12 + $0x390] sm:$0xff]  }
 0x1d9   : > { %v8404_v57 = vpop.f32.mrb[104].mxu0  ;;  %8658 = vmatprep.mubr.msk.bf16.mxu1 %vm2745_vm0, %v2651_v56 }
 0x1da   : > { %v1738_v58 = vpop.f32.mrb[105].mxu0  ;;  %8659 = vmatmul.mubr.msk.bf16.gmra.mrb[100].mxu1 %vm2745_vm0, %v2652_v55  ;;  %v2451_v62 = vmax.f32 %v8404_v57, 0.0 }
 0x1db   : > { %v8405_v60 = vpop.f32.mrb[106].mxu0  ;;  %v2449_v1 = vmax.f32 %v1738_v58, 0.0 }
 0x1dc   : > { %v2452_v63 = vmax.f32 %v8405_v60, 0.0  ;;  %v1741_v0 = vpop.f32.mrb[107].mxu0 }
 0x1dd   : > { %v2450_v2 = vmax.f32 %v1741_v0, 0.0 }
 0x1de   : > { %v2654_v3 = vpack.c.bf16 %v2452_v63, %v2451_v62  ;;  %8511 = vmatmul.mubr.bf16.gmra.mrb[212].mxu0 %v9295_v59 }
 0x1df   : > { %v2653_v4 = vpack.c.bf16 %v2450_v2, %v2449_v1  ;;  %8514 = vmatprep.mubr.bf16.mxu0 %v9296_v61 }
 0x1e1   : > { %v8408_v5 = vpop.f32.mrb[108].mxu0  ;;  %8662 = vmatprep.mubr.msk.bf16.mxu1 %vm2745_vm0, %v2653_v4 }
 0x1e2   : > { %v1754_v6 = vpop.f32.mrb[109].mxu0  ;;  %8663 = vmatmul.mubr.msk.bf16.gmra.mrb[104].mxu1 %vm2745_vm0, %v2654_v3  ;;  %v2455_v10 = vmax.f32 %v8408_v5, 0.0 }
 0x1e3   : > { %v8409_v8 = vpop.f32.mrb[110].mxu0  ;;  %v2453_v13 = vmax.f32 %v1754_v6, 0.0 }
 0x1e4   : > { %v2456_v11 = vmax.f32 %v8409_v8, 0.0  ;;  %v1757_v12 = vpop.f32.mrb[111].mxu0  ;;  %v9303_v8 = vld [vmem:[%s9471_s12 + $0x398] sm:$0xff]  }
 0x1e5   : > { %v2454_v14 = vmax.f32 %v1757_v12, 0.0  ;;  %v8560_v15 = vpop.f32.mrb[0].mxu1 }
 0x1e6   : > { %v2656_v16 = vpack.c.bf16 %v2456_v11, %v2455_v10  ;;  %8515 = vmatmul.mubr.bf16.gmra.mrb[216].mxu0 %v9297_v7  ;;  %v3164_v17 = vpop.f32.mrb[1].mxu1  ;;  %v4189_v20 = vmax.f32 %v8560_v15, 0.0  ;;  %v9304_v11 = vld [vmem:[%s9471_s12 + $0x3a0] sm:$0xff]  }
 0x1e7   : > { %v2655_v18 = vpack.c.bf16 %v2454_v14, %v2453_v13  ;;  %v8561_v19 = vpop.f32.mrb[2].mxu1  ;;  %8518 = vmatprep.mubr.bf16.mxu0 %v9298_v9  ;;  %v4187_v23 = vmax.f32 %v3164_v17, 0.0 }
 0x1e8   : > { %v4190_v21 = vmax.f32 %v8561_v19, 0.0  ;;  %v3167_v22 = vpop.f32.mrb[3].mxu1 }
 0x1e9   : > { %v4188_v24 = vmax.f32 %v3167_v22, 0.0  ;;  %v8412_v25 = vpop.f32.mrb[112].mxu0  ;;  %8666 = vmatprep.mubr.msk.bf16.mxu1 %vm2745_vm0, %v2655_v18 }
 0x1ea   : > { %v9660_v26 = vpack.c.bf16 %v4190_v21, %v4189_v20  ;;  %v1770_v27 = vpop.f32.mrb[113].mxu0  ;;  %8667 = vmatmul.mubr.msk.bf16.gmra.mrb[108].mxu1 %vm2745_vm0, %v2656_v16  ;;  %v2459_v32 = vmax.f32 %v8412_v25, 0.0 }
 0x1eb   : > { %v9664_v29 = vpack.c.bf16 %v4188_v24, %v4187_v23  ;;  %v8413_v30 = vpop.f32.mrb[114].mxu0  ;;  %v2457_v35 = vmax.f32 %v1770_v27, 0.0 }
 0x1ec   : > { %v2460_v33 = vmax.f32 %v8413_v30, 0.0  ;;  %v1773_v34 = vpop.f32.mrb[115].mxu0 }
 0x1ed   : > { %v2458_v36 = vmax.f32 %v1773_v34, 0.0  ;;  %v8564_v37 = vpop.f32.mrb[4].mxu1 }
 0x1ee   : > { %v2658_v38 = vpack.c.bf16 %v2460_v33, %v2459_v32  ;;  %8519 = vmatmul.mubr.bf16.gmra.mrb[220].mxu0 %v9299_v28  ;;  %v3180_v39 = vpop.f32.mrb[5].mxu1  ;;  %v4193_v42 = vmax.f32 %v8564_v37, 0.0  ;;  %v9305_v32 = vld [vmem:[%s9471_s12 + $0x3a8] sm:$0xff]  }
 0x1ef   : > { %v2657_v40 = vpack.c.bf16 %v2458_v36, %v2457_v35  ;;  %v8565_v41 = vpop.f32.mrb[6].mxu1  ;;  %8522 = vmatprep.mubr.bf16.mxu0 %v9300_v31  ;;  %v4191_v45 = vmax.f32 %v3180_v39, 0.0  ;;  %v9306_v35 = vld [vmem:[%s9471_s12 + $0x3b0] sm:$0xff]  }
 0x1f0   : > { %v4194_v43 = vmax.f32 %v8565_v41, 0.0  ;;  %v3183_v44 = vpop.f32.mrb[7].mxu1 }
 0x1f1   : > { %v4192_v46 = vmax.f32 %v3183_v44, 0.0  ;;  %v8416_v47 = vpop.f32.mrb[116].mxu0  ;;  %8670 = vmatprep.mubr.msk.bf16.mxu1 %vm2745_vm0, %v2657_v40 }
 0x1f2   : > { %v9668_v48 = vpack.c.bf16 %v4194_v43, %v4193_v42  ;;  %v1786_v49 = vpop.f32.mrb[117].mxu0  ;;  %8671 = vmatmul.mubr.msk.bf16.gmra.mrb[112].mxu1 %vm2745_vm0, %v2658_v38  ;;  %v2463_v54 = vmax.f32 %v8416_v47, 0.0 }
 0x1f3   : > { %v9672_v51 = vpack.c.bf16 %v4192_v46, %v4191_v45  ;;  %v8417_v52 = vpop.f32.mrb[118].mxu0  ;;  %v2461_v57 = vmax.f32 %v1786_v49, 0.0 }
 0x1f4   : > { %v2464_v55 = vmax.f32 %v8417_v52, 0.0  ;;  %v1789_v56 = vpop.f32.mrb[119].mxu0 }
 0x1f5   : > { %v2462_v58 = vmax.f32 %v1789_v56, 0.0  ;;  %v8568_v59 = vpop.f32.mrb[8].mxu1  ;;  %v9307_v56 = vld [vmem:[%s9471_s12 + $0x3b8] sm:$0xff]  }
 0x1f6   : > { %v2660_v60 = vpack.c.bf16 %v2464_v55, %v2463_v54  ;;  %8523 = vmatmul.mubr.bf16.gmra.mrb[224].mxu0 %v9301_v50  ;;  %v3196_v61 = vpop.f32.mrb[9].mxu1  ;;  %v4197_v0 = vmax.f32 %v8568_v59, 0.0  ;;  %v9308_v59 = vld [vmem:[%s9471_s12 + $0x3c0] sm:$0xff]  }
 0x1f7   : > { %v2659_v62 = vpack.c.bf16 %v2462_v58, %v2461_v57  ;;  %v8569_v63 = vpop.f32.mrb[10].mxu1  ;;  %8526 = vmatprep.mubr.bf16.mxu0 %v9302_v53  ;;  %v4195_v3 = vmax.f32 %v3196_v61, 0.0 }
 0x1f8   : > { %v4198_v1 = vmax.f32 %v8569_v63, 0.0  ;;  %v3199_v2 = vpop.f32.mrb[11].mxu1 }
 0x1f9   : > { %v4196_v4 = vmax.f32 %v3199_v2, 0.0  ;;  %v8420_v5 = vpop.f32.mrb[120].mxu0  ;;  %8674 = vmatprep.mubr.msk.bf16.mxu1 %vm2745_vm0, %v2659_v62 }
 0x1fa   : > { %v9676_v6 = vpack.c.bf16 %v4198_v1, %v4197_v0  ;;  %v1802_v7 = vpop.f32.mrb[121].mxu0  ;;  %8675 = vmatmul.mubr.msk.bf16.gmra.mrb[116].mxu1 %vm2745_vm0, %v2660_v60  ;;  %v2467_v12 = vmax.f32 %v8420_v5, 0.0 }
 0x1fb   : > { %v9680_v9 = vpack.c.bf16 %v4196_v4, %v4195_v3  ;;  %v8421_v10 = vpop.f32.mrb[122].mxu0  ;;  %v2465_v15 = vmax.f32 %v1802_v7, 0.0 }
 0x1fc   : > { %v2468_v13 = vmax.f32 %v8421_v10, 0.0  ;;  %v1805_v14 = vpop.f32.mrb[123].mxu0 }
 0x1fd   : > { %v2466_v16 = vmax.f32 %v1805_v14, 0.0  ;;  %v8572_v17 = vpop.f32.mrb[12].mxu1 }
 0x1fe   : > { %v2662_v18 = vpack.c.bf16 %v2468_v13, %v2467_v12  ;;  %8527 = vmatmul.mubr.bf16.gmra.mrb[228].mxu0 %v9303_v8  ;;  %v3212_v19 = vpop.f32.mrb[13].mxu1  ;;  %v4201_v22 = vmax.f32 %v8572_v17, 0.0 }
 0x1ff   : > { %v2661_v20 = vpack.c.bf16 %v2466_v16, %v2465_v15  ;;  %v8573_v21 = vpop.f32.mrb[14].mxu1  ;;  %8530 = vmatprep.mubr.bf16.mxu0 %v9304_v11  ;;  %v4199_v25 = vmax.f32 %v3212_v19, 0.0  ;;  %v9309_v16 = vld [vmem:[%s9471_s12 + $0x3c8] sm:$0xff]   ;;  %v9310_v19 = vld [vmem:[%s9471_s12 + $0x3d0] sm:$0xff]  }
 0x200   : > { %v4202_v23 = vmax.f32 %v8573_v21, 0.0  ;;  %v3215_v24 = vpop.f32.mrb[15].mxu1 }
 0x201   : > { %v4200_v27 = vmax.f32 %v3215_v24, 0.0  ;;  %v8424_v28 = vpop.f32.mrb[124].mxu0  ;;  %8678 = vmatprep.mubr.msk.bf16.mxu1 %vm2745_vm0, %v2661_v20 }
 0x202   : > { %v9684_v30 = vpack.c.bf16 %v4202_v23, %v4201_v22  ;;  %v1818_v31 = vpop.f32.mrb[125].mxu0  ;;  %8679 = vmatmul.mubr.msk.bf16.gmra.mrb[120].mxu1 %vm2745_vm0, %v2662_v18  ;;  %v2471_v36 = vmax.f32 %v8424_v28, 0.0 }
 0x203   : > { %v9688_v33 = vpack.c.bf16 %v4200_v27, %v4199_v25  ;;  %v8425_v34 = vpop.f32.mrb[126].mxu0  ;;  %v2469_v39 = vmax.f32 %v1818_v31, 0.0 }
 0x204   : > { %v2472_v37 = vmax.f32 %v8425_v34, 0.0  ;;  %v1821_v38 = vpop.f32.mrb[127].mxu0 }
 0x205   : > { %v2470_v40 = vmax.f32 %v1821_v38, 0.0  ;;  %v8576_v41 = vpop.f32.mrb[16].mxu1 }
 0x206   : > { %v2664_v42 = vpack.c.bf16 %v2472_v37, %v2471_v36  ;;  %8531 = vmatmul.mubr.bf16.gmra.mrb[232].mxu0 %v9305_v32  ;;  %v3228_v43 = vpop.f32.mrb[17].mxu1  ;;  %v4205_v46 = vmax.f32 %v8576_v41, 0.0 }
 0x207   : > { %v2663_v44 = vpack.c.bf16 %v2470_v40, %v2469_v39  ;;  %v8577_v45 = vpop.f32.mrb[18].mxu1  ;;  %8534 = vmatprep.mubr.bf16.mxu0 %v9306_v35  ;;  %v4203_v50 = vmax.f32 %v3228_v43, 0.0 }
 0x208   : > { %v4206_v47 = vmax.f32 %v8577_v45, 0.0  ;;  %v3231_v49 = vpop.f32.mrb[19].mxu1  ;;  %v9312_v45 = vld [vmem:[%s9471_s12 + $0x3e0] sm:$0xff]  }
 0x209   : > { %v4204_v52 = vmax.f32 %v3231_v49, 0.0  ;;  %v8428_v53 = vpop.f32.mrb[128].mxu0  ;;  %8682 = vmatprep.mubr.msk.bf16.mxu1 %vm2745_vm0, %v2663_v44 }
 0x20a   : > { %v9692_v54 = vpack.c.bf16 %v4206_v47, %v4205_v46  ;;  %v1834_v55 = vpop.f32.mrb[129].mxu0  ;;  %8683 = vmatmul.mubr.msk.bf16.gmra.mrb[124].mxu1 %vm2745_vm0, %v2664_v42  ;;  %v2475_v60 = vmax.f32 %v8428_v53, 0.0  ;;  %v9311_v42 = vld [vmem:[%s9471_s12 + $0x3d8] sm:$0xff]  }
 0x20b   : > { %v9696_v57 = vpack.c.bf16 %v4204_v52, %v4203_v50  ;;  %v8429_v58 = vpop.f32.mrb[130].mxu0  ;;  %v2473_v63 = vmax.f32 %v1834_v55, 0.0 }
 0x20c   : > { %v2476_v61 = vmax.f32 %v8429_v58, 0.0  ;;  %v1837_v62 = vpop.f32.mrb[131].mxu0 }
 0x20d   : > { %v2474_v0 = vmax.f32 %v1837_v62, 0.0  ;;  %v8580_v1 = vpop.f32.mrb[20].mxu1 }
 0x20e   : > { %v2666_v2 = vpack.c.bf16 %v2476_v61, %v2475_v60  ;;  %8535 = vmatmul.mubr.bf16.gmra.mrb[236].mxu0 %v9307_v56  ;;  %v3244_v3 = vpop.f32.mrb[21].mxu1  ;;  %v4209_v7 = vmax.f32 %v8580_v1, 0.0 }
 0x20f   : > { %v2665_v4 = vpack.c.bf16 %v2474_v0, %v2473_v63  ;;  %v8581_v5 = vpop.f32.mrb[22].mxu1  ;;  %8538 = vmatprep.mubr.bf16.mxu0 %v9308_v59  ;;  %v4207_v11 = vmax.f32 %v3244_v3, 0.0 }
 0x210   : > { %v4210_v8 = vmax.f32 %v8581_v5, 0.0  ;;  %v3247_v10 = vpop.f32.mrb[23].mxu1 }
 0x211   : > { %v4208_v12 = vmax.f32 %v3247_v10, 0.0  ;;  %v8432_v13 = vpop.f32.mrb[132].mxu0  ;;  %8686 = vmatprep.mubr.msk.bf16.mxu1 %vm2745_vm0, %v2665_v4  ;;  %v9313_v4 = vld [vmem:[%s9471_s12 + $0x3e8] sm:$0xff]  }
 0x212   : > { %v9700_v14 = vpack.c.bf16 %v4210_v8, %v4209_v7  ;;  %v1850_v15 = vpop.f32.mrb[133].mxu0  ;;  %8687 = vmatmul.mubr.msk.bf16.gmra.mrb[128].mxu1 %vm2745_vm0, %v2666_v2  ;;  %v2479_v20 = vmax.f32 %v8432_v13, 0.0  ;;  %v9314_v8 = vld [vmem:[%s9471_s12 + $0x3f0] sm:$0xff]  }
 0x213   : > { %v9704_v17 = vpack.c.bf16 %v4208_v12, %v4207_v11  ;;  %v8433_v18 = vpop.f32.mrb[134].mxu0  ;;  %v2477_v23 = vmax.f32 %v1850_v15, 0.0 }
 0x214   : > { %v2480_v21 = vmax.f32 %v8433_v18, 0.0  ;;  %v1853_v22 = vpop.f32.mrb[135].mxu0 }
 0x215   : > { %v2478_v24 = vmax.f32 %v1853_v22, 0.0  ;;  %v8584_v25 = vpop.f32.mrb[24].mxu1 }
 0x216   : > { %v2668_v27 = vpack.c.bf16 %v2480_v21, %v2479_v20  ;;  %8539 = vmatmul.mubr.bf16.gmra.mrb[240].mxu0 %v9309_v16  ;;  %v3260_v28 = vpop.f32.mrb[25].mxu1  ;;  %v4213_v34 = vmax.f32 %v8584_v25, 0.0 }
 0x217   : > { %v2667_v31 = vpack.c.bf16 %v2478_v24, %v2477_v23  ;;  %v8585_v32 = vpop.f32.mrb[26].mxu1  ;;  %8542 = vmatprep.mubr.bf16.mxu0 %v9310_v19  ;;  %v4211_v37 = vmax.f32 %v3260_v28, 0.0 }
 0x218   : > { %v4214_v35 = vmax.f32 %v8585_v32, 0.0  ;;  %v3263_v36 = vpop.f32.mrb[27].mxu1 }
 0x219   : > { %v4212_v38 = vmax.f32 %v3263_v36, 0.0  ;;  %v8436_v39 = vpop.f32.mrb[136].mxu0  ;;  %8690 = vmatprep.mubr.msk.bf16.mxu1 %vm2745_vm0, %v2667_v31 }
 0x21a   : > { %v9708_v40 = vpack.c.bf16 %v4214_v35, %v4213_v34  ;;  %v1866_v41 = vpop.f32.mrb[137].mxu0  ;;  %8691 = vmatmul.mubr.msk.bf16.gmra.mrb[132].mxu1 %vm2745_vm0, %v2668_v27  ;;  %v2483_v46 = vmax.f32 %v8436_v39, 0.0  ;;  %v9315_v34 = vld [vmem:[%s9471_s12 + $0x3f8] sm:$0xff]   ;;  %s9325_s12 = scalar_lea.vmem %s9324_s11, 512 }
 0x21b   : > { %v9712_v43 = vpack.c.bf16 %v4212_v38, %v4211_v37  ;;  %v8437_v44 = vpop.f32.mrb[138].mxu0  ;;  %v2481_v50 = vmax.f32 %v1866_v41, 0.0  ;;  %p9327_p1 = scmp.lt.s32.totalorder %s9325_s12, %s9319_s9 }
 0x21c   : > { %v2484_v47 = vmax.f32 %v8437_v44, 0.0  ;;  %v1869_v49 = vpop.f32.mrb[139].mxu0 }
 0x21d   : > { %v2482_v52 = vmax.f32 %v1869_v49, 0.0  ;;  %v8588_v53 = vpop.f32.mrb[28].mxu1  ;;  %p9328_p2 = por %p9327_p1, %p9326_p0 }
 0x21e   : > { %v2670_v55 = vpack.c.bf16 %v2484_v47, %v2483_v46  ;;  %8543 = vmatmul.mubr.bf16.gmra.mrb[244].mxu0 %v9311_v42  ;;  %v3276_v56 = vpop.f32.mrb[29].mxu1  ;;  %v4217_v60 = vmax.f32 %v8588_v53, 0.0 }
 0x21f   : > { %v2669_v58 = vpack.c.bf16 %v2482_v52, %v2481_v50  ;;  %v8589_v59 = vpop.f32.mrb[30].mxu1  ;;  %8546 = vmatprep.mubr.bf16.mxu0 %v9312_v45  ;;  %v4215_v63 = vmax.f32 %v3276_v56, 0.0  ;;  %p9329_p3 = pnand %p9328_p2, %p9322_p13 }
 0x220   : > { %v4218_v61 = vmax.f32 %v8589_v59, 0.0  ;;  %v3279_v62 = vpop.f32.mrb[31].mxu1 }
 0x221   : > { %v4216_v0 = vmax.f32 %v3279_v62, 0.0  ;;  %v8440_v1 = vpop.f32.mrb[140].mxu0  ;;  %8694 = vmatprep.mubr.msk.bf16.mxu1 %vm2745_vm0, %v2669_v58 }
 0x222   : > { %v9716_v2 = vpack.c.bf16 %v4218_v61, %v4217_v60  ;;  %v1882_v3 = vpop.f32.mrb[141].mxu0  ;;  %8695 = vmatmul.mubr.msk.bf16.gmra.mrb[136].mxu1 %vm2745_vm0, %v2670_v55  ;;  %v2487_v10 = vmax.f32 %v8440_v1, 0.0 }
 0x223   : > { %v9720_v5 = vpack.c.bf16 %v4216_v0, %v4215_v63  ;;  %v8441_v7 = vpop.f32.mrb[142].mxu0  ;;  %v2485_v13 = vmax.f32 %v1882_v3, 0.0 }
 0x224   : > { %v2488_v11 = vmax.f32 %v8441_v7, 0.0  ;;  %v1885_v12 = vpop.f32.mrb[143].mxu0 }
 0x225   : > { %v2486_v15 = vmax.f32 %v1885_v12, 0.0  ;;  %v8592_v16 = vpop.f32.mrb[32].mxu1 }
 0x226   : > { %v2672_v18 = vpack.c.bf16 %v2488_v11, %v2487_v10  ;;  %8547 = vmatmul.mubr.bf16.gmra.mrb[248].mxu0 %v9313_v4  ;;  %v3292_v19 = vpop.f32.mrb[33].mxu1  ;;  %v4221_v22 = vmax.f32 %v8592_v16, 0.0 }
 0x227   : > { %v2671_v20 = vpack.c.bf16 %v2486_v15, %v2485_v13  ;;  %v8593_v21 = vpop.f32.mrb[34].mxu1  ;;  %8550 = vmatprep.mubr.bf16.mxu0 %v9314_v8  ;;  %v4219_v25 = vmax.f32 %v3292_v19, 0.0 }
 0x228   : > { %v4222_v23 = vmax.f32 %v8593_v21, 0.0  ;;  %v3295_v24 = vpop.f32.mrb[35].mxu1 }
 0x229   : > { %v4220_v27 = vmax.f32 %v3295_v24, 0.0  ;;  %v8444_v28 = vpop.f32.mrb[144].mxu0  ;;  %8698 = vmatprep.mubr.msk.bf16.mxu1 %vm2745_vm0, %v2671_v20 }
 0x22a   : > { %v9724_v31 = vpack.c.bf16 %v4222_v23, %v4221_v22  ;;  %v1898_v32 = vpop.f32.mrb[145].mxu0  ;;  %8699 = vmatmul.mubr.msk.bf16.gmra.mrb[140].mxu1 %vm2745_vm0, %v2672_v18  ;;  %v2491_v37 = vmax.f32 %v8444_v28, 0.0 }
 0x22b   : > { %v9728_v35 = vpack.c.bf16 %v4220_v27, %v4219_v25  ;;  %v8445_v36 = vpop.f32.mrb[146].mxu0  ;;  %v2489_v41 = vmax.f32 %v1898_v32, 0.0 }
 0x22c   : > { %v2492_v38 = vmax.f32 %v8445_v36, 0.0  ;;  %v1901_v39 = vpop.f32.mrb[147].mxu0 }
 0x22d   : > { %v2490_v42 = vmax.f32 %v1901_v39, 0.0  ;;  %v8596_v44 = vpop.f32.mrb[36].mxu1 }
 0x22e   : > { %v2674_v45 = vpack.c.bf16 %v2492_v38, %v2491_v37  ;;  %8551 = vmatmul.mubr.bf16.gmra.mrb[252].mxu0 %v9315_v34  ;;  %v3308_v46 = vpop.f32.mrb[37].mxu1  ;;  %v4225_v50 = vmax.f32 %v8596_v44, 0.0 }
 0x22f   : > { %v2673_v47 = vpack.c.bf16 %v2490_v42, %v2489_v41  ;;  %v8597_v49 = vpop.f32.mrb[38].mxu1  ;;  %v4223_v55 = vmax.f32 %v3308_v46, 0.0 }
 0x230   : > { %v4226_v52 = vmax.f32 %v8597_v49, 0.0  ;;  %v3311_v53 = vpop.f32.mrb[39].mxu1 }
 0x231   : > { %v4224_v56 = vmax.f32 %v3311_v53, 0.0  ;;  %v8448_v58 = vpop.f32.mrb[148].mxu0  ;;  %8702 = vmatprep.mubr.msk.bf16.mxu1 %vm2745_vm0, %v2673_v47 }
 0x232   : > { %v9731_v59 = vpack.c.bf16 %v4226_v52, %v4225_v50  ;;  %v1914_v60 = vpop.f32.mrb[149].mxu0  ;;  %8703 = vmatmul.mubr.msk.bf16.gmra.mrb[144].mxu1 %vm2745_vm0, %v2674_v45  ;;  %v2495_v63 = vmax.f32 %v8448_v58, 0.0 }
 0x233   : > { %v9734_v61 = vpack.c.bf16 %v4224_v56, %v4223_v55  ;;  %v8449_v62 = vpop.f32.mrb[150].mxu0  ;;  %v2493_v3 = vmax.f32 %v1914_v60, 0.0 }
 0x234   : > { %v2496_v0 = vmax.f32 %v8449_v62, 0.0  ;;  %v1917_v1 = vpop.f32.mrb[151].mxu0 }
 0x235   : > { %v2494_v4 = vmax.f32 %v1917_v1, 0.0  ;;  %v8600_v7 = vpop.f32.mrb[40].mxu1 }
 0x236   : > { %v2676_v8 = vpack.c.bf16 %v2496_v0, %v2495_v63  ;;  %v3324_v10 = vpop.f32.mrb[41].mxu1  ;;  %v4229_v13 = vmax.f32 %v8600_v7, 0.0 }
 0x237   : > { %v2675_v11 = vpack.c.bf16 %v2494_v4, %v2493_v3  ;;  %v8601_v12 = vpop.f32.mrb[42].mxu1  ;;  %v4227_v18 = vmax.f32 %v3324_v10, 0.0 }
 0x238   : > { %v4230_v15 = vmax.f32 %v8601_v12, 0.0  ;;  %v3327_v16 = vpop.f32.mrb[43].mxu1 }
 0x239   : > { %v4228_v19 = vmax.f32 %v3327_v16, 0.0  ;;  %v8452_v20 = vpop.f32.mrb[152].mxu0  ;;  %8706 = vmatprep.mubr.msk.bf16.mxu1 %vm2745_vm0, %v2675_v11 }
 0x23a   : > { %v9737_v21 = vpack.c.bf16 %v4230_v15, %v4229_v13  ;;  %v1930_v22 = vpop.f32.mrb[153].mxu0  ;;  %8707 = vmatmul.mubr.msk.bf16.gmra.mrb[148].mxu1 %vm2745_vm0, %v2676_v8  ;;  %v2499_v25 = vmax.f32 %v8452_v20, 0.0 }
 0x23b   : > { %v9740_v23 = vpack.c.bf16 %v4228_v19, %v4227_v18  ;;  %v8453_v24 = vpop.f32.mrb[154].mxu0  ;;  %v2497_v32 = vmax.f32 %v1930_v22, 0.0 }
 0x23c   : > { %v2500_v27 = vmax.f32 %v8453_v24, 0.0  ;;  %v1933_v28 = vpop.f32.mrb[155].mxu0 }
 0x23d   : > { %v2498_v34 = vmax.f32 %v1933_v28, 0.0  ;;  %v8604_v36 = vpop.f32.mrb[44].mxu1 }
 0x23e   : > { %v2678_v37 = vpack.c.bf16 %v2500_v27, %v2499_v25  ;;  %v3340_v38 = vpop.f32.mrb[45].mxu1  ;;  %v4233_v42 = vmax.f32 %v8604_v36, 0.0 }
 0x23f   : > { %v2677_v39 = vpack.c.bf16 %v2498_v34, %v2497_v32  ;;  %v8605_v41 = vpop.f32.mrb[46].mxu1  ;;  %v4231_v46 = vmax.f32 %v3340_v38, 0.0 }
 0x240   : > { %v4234_v44 = vmax.f32 %v8605_v41, 0.0  ;;  %v3343_v45 = vpop.f32.mrb[47].mxu1 }
 0x241   : > { %v4232_v47 = vmax.f32 %v3343_v45, 0.0  ;;  %v8456_v49 = vpop.f32.mrb[156].mxu0  ;;  %8710 = vmatprep.mubr.msk.bf16.mxu1 %vm2745_vm0, %v2677_v39 }
 0x242   : > { %v9743_v50 = vpack.c.bf16 %v4234_v44, %v4233_v42  ;;  %v1946_v52 = vpop.f32.mrb[157].mxu0  ;;  %8711 = vmatmul.mubr.msk.bf16.gmra.mrb[152].mxu1 %vm2745_vm0, %v2678_v37  ;;  %v2503_v56 = vmax.f32 %v8456_v49, 0.0 }
 0x243   : > { %v9746_v53 = vpack.c.bf16 %v4232_v47, %v4231_v46  ;;  %v8457_v55 = vpop.f32.mrb[158].mxu0  ;;  %v2501_v62 = vmax.f32 %v1946_v52, 0.0 }
 0x244   : > { %v2504_v58 = vmax.f32 %v8457_v55, 0.0  ;;  %v1949_v60 = vpop.f32.mrb[159].mxu0 }
 0x245   : > { %v2502_v63 = vmax.f32 %v1949_v60, 0.0  ;;  %v8608_v0 = vpop.f32.mrb[48].mxu1 }
 0x246   : > { %v2680_v1 = vpack.c.bf16 %v2504_v58, %v2503_v56  ;;  %v3356_v3 = vpop.f32.mrb[49].mxu1  ;;  %v4237_v8 = vmax.f32 %v8608_v0, 0.0  ;;  %v9316_v56 = vld [vmem:[%s10717_s2 + $0x10] sm:$0xff]  }
 0x247   : > { %v2679_v4 = vpack.c.bf16 %v2502_v63, %v2501_v62  ;;  %v8609_v7 = vpop.f32.mrb[50].mxu1  ;;  %v4235_v12 = vmax.f32 %v3356_v3, 0.0  ;;  %8814 = vmatprep.subr.bf16.mxu1 %v9316_v56 }
 0x248   : > { %v4238_v10 = vmax.f32 %v8609_v7, 0.0  ;;  %v3359_v11 = vpop.f32.mrb[51].mxu1  ;;  %8815 = vmatpush3.bf16.msra.mxu1 %v9316_v56 }
 0x249   : > { %v4236_v13 = vmax.f32 %v3359_v11, 0.0  ;;  %v8460_v15 = vpop.f32.mrb[160].mxu0  ;;  %8714 = vmatprep.mubr.msk.bf16.mxu1 %vm2745_vm0, %v2679_v4 }
 0x24a   : > { %v9749_v16 = vpack.c.bf16 %v4238_v10, %v4237_v8  ;;  %v1962_v18 = vpop.f32.mrb[161].mxu0  ;;  %8715 = vmatmul.mubr.msk.bf16.gmra.mrb[156].mxu1 %vm2745_vm0, %v2680_v1  ;;  %v2507_v22 = vmax.f32 %v8460_v15, 0.0 }
 0x24b   : > { %v9752_v19 = vpack.c.bf16 %v4236_v13, %v4235_v12  ;;  %v8461_v20 = vpop.f32.mrb[162].mxu0  ;;  %v2505_v27 = vmax.f32 %v1962_v18, 0.0 }
 0x24c   : > { %v2508_v24 = vmax.f32 %v8461_v20, 0.0  ;;  %v1965_v25 = vpop.f32.mrb[163].mxu0 }
 0x24d   : > { %v2506_v28 = vmax.f32 %v1965_v25, 0.0  ;;  %v8612_v32 = vpop.f32.mrb[52].mxu1 }
 0x24e   : > { %v2682_v34 = vpack.c.bf16 %v2508_v24, %v2507_v22  ;;  %v3372_v36 = vpop.f32.mrb[53].mxu1  ;;  %v4241_v39 = vmax.f32 %v8612_v32, 0.0 }
 0x24f   : > { %v2681_v37 = vpack.c.bf16 %v2506_v28, %v2505_v27  ;;  %v8613_v38 = vpop.f32.mrb[54].mxu1  ;;  %v4239_v44 = vmax.f32 %v3372_v36, 0.0 }
 0x250   : > { %v4242_v41 = vmax.f32 %v8613_v38, 0.0  ;;  %v3375_v42 = vpop.f32.mrb[55].mxu1 }
 0x251   : > { %v4240_v45 = vmax.f32 %v3375_v42, 0.0  ;;  %v8464_v46 = vpop.f32.mrb[164].mxu0  ;;  %8718 = vmatprep.mubr.msk.bf16.mxu1 %vm2745_vm0, %v2681_v37 }
 0x252   : > { %v9755_v47 = vpack.c.bf16 %v4242_v41, %v4241_v39  ;;  %v1978_v49 = vpop.f32.mrb[165].mxu0  ;;  %8719 = vmatmul.mubr.msk.bf16.gmra.mrb[160].mxu1 %vm2745_vm0, %v2682_v34  ;;  %v2511_v58 = vmax.f32 %v8464_v46, 0.0 }
 0x253   : > { %v9758_v52 = vpack.c.bf16 %v4240_v45, %v4239_v44  ;;  %v8465_v55 = vpop.f32.mrb[166].mxu0  ;;  %v2509_v63 = vmax.f32 %v1978_v49, 0.0 }
 0x254   : > { %v2512_v60 = vmax.f32 %v8465_v55, 0.0  ;;  %v1981_v62 = vpop.f32.mrb[167].mxu0 }
 0x255   : > { %v2510_v0 = vmax.f32 %v1981_v62, 0.0  ;;  %v8616_v1 = vpop.f32.mrb[56].mxu1 }
 0x256   : > { %v2684_v3 = vpack.c.bf16 %v2512_v60, %v2511_v58  ;;  %v3388_v4 = vpop.f32.mrb[57].mxu1  ;;  %v4245_v10 = vmax.f32 %v8616_v1, 0.0 }
 0x257   : > { %v2683_v7 = vpack.c.bf16 %v2510_v0, %v2509_v63  ;;  %v8617_v8 = vpop.f32.mrb[58].mxu1  ;;  %v4243_v13 = vmax.f32 %v3388_v4, 0.0 }
 0x258   : > { %v4246_v11 = vmax.f32 %v8617_v8, 0.0  ;;  %v3391_v12 = vpop.f32.mrb[59].mxu1 }
 0x259   : > { %v4244_v15 = vmax.f32 %v3391_v12, 0.0  ;;  %v8468_v18 = vpop.f32.mrb[168].mxu0  ;;  %8722 = vmatprep.mubr.msk.bf16.mxu1 %vm2745_vm0, %v2683_v7 }
 0x25a   : > { %v9764_v20 = vpack.c.bf16 %v4246_v11, %v4245_v10  ;;  %v1994_v22 = vpop.f32.mrb[169].mxu0  ;;  %8723 = vmatmul.mubr.msk.bf16.gmra.mrb[164].mxu1 %vm2745_vm0, %v2684_v3  ;;  %v2515_v27 = vmax.f32 %v8468_v18, 0.0 }
 0x25b   : > { %v9767_v24 = vpack.c.bf16 %v4244_v15, %v4243_v13  ;;  %v8469_v25 = vpop.f32.mrb[170].mxu0  ;;  %v2513_v34 = vmax.f32 %v1994_v22, 0.0 }
 0x25c   : > { %v2516_v28 = vmax.f32 %v8469_v25, 0.0  ;;  %v1997_v32 = vpop.f32.mrb[171].mxu0 }
 0x25d   : > { %v2514_v36 = vmax.f32 %v1997_v32, 0.0  ;;  %v8620_v37 = vpop.f32.mrb[60].mxu1 }
 0x25e   : > { %v2686_v38 = vpack.c.bf16 %v2516_v28, %v2515_v27  ;;  %v3404_v39 = vpop.f32.mrb[61].mxu1  ;;  %v4249_v44 = vmax.f32 %v8620_v37, 0.0 }
 0x25f   : > { %v2685_v41 = vpack.c.bf16 %v2514_v36, %v2513_v34  ;;  %v8621_v42 = vpop.f32.mrb[62].mxu1  ;;  %v4247_v49 = vmax.f32 %v3404_v39, 0.0 }
 0x260   : > { %v4250_v45 = vmax.f32 %v8621_v42, 0.0  ;;  %v3407_v46 = vpop.f32.mrb[63].mxu1 }
 0x261   : > { %v4248_v55 = vmax.f32 %v3407_v46, 0.0  ;;  %v8472_v56 = vpop.f32.mrb[172].mxu0  ;;  %8726 = vmatprep.mubr.msk.bf16.mxu1 %vm2745_vm0, %v2685_v41 }
 0x262   : > { %v9770_v58 = vpack.c.bf16 %v4250_v45, %v4249_v44  ;;  %v2010_v60 = vpop.f32.mrb[173].mxu0  ;;  %8727 = vmatmul.mubr.msk.bf16.gmra.mrb[168].mxu1 %vm2745_vm0, %v2686_v38  ;;  %v2519_v0 = vmax.f32 %v8472_v56, 0.0 }
 0x263   : > { %v9773_v62 = vpack.c.bf16 %v4248_v55, %v4247_v49  ;;  %v8473_v63 = vpop.f32.mrb[174].mxu0  ;;  %v2517_v4 = vmax.f32 %v2010_v60, 0.0 }
 0x264   : > { %v2520_v1 = vmax.f32 %v8473_v63, 0.0  ;;  %v2013_v3 = vpop.f32.mrb[175].mxu0 }
 0x265   : > { %v2518_v7 = vmax.f32 %v2013_v3, 0.0  ;;  %v8624_v8 = vpop.f32.mrb[64].mxu1 }
 0x266   : > { %v2688_v10 = vpack.c.bf16 %v2520_v1, %v2519_v0  ;;  %v3420_v11 = vpop.f32.mrb[65].mxu1  ;;  %v4253_v15 = vmax.f32 %v8624_v8, 0.0 }
 0x267   : > { %v2687_v12 = vpack.c.bf16 %v2518_v7, %v2517_v4  ;;  %v8625_v13 = vpop.f32.mrb[66].mxu1  ;;  %v4251_v25 = vmax.f32 %v3420_v11, 0.0 }
 0x268   : > { %v4254_v18 = vmax.f32 %v8625_v13, 0.0  ;;  %v3423_v22 = vpop.f32.mrb[67].mxu1 }
 0x269   : > { %v4252_v27 = vmax.f32 %v3423_v22, 0.0  ;;  %v8476_v28 = vpop.f32.mrb[176].mxu0  ;;  %8730 = vmatprep.mubr.msk.bf16.mxu1 %vm2745_vm0, %v2687_v12 }
 0x26a   : > { %v9776_v32 = vpack.c.bf16 %v4254_v18, %v4253_v15  ;;  %v2026_v34 = vpop.f32.mrb[177].mxu0  ;;  %8731 = vmatmul.mubr.msk.bf16.gmra.mrb[172].mxu1 %vm2745_vm0, %v2688_v10  ;;  %v2523_v38 = vmax.f32 %v8476_v28, 0.0 }
 0x26b   : > { %v9779_v36 = vpack.c.bf16 %v4252_v27, %v4251_v25  ;;  %v8477_v37 = vpop.f32.mrb[178].mxu0  ;;  %v2521_v42 = vmax.f32 %v2026_v34, 0.0 }
 0x26c   : > { %v2524_v39 = vmax.f32 %v8477_v37, 0.0  ;;  %v2029_v41 = vpop.f32.mrb[179].mxu0 }
 0x26d   : > { %v2522_v44 = vmax.f32 %v2029_v41, 0.0  ;;  %v8628_v45 = vpop.f32.mrb[68].mxu1 }
 0x26e   : > { %v2690_v46 = vpack.c.bf16 %v2524_v39, %v2523_v38  ;;  %v3436_v49 = vpop.f32.mrb[69].mxu1  ;;  %v4257_v60 = vmax.f32 %v8628_v45, 0.0 }
 0x26f   : > { %v2689_v55 = vpack.c.bf16 %v2522_v44, %v2521_v42  ;;  %v8629_v56 = vpop.f32.mrb[70].mxu1  ;;  %v4255_v1 = vmax.f32 %v3436_v49, 0.0 }
 0x270   : > { %v4258_v63 = vmax.f32 %v8629_v56, 0.0  ;;  %v3439_v0 = vpop.f32.mrb[71].mxu1 }
 0x271   : > { %v4256_v3 = vmax.f32 %v3439_v0, 0.0  ;;  %v8480_v4 = vpop.f32.mrb[180].mxu0  ;;  %8734 = vmatprep.mubr.msk.bf16.mxu1 %vm2745_vm0, %v2689_v55 }
 0x272   : > { %v9782_v7 = vpack.c.bf16 %v4258_v63, %v4257_v60  ;;  %v2042_v8 = vpop.f32.mrb[181].mxu0  ;;  %8735 = vmatmul.mubr.msk.bf16.gmra.mrb[176].mxu1 %vm2745_vm0, %v2690_v46  ;;  %v2527_v12 = vmax.f32 %v8480_v4, 0.0 }
 0x273   : > { %v9785_v10 = vpack.c.bf16 %v4256_v3, %v4255_v1  ;;  %v8481_v11 = vpop.f32.mrb[182].mxu0  ;;  %v2525_v18 = vmax.f32 %v2042_v8, 0.0 }
 0x274   : > { %v2528_v13 = vmax.f32 %v8481_v11, 0.0  ;;  %v2045_v15 = vpop.f32.mrb[183].mxu0 }
 0x275   : > { %v2526_v22 = vmax.f32 %v2045_v15, 0.0  ;;  %v8632_v25 = vpop.f32.mrb[72].mxu1 }
 0x276   : > { %v2692_v27 = vpack.c.bf16 %v2528_v13, %v2527_v12  ;;  %v3452_v28 = vpop.f32.mrb[73].mxu1  ;;  %v4261_v38 = vmax.f32 %v8632_v25, 0.0 }
 0x277   : > { %v2691_v34 = vpack.c.bf16 %v2526_v22, %v2525_v18  ;;  %v8633_v37 = vpop.f32.mrb[74].mxu1  ;;  %v4259_v42 = vmax.f32 %v3452_v28, 0.0 }
 0x278   : > { %v4262_v39 = vmax.f32 %v8633_v37, 0.0  ;;  %v3455_v41 = vpop.f32.mrb[75].mxu1 }
 0x279   : > { %v4260_v44 = vmax.f32 %v3455_v41, 0.0  ;;  %v8484_v45 = vpop.f32.mrb[184].mxu0  ;;  %8738 = vmatprep.mubr.msk.bf16.mxu1 %vm2745_vm0, %v2691_v34 }
 0x27a   : > { %v9788_v46 = vpack.c.bf16 %v4262_v39, %v4261_v38  ;;  %v2058_v49 = vpop.f32.mrb[185].mxu0  ;;  %8739 = vmatmul.mubr.msk.bf16.gmra.mrb[180].mxu1 %vm2745_vm0, %v2692_v27  ;;  %v2531_v60 = vmax.f32 %v8484_v45, 0.0 }
 0x27b   : > { %v9791_v55 = vpack.c.bf16 %v4260_v44, %v4259_v42  ;;  %v8485_v56 = vpop.f32.mrb[186].mxu0  ;;  %v2529_v1 = vmax.f32 %v2058_v49, 0.0 }
 0x27c   : > { %v2532_v63 = vmax.f32 %v8485_v56, 0.0  ;;  %v2061_v0 = vpop.f32.mrb[187].mxu0 }
 0x27d   : > { %v2530_v3 = vmax.f32 %v2061_v0, 0.0  ;;  %v8636_v4 = vpop.f32.mrb[76].mxu1 }
 0x27e   : > { %v2694_v8 = vpack.c.bf16 %v2532_v63, %v2531_v60  ;;  %v3468_v11 = vpop.f32.mrb[77].mxu1  ;;  %v4265_v15 = vmax.f32 %v8636_v4, 0.0 }
 0x27f   : > { %v2693_v12 = vpack.c.bf16 %v2530_v3, %v2529_v1  ;;  %v8637_v13 = vpop.f32.mrb[78].mxu1  ;;  %v4263_v25 = vmax.f32 %v3468_v11, 0.0 }
 0x280   : > { %v4266_v18 = vmax.f32 %v8637_v13, 0.0  ;;  %v3471_v22 = vpop.f32.mrb[79].mxu1 }
 0x281   : > { %v4264_v28 = vmax.f32 %v3471_v22, 0.0  ;;  %v8488_v34 = vpop.f32.mrb[188].mxu0  ;;  %8742 = vmatprep.mubr.msk.bf16.mxu1 %vm2745_vm0, %v2693_v12 }
 0x282   : > { %v9794_v27 = vpack.c.bf16 %v4266_v18, %v4265_v15  ;;  %v2074_v37 = vpop.f32.mrb[189].mxu0  ;;  %8743 = vmatmul.mubr.msk.bf16.gmra.mrb[184].mxu1 %vm2745_vm0, %v2694_v8  ;;  %v2535_v41 = vmax.f32 %v8488_v34, 0.0 }
 0x283   : > { %v9797_v38 = vpack.c.bf16 %v4264_v28, %v4263_v25  ;;  %v8489_v39 = vpop.f32.mrb[190].mxu0  ;;  %v2533_v45 = vmax.f32 %v2074_v37, 0.0 }
 0x284   : > { %v2536_v42 = vmax.f32 %v8489_v39, 0.0  ;;  %v2077_v44 = vpop.f32.mrb[191].mxu0  ;;  %v9317_v39 = vld [vmem:[%s10717_s2 + $0x18] sm:$0xff]  }
 0x285   : > { %v2534_v49 = vmax.f32 %v2077_v44, 0.0  ;;  %v8640_v56 = vpop.f32.mrb[80].mxu1  ;;  %8816 = vmatprep.subr.bf16.mxu1 %v9317_v39 }
 0x286   : > { %v2696_v60 = vpack.c.bf16 %v2536_v42, %v2535_v41  ;;  %v3484_v63 = vpop.f32.mrb[81].mxu1  ;;  %v4269_v3 = vmax.f32 %v8640_v56, 0.0  ;;  %8817 = vmatpush3.bf16.msra.mxu1 %v9317_v39 }
 0x287   : > { %v2695_v0 = vpack.c.bf16 %v2534_v49, %v2533_v45  ;;  %v8641_v1 = vpop.f32.mrb[82].mxu1  ;;  %v4267_v12 = vmax.f32 %v3484_v63, 0.0 }
 0x288   : > { %v4270_v4 = vmax.f32 %v8641_v1, 0.0  ;;  %v3487_v11 = vpop.f32.mrb[83].mxu1 }
 0x289   : > { %v4268_v13 = vmax.f32 %v3487_v11, 0.0  ;;  %v8492_v15 = vpop.f32.mrb[192].mxu0  ;;  %8746 = vmatprep.mubr.msk.bf16.mxu1 %vm2745_vm0, %v2695_v0 }
 0x28a   : > { %v9800_v8 = vpack.c.bf16 %v4270_v4, %v4269_v3  ;;  %v2090_v18 = vpop.f32.mrb[193].mxu0  ;;  %8747 = vmatmul.mubr.msk.bf16.gmra.mrb[188].mxu1 %vm2745_vm0, %v2696_v60  ;;  %v2539_v28 = vmax.f32 %v8492_v15, 0.0 }
 0x28b   : > { %v9803_v22 = vpack.c.bf16 %v4268_v13, %v4267_v12  ;;  %v8493_v25 = vpop.f32.mrb[194].mxu0  ;;  %v2537_v41 = vmax.f32 %v2090_v18, 0.0 }
 0x28c   : > { %10722 = vst [vmem:[#allocation5_spill] sm:$0xff] %v9800_v8  ;;  %v2540_v34 = vmax.f32 %v8493_v25, 0.0  ;;  %v2093_v37 = vpop.f32.mrb[195].mxu0 }
 0x28d   : > { %v2538_v42 = vmax.f32 %v2093_v37, 0.0  ;;  %v8644_v44 = vpop.f32.mrb[84].mxu1 }
 0x28e   : > { %v2698_v45 = vpack.c.bf16 %v2540_v34, %v2539_v28  ;;  %v3500_v49 = vpop.f32.mrb[85].mxu1  ;;  %v4273_v60 = vmax.f32 %v8644_v44, 0.0 }
 0x28f   : > { %v2697_v56 = vpack.c.bf16 %v2538_v42, %v2537_v41  ;;  %v8645_v63 = vpop.f32.mrb[86].mxu1  ;;  %v4271_v3 = vmax.f32 %v3500_v49, 0.0 }
 0x290   : > { %v4274_v0 = vmax.f32 %v8645_v63, 0.0  ;;  %v3503_v1 = vpop.f32.mrb[87].mxu1 }
 0x291   : > { %v4272_v4 = vmax.f32 %v3503_v1, 0.0  ;;  %v8496_v11 = vpop.f32.mrb[196].mxu0  ;;  %8750 = vmatprep.mubr.msk.bf16.mxu1 %vm2745_vm0, %v2697_v56 }
 0x292   : > { %v9809_v12 = vpack.c.bf16 %v4274_v0, %v4273_v60  ;;  %v2106_v13 = vpop.f32.mrb[197].mxu0  ;;  %8751 = vmatmul.mubr.msk.bf16.gmra.mrb[192].mxu1 %vm2745_vm0, %v2698_v45  ;;  %v2543_v25 = vmax.f32 %v8496_v11, 0.0 }
 0x293   : > { %v9812_v15 = vpack.c.bf16 %v4272_v4, %v4271_v3  ;;  %v8497_v18 = vpop.f32.mrb[198].mxu0  ;;  %v2541_v37 = vmax.f32 %v2106_v13, 0.0 }
 0x294   : > { %10723 = vst [vmem:[#allocation6_spill] sm:$0xff] %v9809_v12  ;;  %v2544_v28 = vmax.f32 %v8497_v18, 0.0  ;;  %v2109_v34 = vpop.f32.mrb[199].mxu0 }
 0x295   : > { %10724 = vst [vmem:[#allocation7_spill] sm:$0xff] %v9812_v15  ;;  %v2542_v39 = vmax.f32 %v2109_v34, 0.0  ;;  %v8648_v41 = vpop.f32.mrb[88].mxu1 }
 0x296   : > { %v2700_v42 = vpack.c.bf16 %v2544_v28, %v2543_v25  ;;  %v3516_v44 = vpop.f32.mrb[89].mxu1  ;;  %v4277_v1 = vmax.f32 %v8648_v41, 0.0 }
 0x297   : > { %v2699_v49 = vpack.c.bf16 %v2542_v39, %v2541_v37  ;;  %v8649_v63 = vpop.f32.mrb[90].mxu1  ;;  %v4275_v0 = vmax.f32 %v3516_v44, 0.0 }
 0x298   : > { %v4278_v56 = vmax.f32 %v8649_v63, 0.0  ;;  %v3519_v60 = vpop.f32.mrb[91].mxu1 }
 0x299   : > { %v4276_v12 = vmax.f32 %v3519_v60, 0.0  ;;  %v8500_v8 = vpop.f32.mrb[200].mxu0  ;;  %8754 = vmatprep.mubr.msk.bf16.mxu1 %vm2745_vm0, %v2699_v49 }
 0x29a   : > { %v9815_v45 = vpack.c.bf16 %v4278_v56, %v4277_v1  ;;  %v2122_v3 = vpop.f32.mrb[201].mxu0  ;;  %8755 = vmatmul.mubr.msk.bf16.gmra.mrb[196].mxu1 %vm2745_vm0, %v2700_v42  ;;  %v2547_v13 = vmax.f32 %v8500_v8, 0.0 }
 0x29b   : > { %v9818_v4 = vpack.c.bf16 %v4276_v12, %v4275_v0  ;;  %v8501_v11 = vpop.f32.mrb[202].mxu0  ;;  %v2545_v28 = vmax.f32 %v2122_v3, 0.0 }
 0x29c   : > { %10725 = vst [vmem:[#allocation8_spill] sm:$0xff] %v9815_v45  ;;  %v2548_v18 = vmax.f32 %v8501_v11, 0.0  ;;  %v2125_v25 = vpop.f32.mrb[203].mxu0 }
 0x29d   : > { %10726 = vst [vmem:[#allocation9_spill] sm:$0xff] %v9818_v4  ;;  %v2546_v34 = vmax.f32 %v2125_v25, 0.0  ;;  %v8652_v37 = vpop.f32.mrb[92].mxu1 }
 0x29e   : > { %v2702_v39 = vpack.c.bf16 %v2548_v18, %v2547_v13  ;;  %v3532_v41 = vpop.f32.mrb[93].mxu1  ;;  %v4281_v60 = vmax.f32 %v8652_v37, 0.0 }
 0x29f   : > { %v2701_v44 = vpack.c.bf16 %v2546_v34, %v2545_v28  ;;  %v8653_v63 = vpop.f32.mrb[94].mxu1  ;;  %v4279_v56 = vmax.f32 %v3532_v41, 0.0 }
 0x2a0   : > { %v4282_v49 = vmax.f32 %v8653_v63, 0.0  ;;  %v3535_v1 = vpop.f32.mrb[95].mxu1 }
 0x2a1   : > { %v4280_v45 = vmax.f32 %v3535_v1, 0.0  ;;  %v8504_v15 = vpop.f32.mrb[204].mxu0  ;;  %8758 = vmatprep.mubr.msk.bf16.mxu1 %vm2745_vm0, %v2701_v44 }
 0x2a2   : > { %v9821_v12 = vpack.c.bf16 %v4282_v49, %v4281_v60  ;;  %v2138_v8 = vpop.f32.mrb[205].mxu0  ;;  %8759 = vmatmul.mubr.msk.bf16.gmra.mrb[200].mxu1 %vm2745_vm0, %v2702_v39  ;;  %v2551_v3 = vmax.f32 %v8504_v15, 0.0 }
 0x2a3   : > { %v9824_v42 = vpack.c.bf16 %v4280_v45, %v4279_v56  ;;  %v8505_v0 = vpop.f32.mrb[206].mxu0  ;;  %v2549_v18 = vmax.f32 %v2138_v8, 0.0 }
 0x2a4   : > { %10727 = vst [vmem:[#allocation10_spill] sm:$0xff] %v9821_v12  ;;  %v2552_v11 = vmax.f32 %v8505_v0, 0.0  ;;  %v2141_v13 = vpop.f32.mrb[207].mxu0 }
 0x2a5   : > { %10728 = vst [vmem:[#allocation11_spill] sm:$0xff] %v9824_v42  ;;  %v2550_v25 = vmax.f32 %v2141_v13, 0.0  ;;  %v8656_v28 = vpop.f32.mrb[96].mxu1 }
 0x2a6   : > { %v2704_v34 = vpack.c.bf16 %v2552_v11, %v2551_v3  ;;  %v3548_v37 = vpop.f32.mrb[97].mxu1  ;;  %v4285_v1 = vmax.f32 %v8656_v28, 0.0 }
 0x2a7   : > { %v2703_v41 = vpack.c.bf16 %v2550_v25, %v2549_v18  ;;  %v8657_v63 = vpop.f32.mrb[98].mxu1  ;;  %v4283_v49 = vmax.f32 %v3548_v37, 0.0 }
 0x2a8   : > { %v4286_v44 = vmax.f32 %v8657_v63, 0.0  ;;  %v3551_v60 = vpop.f32.mrb[99].mxu1 }
 0x2a9   : > { %v4284_v12 = vmax.f32 %v3551_v60, 0.0  ;;  %v8508_v4 = vpop.f32.mrb[208].mxu0  ;;  %8762 = vmatprep.mubr.msk.bf16.mxu1 %vm2745_vm0, %v2703_v41 }
 0x2aa   : > { %v9827_v45 = vpack.c.bf16 %v4286_v44, %v4285_v1  ;;  %v2154_v15 = vpop.f32.mrb[209].mxu0  ;;  %8763 = vmatmul.mubr.msk.bf16.gmra.mrb[204].mxu1 %vm2745_vm0, %v2704_v34  ;;  %v2555_v8 = vmax.f32 %v8508_v4, 0.0 }
 0x2ab   : > { %v9830_v39 = vpack.c.bf16 %v4284_v12, %v4283_v49  ;;  %v8509_v56 = vpop.f32.mrb[210].mxu0  ;;  %v2553_v11 = vmax.f32 %v2154_v15, 0.0 }
 0x2ac   : > { %10729 = vst [vmem:[#allocation12_spill] sm:$0xff] %v9827_v45  ;;  %v2556_v0 = vmax.f32 %v8509_v56, 0.0  ;;  %v2157_v3 = vpop.f32.mrb[211].mxu0 }
 0x2ad   : > { %10730 = vst [vmem:[#allocation13_spill] sm:$0xff] %v9830_v39  ;;  %v2554_v13 = vmax.f32 %v2157_v3, 0.0  ;;  %v8660_v18 = vpop.f32.mrb[100].mxu1 }
 0x2ae   : > { %v2706_v25 = vpack.c.bf16 %v2556_v0, %v2555_v8  ;;  %v3564_v28 = vpop.f32.mrb[101].mxu1  ;;  %v4289_v60 = vmax.f32 %v8660_v18, 0.0 }
 0x2af   : > { %v2705_v37 = vpack.c.bf16 %v2554_v13, %v2553_v11  ;;  %v8661_v63 = vpop.f32.mrb[102].mxu1  ;;  %v4287_v44 = vmax.f32 %v3564_v28, 0.0 }
 0x2b0   : > { %v4290_v41 = vmax.f32 %v8661_v63, 0.0  ;;  %v3567_v1 = vpop.f32.mrb[103].mxu1 }
 0x2b1   : > { %v4288_v45 = vmax.f32 %v3567_v1, 0.0  ;;  %v8512_v42 = vpop.f32.mrb[212].mxu0  ;;  %8766 = vmatprep.mubr.msk.bf16.mxu1 %vm2745_vm0, %v2705_v37 }
 0x2b2   : > { %v9833_v12 = vpack.c.bf16 %v4290_v41, %v4289_v60  ;;  %v2170_v4 = vpop.f32.mrb[213].mxu0  ;;  %8767 = vmatmul.mubr.msk.bf16.gmra.mrb[208].mxu1 %vm2745_vm0, %v2706_v25  ;;  %v2559_v15 = vmax.f32 %v8512_v42, 0.0 }
 0x2b3   : > { %v9836_v34 = vpack.c.bf16 %v4288_v45, %v4287_v44  ;;  %v8513_v49 = vpop.f32.mrb[214].mxu0  ;;  %v2557_v0 = vmax.f32 %v2170_v4, 0.0 }
 0x2b4   : > { %10731 = vst [vmem:[#allocation14_spill] sm:$0xff] %v9833_v12  ;;  %v2560_v56 = vmax.f32 %v8513_v49, 0.0  ;;  %v2173_v8 = vpop.f32.mrb[215].mxu0 }
 0x2b5   : > { %10732 = vst [vmem:[#allocation15_spill] sm:$0xff] %v9836_v34  ;;  %v2558_v3 = vmax.f32 %v2173_v8, 0.0  ;;  %v8664_v11 = vpop.f32.mrb[104].mxu1 }
 0x2b6   : > { %v2708_v13 = vpack.c.bf16 %v2560_v56, %v2559_v15  ;;  %v3580_v18 = vpop.f32.mrb[105].mxu1  ;;  %v4293_v1 = vmax.f32 %v8664_v11, 0.0 }
 0x2b7   : > { %v2707_v28 = vpack.c.bf16 %v2558_v3, %v2557_v0  ;;  %v8665_v63 = vpop.f32.mrb[106].mxu1  ;;  %v4291_v41 = vmax.f32 %v3580_v18, 0.0 }
 0x2b8   : > { %v4294_v37 = vmax.f32 %v8665_v63, 0.0  ;;  %v3583_v60 = vpop.f32.mrb[107].mxu1 }
 0x2b9   : > { %v4292_v12 = vmax.f32 %v3583_v60, 0.0  ;;  %v8516_v39 = vpop.f32.mrb[216].mxu0  ;;  %8770 = vmatprep.mubr.msk.bf16.mxu1 %vm2745_vm0, %v2707_v28 }
 0x2ba   : > { %v9839_v45 = vpack.c.bf16 %v4294_v37, %v4293_v1  ;;  %v2186_v42 = vpop.f32.mrb[217].mxu0  ;;  %8771 = vmatmul.mubr.msk.bf16.gmra.mrb[212].mxu1 %vm2745_vm0, %v2708_v13  ;;  %v2563_v4 = vmax.f32 %v8516_v39, 0.0 }
 0x2bb   : > { %v9842_v25 = vpack.c.bf16 %v4292_v12, %v4291_v41  ;;  %v8517_v44 = vpop.f32.mrb[218].mxu0  ;;  %v2561_v56 = vmax.f32 %v2186_v42, 0.0 }
 0x2bc   : > { %10733 = vst [vmem:[#allocation16_spill] sm:$0xff] %v9839_v45  ;;  %v2564_v49 = vmax.f32 %v8517_v44, 0.0  ;;  %v2189_v15 = vpop.f32.mrb[219].mxu0 }
 0x2bd   : > { %10734 = vst [vmem:[#allocation17_spill] sm:$0xff] %v9842_v25  ;;  %v2562_v8 = vmax.f32 %v2189_v15, 0.0  ;;  %v8668_v0 = vpop.f32.mrb[108].mxu1 }
 0x2be   : > { %v2710_v3 = vpack.c.bf16 %v2564_v49, %v2563_v4  ;;  %v3596_v11 = vpop.f32.mrb[109].mxu1  ;;  %v4297_v60 = vmax.f32 %v8668_v0, 0.0 }
 0x2bf   : > { %v2709_v18 = vpack.c.bf16 %v2562_v8, %v2561_v56  ;;  %v8669_v63 = vpop.f32.mrb[110].mxu1  ;;  %v4295_v37 = vmax.f32 %v3596_v11, 0.0 }
 0x2c0   : > { %v4298_v28 = vmax.f32 %v8669_v63, 0.0  ;;  %v3599_v1 = vpop.f32.mrb[111].mxu1 }
 0x2c1   : > { %v4296_v45 = vmax.f32 %v3599_v1, 0.0  ;;  %v8520_v34 = vpop.f32.mrb[220].mxu0  ;;  %8774 = vmatprep.mubr.msk.bf16.mxu1 %vm2745_vm0, %v2709_v18 }
 0x2c2   : > { %v9845_v12 = vpack.c.bf16 %v4298_v28, %v4297_v60  ;;  %v2202_v39 = vpop.f32.mrb[221].mxu0  ;;  %8775 = vmatmul.mubr.msk.bf16.gmra.mrb[216].mxu1 %vm2745_vm0, %v2710_v3  ;;  %v2567_v42 = vmax.f32 %v8520_v34, 0.0 }
 0x2c3   : > { %v9848_v13 = vpack.c.bf16 %v4296_v45, %v4295_v37  ;;  %v8521_v41 = vpop.f32.mrb[222].mxu0  ;;  %v2565_v49 = vmax.f32 %v2202_v39, 0.0 }
 0x2c4   : > { %10735 = vst [vmem:[#allocation18_spill] sm:$0xff] %v9845_v12  ;;  %v2568_v44 = vmax.f32 %v8521_v41, 0.0  ;;  %v2205_v4 = vpop.f32.mrb[223].mxu0 }
 0x2c5   : > { %10736 = vst [vmem:[#allocation19_spill] sm:$0xff] %v9848_v13  ;;  %v2566_v15 = vmax.f32 %v2205_v4, 0.0  ;;  %v8672_v56 = vpop.f32.mrb[112].mxu1 }
 0x2c6   : > { %v2712_v8 = vpack.c.bf16 %v2568_v44, %v2567_v42  ;;  %v3612_v0 = vpop.f32.mrb[113].mxu1  ;;  %v4301_v1 = vmax.f32 %v8672_v56, 0.0 }
 0x2c7   : > { %v2711_v11 = vpack.c.bf16 %v2566_v15, %v2565_v49  ;;  %v8673_v63 = vpop.f32.mrb[114].mxu1  ;;  %v4299_v28 = vmax.f32 %v3612_v0, 0.0 }
 0x2c8   : > { %v4302_v18 = vmax.f32 %v8673_v63, 0.0  ;;  %v3615_v60 = vpop.f32.mrb[115].mxu1 }
 0x2c9   : > { %v4300_v12 = vmax.f32 %v3615_v60, 0.0  ;;  %v8524_v25 = vpop.f32.mrb[224].mxu0  ;;  %8778 = vmatprep.mubr.msk.bf16.mxu1 %vm2745_vm0, %v2711_v11 }
 0x2ca   : > { %v9851_v45 = vpack.c.bf16 %v4302_v18, %v4301_v1  ;;  %v2218_v34 = vpop.f32.mrb[225].mxu0  ;;  %8779 = vmatmul.mubr.msk.bf16.gmra.mrb[220].mxu1 %vm2745_vm0, %v2712_v8  ;;  %v2571_v39 = vmax.f32 %v8524_v25, 0.0 }
 0x2cb   : > { %v9854_v3 = vpack.c.bf16 %v4300_v12, %v4299_v28  ;;  %v8525_v37 = vpop.f32.mrb[226].mxu0  ;;  %v2569_v44 = vmax.f32 %v2218_v34, 0.0 }
 0x2cc   : > { %10737 = vst [vmem:[#allocation20_spill] sm:$0xff] %v9851_v45  ;;  %v2572_v41 = vmax.f32 %v8525_v37, 0.0  ;;  %v2221_v42 = vpop.f32.mrb[227].mxu0 }
 0x2cd   : > { %10738 = vst [vmem:[#allocation21_spill] sm:$0xff] %v9854_v3  ;;  %v2570_v4 = vmax.f32 %v2221_v42, 0.0  ;;  %v8676_v49 = vpop.f32.mrb[116].mxu1 }
 0x2ce   : > { %v2714_v15 = vpack.c.bf16 %v2572_v41, %v2571_v39  ;;  %v3628_v56 = vpop.f32.mrb[117].mxu1  ;;  %v4305_v60 = vmax.f32 %v8676_v49, 0.0 }
 0x2cf   : > { %v2713_v0 = vpack.c.bf16 %v2570_v4, %v2569_v44  ;;  %v8677_v63 = vpop.f32.mrb[118].mxu1  ;;  %v4303_v18 = vmax.f32 %v3628_v56, 0.0 }
 0x2d0   : > { %v4306_v11 = vmax.f32 %v8677_v63, 0.0  ;;  %v3631_v1 = vpop.f32.mrb[119].mxu1 }
 0x2d1   : > { %v4304_v45 = vmax.f32 %v3631_v1, 0.0  ;;  %v8528_v13 = vpop.f32.mrb[228].mxu0  ;;  %8782 = vmatprep.mubr.msk.bf16.mxu1 %vm2745_vm0, %v2713_v0 }
 0x2d2   : > { %v9857_v12 = vpack.c.bf16 %v4306_v11, %v4305_v60  ;;  %v2234_v25 = vpop.f32.mrb[229].mxu0  ;;  %8783 = vmatmul.mubr.msk.bf16.gmra.mrb[224].mxu1 %vm2745_vm0, %v2714_v15  ;;  %v2575_v34 = vmax.f32 %v8528_v13, 0.0 }
 0x2d3   : > { %v9860_v8 = vpack.c.bf16 %v4304_v45, %v4303_v18  ;;  %v8529_v28 = vpop.f32.mrb[230].mxu0  ;;  %v2573_v41 = vmax.f32 %v2234_v25, 0.0 }
 0x2d4   : > { %10739 = vst [vmem:[#allocation22_spill] sm:$0xff] %v9857_v12  ;;  %v2576_v37 = vmax.f32 %v8529_v28, 0.0  ;;  %v2237_v39 = vpop.f32.mrb[231].mxu0 }
 0x2d5   : > { %10740 = vst [vmem:[#allocation23_spill] sm:$0xff] %v9860_v8  ;;  %v2574_v42 = vmax.f32 %v2237_v39, 0.0  ;;  %v8680_v44 = vpop.f32.mrb[120].mxu1 }
 0x2d6   : > { %v2716_v4 = vpack.c.bf16 %v2576_v37, %v2575_v34  ;;  %v3644_v49 = vpop.f32.mrb[121].mxu1  ;;  %v4309_v1 = vmax.f32 %v8680_v44, 0.0 }
 0x2d7   : > { %v2715_v56 = vpack.c.bf16 %v2574_v42, %v2573_v41  ;;  %v8681_v63 = vpop.f32.mrb[122].mxu1  ;;  %v4307_v11 = vmax.f32 %v3644_v49, 0.0 }
 0x2d8   : > { %v4310_v0 = vmax.f32 %v8681_v63, 0.0  ;;  %v3647_v60 = vpop.f32.mrb[123].mxu1 }
 0x2d9   : > { %v4308_v12 = vmax.f32 %v3647_v60, 0.0  ;;  %v8532_v3 = vpop.f32.mrb[232].mxu0  ;;  %8786 = vmatprep.mubr.msk.bf16.mxu1 %vm2745_vm0, %v2715_v56 }
 0x2da   : > { %v9863_v45 = vpack.c.bf16 %v4310_v0, %v4309_v1  ;;  %v2250_v13 = vpop.f32.mrb[233].mxu0  ;;  %8787 = vmatmul.mubr.msk.bf16.gmra.mrb[228].mxu1 %vm2745_vm0, %v2716_v4  ;;  %v2579_v25 = vmax.f32 %v8532_v3, 0.0 }
 0x2db   : > { %v9866_v15 = vpack.c.bf16 %v4308_v12, %v4307_v11  ;;  %v8533_v18 = vpop.f32.mrb[234].mxu0  ;;  %v2577_v37 = vmax.f32 %v2250_v13, 0.0 }
 0x2dc   : > { %10741 = vst [vmem:[#allocation24_spill] sm:$0xff] %v9863_v45  ;;  %v2580_v28 = vmax.f32 %v8533_v18, 0.0  ;;  %v2253_v34 = vpop.f32.mrb[235].mxu0 }
 0x2dd   : > { %10742 = vst [vmem:[#allocation25_spill] sm:$0xff] %v9866_v15  ;;  %v2578_v39 = vmax.f32 %v2253_v34, 0.0  ;;  %v8684_v41 = vpop.f32.mrb[124].mxu1 }
 0x2de   : > { %v2718_v42 = vpack.c.bf16 %v2580_v28, %v2579_v25  ;;  %v3660_v44 = vpop.f32.mrb[125].mxu1  ;;  %v4313_v60 = vmax.f32 %v8684_v41, 0.0 }
 0x2df   : > { %v2717_v49 = vpack.c.bf16 %v2578_v39, %v2577_v37  ;;  %v8685_v63 = vpop.f32.mrb[126].mxu1  ;;  %v4311_v0 = vmax.f32 %v3660_v44, 0.0 }
 0x2e0   : > { %v4314_v56 = vmax.f32 %v8685_v63, 0.0  ;;  %v3663_v1 = vpop.f32.mrb[127].mxu1 }
 0x2e1   : > { %v4312_v45 = vmax.f32 %v3663_v1, 0.0  ;;  %v8536_v8 = vpop.f32.mrb[236].mxu0  ;;  %8790 = vmatprep.mubr.msk.bf16.mxu1 %vm2745_vm0, %v2717_v49 }
 0x2e2   : > { %v9869_v12 = vpack.c.bf16 %v4314_v56, %v4313_v60  ;;  %v2266_v3 = vpop.f32.mrb[237].mxu0  ;;  %8791 = vmatmul.mubr.msk.bf16.gmra.mrb[232].mxu1 %vm2745_vm0, %v2718_v42  ;;  %v2583_v13 = vmax.f32 %v8536_v8, 0.0 }
 0x2e3   : > { %v9872_v4 = vpack.c.bf16 %v4312_v45, %v4311_v0  ;;  %v8537_v11 = vpop.f32.mrb[238].mxu0  ;;  %v2581_v28 = vmax.f32 %v2266_v3, 0.0 }
 0x2e4   : > { %10743 = vst [vmem:[#allocation26_spill] sm:$0xff] %v9869_v12  ;;  %v2584_v18 = vmax.f32 %v8537_v11, 0.0  ;;  %v2269_v25 = vpop.f32.mrb[239].mxu0 }
 0x2e5   : > { %10744 = vst [vmem:[#allocation27_spill] sm:$0xff] %v9872_v4  ;;  %v2582_v34 = vmax.f32 %v2269_v25, 0.0  ;;  %v8688_v37 = vpop.f32.mrb[128].mxu1 }
 0x2e6   : > { %v2720_v39 = vpack.c.bf16 %v2584_v18, %v2583_v13  ;;  %v3676_v41 = vpop.f32.mrb[129].mxu1  ;;  %v4317_v1 = vmax.f32 %v8688_v37, 0.0 }
 0x2e7   : > { %v2719_v44 = vpack.c.bf16 %v2582_v34, %v2581_v28  ;;  %v8689_v63 = vpop.f32.mrb[130].mxu1  ;;  %v4315_v56 = vmax.f32 %v3676_v41, 0.0 }
 0x2e8   : > { %v4318_v49 = vmax.f32 %v8689_v63, 0.0  ;;  %v3679_v60 = vpop.f32.mrb[131].mxu1 }
 0x2e9   : > { %v4316_v12 = vmax.f32 %v3679_v60, 0.0  ;;  %v8540_v15 = vpop.f32.mrb[240].mxu0  ;;  %8794 = vmatprep.mubr.msk.bf16.mxu1 %vm2745_vm0, %v2719_v44 }
 0x2ea   : > { %v9875_v45 = vpack.c.bf16 %v4318_v49, %v4317_v1  ;;  %v2282_v8 = vpop.f32.mrb[241].mxu0  ;;  %8795 = vmatmul.mubr.msk.bf16.gmra.mrb[236].mxu1 %vm2745_vm0, %v2720_v39  ;;  %v2587_v3 = vmax.f32 %v8540_v15, 0.0 }
 0x2eb   : > { %v9878_v42 = vpack.c.bf16 %v4316_v12, %v4315_v56  ;;  %v8541_v0 = vpop.f32.mrb[242].mxu0  ;;  %v2585_v18 = vmax.f32 %v2282_v8, 0.0 }
 0x2ec   : > { %10745 = vst [vmem:[#allocation28_spill] sm:$0xff] %v9875_v45  ;;  %v2588_v11 = vmax.f32 %v8541_v0, 0.0  ;;  %v2285_v13 = vpop.f32.mrb[243].mxu0 }
 0x2ed   : > { %10746 = vst [vmem:[#allocation29_spill] sm:$0xff] %v9878_v42  ;;  %v2586_v25 = vmax.f32 %v2285_v13, 0.0  ;;  %v8692_v28 = vpop.f32.mrb[132].mxu1 }
 0x2ee   : > { %v2722_v34 = vpack.c.bf16 %v2588_v11, %v2587_v3  ;;  %v3692_v37 = vpop.f32.mrb[133].mxu1  ;;  %v4321_v60 = vmax.f32 %v8692_v28, 0.0 }
 0x2ef   : > { %v2721_v41 = vpack.c.bf16 %v2586_v25, %v2585_v18  ;;  %v8693_v63 = vpop.f32.mrb[134].mxu1  ;;  %v4319_v49 = vmax.f32 %v3692_v37, 0.0 }
 0x2f0   : > { %v4322_v44 = vmax.f32 %v8693_v63, 0.0  ;;  %v3695_v1 = vpop.f32.mrb[135].mxu1 }
 0x2f1   : > { %v4320_v45 = vmax.f32 %v3695_v1, 0.0  ;;  %v8544_v4 = vpop.f32.mrb[244].mxu0  ;;  %8798 = vmatprep.mubr.msk.bf16.mxu1 %vm2745_vm0, %v2721_v41 }
 0x2f2   : > { %v9881_v12 = vpack.c.bf16 %v4322_v44, %v4321_v60  ;;  %v2298_v15 = vpop.f32.mrb[245].mxu0  ;;  %8799 = vmatmul.mubr.msk.bf16.gmra.mrb[240].mxu1 %vm2745_vm0, %v2722_v34  ;;  %v2591_v8 = vmax.f32 %v8544_v4, 0.0 }
 0x2f3   : > { %v9884_v39 = vpack.c.bf16 %v4320_v45, %v4319_v49  ;;  %v8545_v56 = vpop.f32.mrb[246].mxu0  ;;  %v2589_v11 = vmax.f32 %v2298_v15, 0.0 }
 0x2f4   : > { %10747 = vst [vmem:[#allocation30_spill] sm:$0xff] %v9881_v12  ;;  %v2592_v0 = vmax.f32 %v8545_v56, 0.0  ;;  %v2301_v3 = vpop.f32.mrb[247].mxu0 }
 0x2f5   : > { %10748 = vst [vmem:[#allocation31_spill] sm:$0xff] %v9884_v39  ;;  %v2590_v13 = vmax.f32 %v2301_v3, 0.0  ;;  %v8696_v18 = vpop.f32.mrb[136].mxu1 }
 0x2f6   : > { %v2724_v25 = vpack.c.bf16 %v2592_v0, %v2591_v8  ;;  %v3708_v28 = vpop.f32.mrb[137].mxu1  ;;  %v4325_v1 = vmax.f32 %v8696_v18, 0.0 }
 0x2f7   : > { %v2723_v37 = vpack.c.bf16 %v2590_v13, %v2589_v11  ;;  %v8697_v63 = vpop.f32.mrb[138].mxu1  ;;  %v4323_v44 = vmax.f32 %v3708_v28, 0.0 }
 0x2f8   : > { %v4326_v41 = vmax.f32 %v8697_v63, 0.0  ;;  %v3711_v60 = vpop.f32.mrb[139].mxu1 }
 0x2f9   : > { %v4324_v12 = vmax.f32 %v3711_v60, 0.0  ;;  %v8548_v42 = vpop.f32.mrb[248].mxu0  ;;  %8802 = vmatprep.mubr.msk.bf16.mxu1 %vm2745_vm0, %v2723_v37 }
 0x2fa   : > { %v9887_v45 = vpack.c.bf16 %v4326_v41, %v4325_v1  ;;  %v2314_v4 = vpop.f32.mrb[249].mxu0  ;;  %8803 = vmatmul.mubr.msk.bf16.gmra.mrb[244].mxu1 %vm2745_vm0, %v2724_v25  ;;  %v2595_v15 = vmax.f32 %v8548_v42, 0.0 }
 0x2fb   : > { %v9890_v34 = vpack.c.bf16 %v4324_v12, %v4323_v44  ;;  %v8549_v49 = vpop.f32.mrb[250].mxu0  ;;  %v2593_v0 = vmax.f32 %v2314_v4, 0.0 }
 0x2fc   : > { %10749 = vst [vmem:[#allocation32_spill] sm:$0xff] %v9887_v45  ;;  %v2596_v56 = vmax.f32 %v8549_v49, 0.0  ;;  %v2317_v8 = vpop.f32.mrb[251].mxu0 }
 0x2fd   : > { %v2594_v3 = vmax.f32 %v2317_v8, 0.0  ;;  %v8700_v11 = vpop.f32.mrb[140].mxu1 }
 0x2fe   : > { %v2726_v13 = vpack.c.bf16 %v2596_v56, %v2595_v15  ;;  %v3724_v18 = vpop.f32.mrb[141].mxu1  ;;  %v4329_v60 = vmax.f32 %v8700_v11, 0.0 }
 0x2ff   : > { %v2725_v28 = vpack.c.bf16 %v2594_v3, %v2593_v0  ;;  %v8701_v63 = vpop.f32.mrb[142].mxu1  ;;  %v4327_v41 = vmax.f32 %v3724_v18, 0.0 }
 0x300   : > { %v4330_v37 = vmax.f32 %v8701_v63, 0.0  ;;  %v3727_v1 = vpop.f32.mrb[143].mxu1 }
 0x301   : > { %v4328_v45 = vmax.f32 %v3727_v1, 0.0  ;;  %v8552_v39 = vpop.f32.mrb[252].mxu0  ;;  %8806 = vmatprep.mubr.msk.bf16.mxu1 %vm2745_vm0, %v2725_v28 }
 0x302   : > { %v9893_v12 = vpack.c.bf16 %v4330_v37, %v4329_v60  ;;  %v2330_v42 = vpop.f32.mrb[253].mxu0  ;;  %8807 = vmatmul.mubr.msk.bf16.gmra.mrb[248].mxu1 %vm2745_vm0, %v2726_v13  ;;  %v2599_v4 = vmax.f32 %v8552_v39, 0.0 }
 0x303   : > { %v9896_v25 = vpack.c.bf16 %v4328_v45, %v4327_v41  ;;  %v8553_v44 = vpop.f32.mrb[254].mxu0  ;;  %v2597_v56 = vmax.f32 %v2330_v42, 0.0 }
 0x304   : > { %10750 = vst [vmem:[#allocation33_spill] sm:$0xff] %v9893_v12  ;;  %v2600_v49 = vmax.f32 %v8553_v44, 0.0  ;;  %v2333_v15 = vpop.f32.mrb[255].mxu0 }
 0x305   : > { %v2598_v8 = vmax.f32 %v2333_v15, 0.0  ;;  %v8704_v0 = vpop.f32.mrb[144].mxu1 }
 0x306   : > { %v2728_v3 = vpack.c.bf16 %v2600_v49, %v2599_v4  ;;  %v3740_v11 = vpop.f32.mrb[145].mxu1  ;;  %v4333_v1 = vmax.f32 %v8704_v0, 0.0 }
 0x307   : > { %v2727_v18 = vpack.c.bf16 %v2598_v8, %v2597_v56  ;;  %v8705_v63 = vpop.f32.mrb[146].mxu1  ;;  %v4331_v37 = vmax.f32 %v3740_v11, 0.0 }
 0x308   : > { %v4334_v28 = vmax.f32 %v8705_v63, 0.0  ;;  %v3743_v60 = vpop.f32.mrb[147].mxu1 }
 0x309   : > { %v4332_v12 = vmax.f32 %v3743_v60, 0.0  ;;  %8810 = vmatprep.mubr.msk.bf16.mxu1 %vm2745_vm0, %v2727_v18 }
 0x30a   : > { %v9899_v45 = vpack.c.bf16 %v4334_v28, %v4333_v1  ;;  %8811 = vmatmul.mubr.msk.bf16.gmra.mrb[252].mxu1 %vm2745_vm0, %v2728_v3 }
 0x30b   : > { %v9902_v39 = vpack.c.bf16 %v4332_v12, %v4331_v37  ;;  %8818 = vmatprep.mubr.msk.bf16.mxu1 %vm2745_vm0, %v9664_v29 }
 0x30d   : > { %v8708_v13 = vpop.f32.mrb[148].mxu1 }
 0x30e   : > { %v3756_v41 = vpop.f32.mrb[149].mxu1  ;;  %v4337_v44 = vmax.f32 %v8708_v13, 0.0 }
 0x30f   : > { %v8709_v42 = vpop.f32.mrb[150].mxu1  ;;  %v4335_v15 = vmax.f32 %v3756_v41, 0.0 }
 0x310   : > { %v4338_v4 = vmax.f32 %v8709_v42, 0.0  ;;  %v3759_v49 = vpop.f32.mrb[151].mxu1 }
 0x311   : > { %v4336_v56 = vmax.f32 %v3759_v49, 0.0 }
 0x312   : > { %v9906_v8 = vpack.c.bf16 %v4338_v4, %v4337_v44  ;;  %8819 = vmatmul.mubr.msk.bf16.vlgmr.msra.gmra.mrb[0].mxu1 %vm2745_vm0, %v9660_v26 }
 0x313   : > { %v9910_v0 = vpack.c.bf16 %v4336_v56, %v4335_v15  ;;  %8822 = vmatprep.mubr.msk.bf16.mxu1 %vm2745_vm0, %v9672_v51 }
 0x315   : > { %v8712_v12 = vpop.f32.mrb[152].mxu1 }
 0x316   : > { %v3772_v29 = vpop.f32.mrb[153].mxu1  ;;  %v4341_v11 = vmax.f32 %v8712_v12, 0.0 }
 0x317   : > { %v8713_v3 = vpop.f32.mrb[154].mxu1  ;;  %v4339_v1 = vmax.f32 %v3772_v29, 0.0 }
 0x318   : > { %v4342_v18 = vmax.f32 %v8713_v3, 0.0  ;;  %v3775_v63 = vpop.f32.mrb[155].mxu1 }
 0x319   : > { %v4340_v28 = vmax.f32 %v3775_v63, 0.0 }
 0x31a   : > { %v9914_v60 = vpack.c.bf16 %v4342_v18, %v4341_v11  ;;  %8823 = vmatmul.mubr.msk.bf16.gmra.mrb[4].mxu1 %vm2745_vm0, %v9668_v48 }
 0x31b   : > { %v9918_v37 = vpack.c.bf16 %v4340_v28, %v4339_v1  ;;  %8826 = vmatprep.mubr.msk.bf16.mxu1 %vm2745_vm0, %v9680_v9 }
 0x31d   : > { %v8716_v26 = vpop.f32.mrb[156].mxu1 }
 0x31e   : > { %v3788_v51 = vpop.f32.mrb[157].mxu1  ;;  %v4345_v41 = vmax.f32 %v8716_v26, 0.0 }
 0x31f   : > { %v8717_v13 = vpop.f32.mrb[158].mxu1  ;;  %v4343_v4 = vmax.f32 %v3788_v51, 0.0 }
 0x320   : > { %v4346_v42 = vmax.f32 %v8717_v13, 0.0  ;;  %v3791_v44 = vpop.f32.mrb[159].mxu1 }
 0x321   : > { %v4344_v49 = vmax.f32 %v3791_v44, 0.0 }
 0x322   : > { %v9922_v15 = vpack.c.bf16 %v4346_v42, %v4345_v41  ;;  %8827 = vmatmul.mubr.msk.bf16.gmra.mrb[8].mxu1 %vm2745_vm0, %v9676_v6 }
 0x323   : > { %v9926_v56 = vpack.c.bf16 %v4344_v49, %v4343_v4  ;;  %8830 = vmatprep.mubr.msk.bf16.mxu1 %vm2745_vm0, %v9688_v33 }
 0x325   : > { %v8720_v48 = vpop.f32.mrb[160].mxu1 }
 0x326   : > { %v3804_v9 = vpop.f32.mrb[161].mxu1  ;;  %v4349_v29 = vmax.f32 %v8720_v48, 0.0 }
 0x327   : > { %v8721_v12 = vpop.f32.mrb[162].mxu1  ;;  %v4347_v18 = vmax.f32 %v3804_v9, 0.0 }
 0x328   : > { %v4350_v3 = vmax.f32 %v8721_v12, 0.0  ;;  %v3807_v11 = vpop.f32.mrb[163].mxu1 }
 0x329   : > { %v4348_v63 = vmax.f32 %v3807_v11, 0.0 }
 0x32a   : > { %v9930_v1 = vpack.c.bf16 %v4350_v3, %v4349_v29  ;;  %8831 = vmatmul.mubr.msk.bf16.gmra.mrb[12].mxu1 %vm2745_vm0, %v9684_v30 }
 0x32b   : > { %v9934_v28 = vpack.c.bf16 %v4348_v63, %v4347_v18  ;;  %8834 = vmatprep.mubr.msk.bf16.mxu1 %vm2745_vm0, %v9696_v57 }
 0x32d   : > { %v8724_v6 = vpop.f32.mrb[164].mxu1 }
 0x32e   : > { %v3820_v33 = vpop.f32.mrb[165].mxu1  ;;  %v4353_v51 = vmax.f32 %v8724_v6, 0.0 }
 0x32f   : > { %v8725_v26 = vpop.f32.mrb[166].mxu1  ;;  %v4351_v42 = vmax.f32 %v3820_v33, 0.0 }
 0x330   : > { %v4354_v13 = vmax.f32 %v8725_v26, 0.0  ;;  %v3823_v41 = vpop.f32.mrb[167].mxu1 }
 0x331   : > { %v4352_v44 = vmax.f32 %v3823_v41, 0.0 }
 0x332   : > { %v9938_v4 = vpack.c.bf16 %v4354_v13, %v4353_v51  ;;  %8835 = vmatmul.mubr.msk.bf16.gmra.mrb[16].mxu1 %vm2745_vm0, %v9692_v54 }
 0x333   : > { %v9942_v49 = vpack.c.bf16 %v4352_v44, %v4351_v42  ;;  %8838 = vmatprep.mubr.msk.bf16.mxu1 %vm2745_vm0, %v9704_v17 }
 0x335   : > { %v8728_v30 = vpop.f32.mrb[168].mxu1 }
 0x336   : > { %v3836_v57 = vpop.f32.mrb[169].mxu1  ;;  %v4357_v9 = vmax.f32 %v8728_v30, 0.0 }
 0x337   : > { %v8729_v48 = vpop.f32.mrb[170].mxu1  ;;  %v4355_v3 = vmax.f32 %v3836_v57, 0.0 }
 0x338   : > { %v4358_v12 = vmax.f32 %v8729_v48, 0.0  ;;  %v3839_v29 = vpop.f32.mrb[171].mxu1 }
 0x339   : > { %v4356_v11 = vmax.f32 %v3839_v29, 0.0 }
 0x33a   : > { %v9946_v18 = vpack.c.bf16 %v4358_v12, %v4357_v9  ;;  %8839 = vmatmul.mubr.msk.bf16.gmra.mrb[20].mxu1 %vm2745_vm0, %v9700_v14 }
 0x33b   : > { %v9950_v63 = vpack.c.bf16 %v4356_v11, %v4355_v3  ;;  %8842 = vmatprep.mubr.msk.bf16.mxu1 %vm2745_vm0, %v9712_v43 }
 0x33d   : > { %v8732_v54 = vpop.f32.mrb[172].mxu1 }
 0x33e   : > { %v3852_v17 = vpop.f32.mrb[173].mxu1  ;;  %v4361_v33 = vmax.f32 %v8732_v54, 0.0 }
 0x33f   : > { %v8733_v6 = vpop.f32.mrb[174].mxu1  ;;  %v4359_v13 = vmax.f32 %v3852_v17, 0.0 }
 0x340   : > { %v4362_v26 = vmax.f32 %v8733_v6, 0.0  ;;  %v3855_v51 = vpop.f32.mrb[175].mxu1 }
 0x341   : > { %v4360_v41 = vmax.f32 %v3855_v51, 0.0 }
 0x342   : > { %v9954_v42 = vpack.c.bf16 %v4362_v26, %v4361_v33  ;;  %8843 = vmatmul.mubr.msk.bf16.gmra.mrb[24].mxu1 %vm2745_vm0, %v9708_v40 }
 0x343   : > { %v9958_v44 = vpack.c.bf16 %v4360_v41, %v4359_v13  ;;  %8846 = vmatprep.mubr.msk.bf16.mxu1 %vm2745_vm0, %v9720_v5 }
 0x345   : > { %v8736_v14 = vpop.f32.mrb[176].mxu1 }
 0x346   : > { %v3868_v43 = vpop.f32.mrb[177].mxu1  ;;  %v4365_v57 = vmax.f32 %v8736_v14, 0.0 }
 0x347   : > { %v8737_v30 = vpop.f32.mrb[178].mxu1  ;;  %v4363_v12 = vmax.f32 %v3868_v43, 0.0 }
 0x348   : > { %v4366_v48 = vmax.f32 %v8737_v30, 0.0  ;;  %v3871_v9 = vpop.f32.mrb[179].mxu1 }
 0x349   : > { %v4364_v29 = vmax.f32 %v3871_v9, 0.0 }
 0x34a   : > { %v9962_v3 = vpack.c.bf16 %v4366_v48, %v4365_v57  ;;  %8847 = vmatmul.mubr.msk.bf16.gmra.mrb[28].mxu1 %vm2745_vm0, %v9716_v2 }
 0x34b   : > { %v9966_v11 = vpack.c.bf16 %v4364_v29, %v4363_v12  ;;  %8850 = vmatprep.mubr.msk.bf16.mxu1 %vm2745_vm0, %v9728_v35 }
 0x34d   : > { %v8740_v40 = vpop.f32.mrb[180].mxu1 }
 0x34e   : > { %v3884_v5 = vpop.f32.mrb[181].mxu1  ;;  %v4369_v17 = vmax.f32 %v8740_v40, 0.0 }
 0x34f   : > { %v8741_v54 = vpop.f32.mrb[182].mxu1  ;;  %v4367_v26 = vmax.f32 %v3884_v5, 0.0 }
 0x350   : > { %v4370_v6 = vmax.f32 %v8741_v54, 0.0  ;;  %v3887_v33 = vpop.f32.mrb[183].mxu1 }
 0x351   : > { %v4368_v51 = vmax.f32 %v3887_v33, 0.0 }
 0x352   : > { %v9970_v13 = vpack.c.bf16 %v4370_v6, %v4369_v17  ;;  %8851 = vmatmul.mubr.msk.bf16.gmra.mrb[32].mxu1 %vm2745_vm0, %v9724_v31 }
 0x353   : > { %v9974_v41 = vpack.c.bf16 %v4368_v51, %v4367_v26  ;;  %8854 = vmatprep.mubr.msk.bf16.mxu1 %vm2745_vm0, %v9734_v61 }
 0x355   : > { %v8744_v2 = vpop.f32.mrb[184].mxu1 }
 0x356   : > { %v3900_v35 = vpop.f32.mrb[185].mxu1  ;;  %v4373_v43 = vmax.f32 %v8744_v2, 0.0 }
 0x357   : > { %v8745_v14 = vpop.f32.mrb[186].mxu1  ;;  %v4371_v48 = vmax.f32 %v3900_v35, 0.0 }
 0x358   : > { %v4374_v30 = vmax.f32 %v8745_v14, 0.0  ;;  %v3903_v57 = vpop.f32.mrb[187].mxu1 }
 0x359   : > { %v4372_v9 = vmax.f32 %v3903_v57, 0.0 }
 0x35a   : > { %v9978_v12 = vpack.c.bf16 %v4374_v30, %v4373_v43  ;;  %8855 = vmatmul.mubr.msk.bf16.gmra.mrb[36].mxu1 %vm2745_vm0, %v9731_v59 }
 0x35b   : > { %v9982_v29 = vpack.c.bf16 %v4372_v9, %v4371_v48  ;;  %8858 = vmatprep.mubr.msk.bf16.mxu1 %vm2745_vm0, %v9740_v23 }
 0x35d   : > { %v8748_v31 = vpop.f32.mrb[188].mxu1 }
 0x35e   : > { %v3916_v61 = vpop.f32.mrb[189].mxu1  ;;  %v4377_v5 = vmax.f32 %v8748_v31, 0.0 }
 0x35f   : > { %v8749_v40 = vpop.f32.mrb[190].mxu1  ;;  %v4375_v6 = vmax.f32 %v3916_v61, 0.0 }
 0x360   : > { %v4378_v54 = vmax.f32 %v8749_v40, 0.0  ;;  %v3919_v17 = vpop.f32.mrb[191].mxu1 }
 0x361   : > { %v4376_v33 = vmax.f32 %v3919_v17, 0.0 }
 0x362   : > { %v9986_v26 = vpack.c.bf16 %v4378_v54, %v4377_v5  ;;  %8859 = vmatmul.mubr.msk.bf16.gmra.mrb[40].mxu1 %vm2745_vm0, %v9737_v21 }
 0x363   : > { %v9990_v51 = vpack.c.bf16 %v4376_v33, %v4375_v6  ;;  %8862 = vmatprep.mubr.msk.bf16.mxu1 %vm2745_vm0, %v9746_v53 }
 0x365   : > { %v8752_v59 = vpop.f32.mrb[192].mxu1 }
 0x366   : > { %v3932_v23 = vpop.f32.mrb[193].mxu1  ;;  %v4381_v35 = vmax.f32 %v8752_v59, 0.0 }
 0x367   : > { %v8753_v2 = vpop.f32.mrb[194].mxu1  ;;  %v4379_v30 = vmax.f32 %v3932_v23, 0.0 }
 0x368   : > { %v4382_v14 = vmax.f32 %v8753_v2, 0.0  ;;  %v3935_v43 = vpop.f32.mrb[195].mxu1 }
 0x369   : > { %v4380_v57 = vmax.f32 %v3935_v43, 0.0 }
 0x36a   : > { %v9994_v48 = vpack.c.bf16 %v4382_v14, %v4381_v35  ;;  %8863 = vmatmul.mubr.msk.bf16.gmra.mrb[44].mxu1 %vm2745_vm0, %v9743_v50 }
 0x36b   : > { %v9998_v9 = vpack.c.bf16 %v4380_v57, %v4379_v30  ;;  %8866 = vmatprep.mubr.msk.bf16.mxu1 %vm2745_vm0, %v9752_v19 }
 0x36d   : > { %v8756_v21 = vpop.f32.mrb[196].mxu1 }
 0x36e   : > { %v3948_v53 = vpop.f32.mrb[197].mxu1  ;;  %v4385_v61 = vmax.f32 %v8756_v21, 0.0 }
 0x36f   : > { %v8757_v31 = vpop.f32.mrb[198].mxu1  ;;  %v4383_v54 = vmax.f32 %v3948_v53, 0.0 }
 0x370   : > { %v4386_v40 = vmax.f32 %v8757_v31, 0.0  ;;  %v3951_v5 = vpop.f32.mrb[199].mxu1 }
 0x371   : > { %v4384_v17 = vmax.f32 %v3951_v5, 0.0 }
 0x372   : > { %v10002_v6 = vpack.c.bf16 %v4386_v40, %v4385_v61  ;;  %8867 = vmatmul.mubr.msk.bf16.gmra.mrb[48].mxu1 %vm2745_vm0, %v9749_v16 }
 0x373   : > { %v10006_v33 = vpack.c.bf16 %v4384_v17, %v4383_v54  ;;  %8870 = vmatprep.mubr.msk.bf16.mxu1 %vm2745_vm0, %v9758_v52 }
 0x375   : > { %v8760_v50 = vpop.f32.mrb[200].mxu1 }
 0x376   : > { %v3964_v19 = vpop.f32.mrb[201].mxu1  ;;  %v4389_v23 = vmax.f32 %v8760_v50, 0.0 }
 0x377   : > { %v8761_v59 = vpop.f32.mrb[202].mxu1  ;;  %v4387_v14 = vmax.f32 %v3964_v19, 0.0 }
 0x378   : > { %v4390_v2 = vmax.f32 %v8761_v59, 0.0  ;;  %v3967_v35 = vpop.f32.mrb[203].mxu1 }
 0x379   : > { %v4388_v43 = vmax.f32 %v3967_v35, 0.0 }
 0x37a   : > { %v10010_v30 = vpack.c.bf16 %v4390_v2, %v4389_v23  ;;  %8871 = vmatmul.mubr.msk.bf16.gmra.mrb[52].mxu1 %vm2745_vm0, %v9755_v47 }
 0x37b   : > { %v10014_v57 = vpack.c.bf16 %v4388_v43, %v4387_v14  ;;  %8874 = vmatprep.mubr.msk.bf16.mxu1 %vm2745_vm0, %v9767_v24 }
 0x37d   : > { %v8764_v16 = vpop.f32.mrb[204].mxu1 }
 0x37e   : > { %v3980_v52 = vpop.f32.mrb[205].mxu1  ;;  %v4393_v53 = vmax.f32 %v8764_v16, 0.0 }
 0x37f   : > { %v8765_v21 = vpop.f32.mrb[206].mxu1  ;;  %v4391_v40 = vmax.f32 %v3980_v52, 0.0 }
 0x380   : > { %v4394_v31 = vmax.f32 %v8765_v21, 0.0  ;;  %v3983_v61 = vpop.f32.mrb[207].mxu1 }
 0x381   : > { %v4392_v5 = vmax.f32 %v3983_v61, 0.0 }
 0x382   : > { %v10018_v54 = vpack.c.bf16 %v4394_v31, %v4393_v53  ;;  %8875 = vmatmul.mubr.msk.bf16.gmra.mrb[56].mxu1 %vm2745_vm0, %v9764_v20 }
 0x383   : > { %v10022_v17 = vpack.c.bf16 %v4392_v5, %v4391_v40  ;;  %8878 = vmatprep.mubr.msk.bf16.mxu1 %vm2745_vm0, %v9773_v62 }
 0x385   : > { %v8768_v47 = vpop.f32.mrb[208].mxu1 }
 0x386   : > { %v3996_v24 = vpop.f32.mrb[209].mxu1  ;;  %v4397_v19 = vmax.f32 %v8768_v47, 0.0 }
 0x387   : > { %v8769_v50 = vpop.f32.mrb[210].mxu1  ;;  %v4395_v2 = vmax.f32 %v3996_v24, 0.0 }
 0x388   : > { %v4398_v59 = vmax.f32 %v8769_v50, 0.0  ;;  %v3999_v23 = vpop.f32.mrb[211].mxu1 }
 0x389   : > { %v4396_v35 = vmax.f32 %v3999_v23, 0.0 }
 0x38a   : > { %v10026_v14 = vpack.c.bf16 %v4398_v59, %v4397_v19  ;;  %8879 = vmatmul.mubr.msk.bf16.gmra.mrb[60].mxu1 %vm2745_vm0, %v9770_v58 }
 0x38b   : > { %v10030_v43 = vpack.c.bf16 %v4396_v35, %v4395_v2  ;;  %8882 = vmatprep.mubr.msk.bf16.mxu1 %vm2745_vm0, %v9779_v36 }
 0x38d   : > { %v8772_v20 = vpop.f32.mrb[212].mxu1 }
 0x38e   : > { %v4012_v62 = vpop.f32.mrb[213].mxu1  ;;  %v4401_v52 = vmax.f32 %v8772_v20, 0.0 }
 0x38f   : > { %v8773_v16 = vpop.f32.mrb[214].mxu1  ;;  %v4399_v31 = vmax.f32 %v4012_v62, 0.0 }
 0x390   : > { %v4402_v21 = vmax.f32 %v8773_v16, 0.0  ;;  %v4015_v53 = vpop.f32.mrb[215].mxu1 }
 0x391   : > { %v4400_v61 = vmax.f32 %v4015_v53, 0.0 }
 0x392   : > { %v10034_v40 = vpack.c.bf16 %v4402_v21, %v4401_v52  ;;  %8883 = vmatmul.mubr.msk.bf16.gmra.mrb[64].mxu1 %vm2745_vm0, %v9776_v32 }
 0x393   : > { %v10038_v5 = vpack.c.bf16 %v4400_v61, %v4399_v31  ;;  %8886 = vmatprep.mubr.msk.bf16.mxu1 %vm2745_vm0, %v9785_v10 }
 0x395   : > { %v8776_v58 = vpop.f32.mrb[216].mxu1 }
 0x396   : > { %v4028_v36 = vpop.f32.mrb[217].mxu1  ;;  %v4405_v24 = vmax.f32 %v8776_v58, 0.0 }
 0x397   : > { %v8777_v47 = vpop.f32.mrb[218].mxu1  ;;  %v4403_v59 = vmax.f32 %v4028_v36, 0.0 }
 0x398   : > { %v4406_v50 = vmax.f32 %v8777_v47, 0.0  ;;  %v4031_v19 = vpop.f32.mrb[219].mxu1 }
 0x399   : > { %v4404_v23 = vmax.f32 %v4031_v19, 0.0 }
 0x39a   : > { %v10042_v2 = vpack.c.bf16 %v4406_v50, %v4405_v24  ;;  %8887 = vmatmul.mubr.msk.bf16.gmra.mrb[68].mxu1 %vm2745_vm0, %v9782_v7 }
 0x39b   : > { %v10046_v35 = vpack.c.bf16 %v4404_v23, %v4403_v59  ;;  %8890 = vmatprep.mubr.msk.bf16.mxu1 %vm2745_vm0, %v9791_v55 }
 0x39c   : > { %10751 = vst [vmem:[#allocation34_spill] sm:$0xff] %v10042_v2 }
 0x39d   : > { %v8780_v32 = vpop.f32.mrb[220].mxu1 }
 0x39e   : > { %v4044_v10 = vpop.f32.mrb[221].mxu1  ;;  %v4409_v62 = vmax.f32 %v8780_v32, 0.0 }
 0x39f   : > { %v8781_v20 = vpop.f32.mrb[222].mxu1  ;;  %v4407_v21 = vmax.f32 %v4044_v10, 0.0 }
 0x3a0   : > { %v4410_v16 = vmax.f32 %v8781_v20, 0.0  ;;  %v4047_v52 = vpop.f32.mrb[223].mxu1 }
 0x3a1   : > { %v4408_v53 = vmax.f32 %v4047_v52, 0.0 }
 0x3a2   : > { %v10050_v31 = vpack.c.bf16 %v4410_v16, %v4409_v62  ;;  %8891 = vmatmul.mubr.msk.bf16.gmra.mrb[72].mxu1 %vm2745_vm0, %v9788_v46 }
 0x3a3   : > { %v10054_v61 = vpack.c.bf16 %v4408_v53, %v4407_v21  ;;  %8894 = vmatprep.mubr.msk.bf16.mxu1 %vm2745_vm0, %v9797_v38  ;;  %v10757_v53 = vld [vmem:[#allocation5_spill] sm:$0xff] }
 0x3a4   : > { %10752 = vst [vmem:[#allocation35_spill] sm:$0xff] %v10050_v31 }
 0x3a5   : > { %10753 = vst [vmem:[#allocation36_spill] sm:$0xff] %v10054_v61  ;;  %v8784_v7 = vpop.f32.mrb[224].mxu1 }
 0x3a6   : > { %v4060_v55 = vpop.f32.mrb[225].mxu1  ;;  %v4413_v36 = vmax.f32 %v8784_v7, 0.0 }
 0x3a7   : > { %v8785_v58 = vpop.f32.mrb[226].mxu1  ;;  %v4411_v50 = vmax.f32 %v4060_v55, 0.0 }
 0x3a8   : > { %v4414_v47 = vmax.f32 %v8785_v58, 0.0  ;;  %v4063_v24 = vpop.f32.mrb[227].mxu1 }
 0x3a9   : > { %v4412_v19 = vmax.f32 %v4063_v24, 0.0 }
 0x3aa   : > { %v10058_v59 = vpack.c.bf16 %v4414_v47, %v4413_v36  ;;  %8895 = vmatmul.mubr.msk.bf16.gmra.mrb[76].mxu1 %vm2745_vm0, %v9794_v27  ;;  %v10759_v27 = vld [vmem:[#allocation7_spill] sm:$0xff] }
 0x3ab   : > { %v10062_v23 = vpack.c.bf16 %v4412_v19, %v4411_v50  ;;  %8898 = vmatprep.mubr.msk.bf16.mxu1 %vm2745_vm0, %v9803_v22 }
 0x3ac   : > { %10754 = vst [vmem:[#allocation37_spill] sm:$0xff] %v10058_v59 }
 0x3ad   : > { %10755 = vst [vmem:[#allocation38_spill] sm:$0xff] %v10062_v23  ;;  %v8788_v46 = vpop.f32.mrb[228].mxu1 }
 0x3ae   : > { %v4076_v38 = vpop.f32.mrb[229].mxu1  ;;  %v4417_v10 = vmax.f32 %v8788_v46, 0.0 }
 0x3af   : > { %v8789_v32 = vpop.f32.mrb[230].mxu1  ;;  %v4415_v16 = vmax.f32 %v4076_v38, 0.0  ;;  %v10761_v38 = vld [vmem:[#allocation6_spill] sm:$0xff] }
 0x3b0   : > { %v4418_v20 = vmax.f32 %v8789_v32, 0.0  ;;  %v4079_v62 = vpop.f32.mrb[231].mxu1 }
 0x3b1   : > { %v4416_v52 = vmax.f32 %v4079_v62, 0.0 }
 0x3b2   : > { %v10066_v21 = vpack.c.bf16 %v4418_v20, %v4417_v10  ;;  %8899 = vmatmul.mubr.msk.bf16.gmra.mrb[80].mxu1 %vm2745_vm0, %v10757_v53  ;;  %v10763_v10 = vld [vmem:[#allocation9_spill] sm:$0xff] }
 0x3b3   : > { %v10070_v7 = vpack.c.bf16 %v4416_v52, %v4415_v16  ;;  %8902 = vmatprep.mubr.msk.bf16.mxu1 %vm2745_vm0, %v10759_v27 }
 0x3b4   : > { %10756 = vst [vmem:[#allocation39_spill] sm:$0xff] %v10066_v21 }
 0x3b5   : > { %10758 = vst [vmem:[#allocation5_spill] sm:$0xff] %v10070_v7  ;;  %v8792_v55 = vpop.f32.mrb[232].mxu1 }
 0x3b6   : > { %v4092_v22 = vpop.f32.mrb[233].mxu1  ;;  %v4421_v36 = vmax.f32 %v8792_v55, 0.0 }
 0x3b7   : > { %v8793_v58 = vpop.f32.mrb[234].mxu1  ;;  %v4419_v50 = vmax.f32 %v4092_v22, 0.0 }
 0x3b8   : > { %v4422_v47 = vmax.f32 %v8793_v58, 0.0  ;;  %v4095_v24 = vpop.f32.mrb[235].mxu1 }
 0x3b9   : > { %v4420_v19 = vmax.f32 %v4095_v24, 0.0  ;;  %v10767_v24 = vld [vmem:[#allocation11_spill] sm:$0xff] }
 0x3ba   : > { %v10074_v46 = vpack.c.bf16 %v4422_v47, %v4421_v36  ;;  %8903 = vmatmul.mubr.msk.bf16.gmra.mrb[84].mxu1 %vm2745_vm0, %v10761_v38  ;;  %v10765_v36 = vld [vmem:[#allocation8_spill] sm:$0xff] }
 0x3bb   : > { %v10078_v32 = vpack.c.bf16 %v4420_v19, %v4419_v50  ;;  %8906 = vmatprep.mubr.msk.bf16.mxu1 %vm2745_vm0, %v10763_v10 }
 0x3bc   : > { %10760 = vst [vmem:[#allocation7_spill] sm:$0xff] %v10074_v46 }
 0x3bd   : > { %10762 = vst [vmem:[#allocation6_spill] sm:$0xff] %v10078_v32  ;;  %v8796_v20 = vpop.f32.mrb[236].mxu1 }
 0x3be   : > { %v4108_v62 = vpop.f32.mrb[237].mxu1  ;;  %v4425_v52 = vmax.f32 %v8796_v20, 0.0 }
 0x3bf   : > { %v8797_v16 = vpop.f32.mrb[238].mxu1  ;;  %v4423_v55 = vmax.f32 %v4108_v62, 0.0 }
 0x3c0   : > { %v4426_v53 = vmax.f32 %v8797_v16, 0.0  ;;  %v4111_v27 = vpop.f32.mrb[239].mxu1 }
 0x3c1   : > { %v4424_v58 = vmax.f32 %v4111_v27, 0.0  ;;  %v10771_v27 = vld [vmem:[#allocation13_spill] sm:$0xff] }
 0x3c2   : > { %v10082_v22 = vpack.c.bf16 %v4426_v53, %v4425_v52  ;;  %8907 = vmatmul.mubr.msk.bf16.gmra.mrb[88].mxu1 %vm2745_vm0, %v10765_v36  ;;  %v10769_v52 = vld [vmem:[#allocation10_spill] sm:$0xff] }
 0x3c3   : > { %v10086_v47 = vpack.c.bf16 %v4424_v58, %v4423_v55  ;;  %8910 = vmatprep.mubr.msk.bf16.mxu1 %vm2745_vm0, %v10767_v24  ;;  %v10101_v55 = vld [vmem:[%s10718_s3] sm:$0x1] }
 0x3c4   : > { %10764 = vst [vmem:[#allocation9_spill] sm:$0xff] %v10082_v22  ;;  %8154 = vmatprep.mubr.msk.bf16.mxu0 %vm2745_vm0, %v10101_v55 }
 0x3c5   : > { %10766 = vst [vmem:[#allocation8_spill] sm:$0xff] %v10086_v47  ;;  %v8800_v50 = vpop.f32.mrb[240].mxu1 }
 0x3c6   : > { %v4124_v19 = vpop.f32.mrb[241].mxu1  ;;  %v4429_v10 = vmax.f32 %v8800_v50, 0.0 }
 0x3c7   : > { %v8801_v38 = vpop.f32.mrb[242].mxu1  ;;  %v4427_v16 = vmax.f32 %v4124_v19, 0.0 }
 0x3c8   : > { %v4430_v46 = vmax.f32 %v8801_v38, 0.0  ;;  %v4127_v20 = vpop.f32.mrb[243].mxu1 }
 0x3c9   : > { %v4428_v32 = vmax.f32 %v4127_v20, 0.0  ;;  %v10773_v20 = vld [vmem:[#allocation12_spill] sm:$0xff] }
 0x3ca   : > { %v10090_v62 = vpack.c.bf16 %v4430_v46, %v4429_v10  ;;  %8911 = vmatmul.mubr.msk.bf16.gmra.mrb[92].mxu1 %vm2745_vm0, %v10769_v52  ;;  %v10775_v52 = vld [vmem:[#allocation15_spill] sm:$0xff] }
 0x3cb   : > { %v10094_v53 = vpack.c.bf16 %v4428_v32, %v4427_v16  ;;  %8914 = vmatprep.mubr.msk.bf16.mxu1 %vm2745_vm0, %v10771_v27 }
 0x3cc   : > { %10768 = vst [vmem:[#allocation11_spill] sm:$0xff] %v10090_v62 }
 0x3cd   : > { %10770 = vst [vmem:[#allocation10_spill] sm:$0xff] %v10094_v53  ;;  %v8804_v58 = vpop.f32.mrb[244].mxu1 }
 0x3ce   : > { %v4140_v36 = vpop.f32.mrb[245].mxu1  ;;  %v4433_v24 = vmax.f32 %v8804_v58, 0.0 }
 0x3cf   : > { %v8805_v46 = vpop.f32.mrb[246].mxu1  ;;  %v4431_v38 = vmax.f32 %v4140_v36, 0.0 }
 0x3d0   : > { %v4434_v50 = vmax.f32 %v8805_v46, 0.0  ;;  %v4143_v19 = vpop.f32.mrb[247].mxu1 }
 0x3d1   : > { %v4432_v32 = vmax.f32 %v4143_v19, 0.0  ;;  %v10779_v19 = vld [vmem:[#allocation17_spill] sm:$0xff] }
 0x3d2   : > { %v10105_v10 = vpack.c.bf16 %v4434_v50, %v4433_v24  ;;  %8915 = vmatmul.mubr.msk.bf16.gmra.mrb[96].mxu1 %vm2745_vm0, %v10773_v20  ;;  %v10777_v24 = vld [vmem:[#allocation14_spill] sm:$0xff] }
 0x3d3   : > { %v10109_v16 = vpack.c.bf16 %v4432_v32, %v4431_v38  ;;  %8918 = vmatprep.mubr.msk.bf16.mxu1 %vm2745_vm0, %v10775_v52 }
 0x3d4   : > { %10772 = vst [vmem:[#allocation13_spill] sm:$0xff] %v10105_v10 }
 0x3d5   : > { %10774 = vst [vmem:[#allocation12_spill] sm:$0xff] %v10109_v16  ;;  %v8808_v27 = vpop.f32.mrb[248].mxu1 }
 0x3d6   : > { %v4156_v62 = vpop.f32.mrb[249].mxu1  ;;  %v4437_v22 = vmax.f32 %v8808_v27, 0.0 }
 0x3d7   : > { %v8809_v53 = vpop.f32.mrb[250].mxu1  ;;  %v4435_v46 = vmax.f32 %v4156_v62, 0.0 }
 0x3d8   : > { %v4438_v47 = vmax.f32 %v8809_v53, 0.0  ;;  %v4159_v58 = vpop.f32.mrb[251].mxu1 }
 0x3d9   : > { %v4436_v21 = vmax.f32 %v4159_v58, 0.0 }
 0x3da   : > { %v10113_v36 = vpack.c.bf16 %v4438_v47, %v4437_v22  ;;  %8919 = vmatmul.mubr.msk.bf16.gmra.mrb[100].mxu1 %vm2745_vm0, %v10777_v24  ;;  %v10781_v22 = vld [vmem:[#allocation16_spill] sm:$0xff] }
 0x3db   : > { %v10117_v50 = vpack.c.bf16 %v4436_v21, %v4435_v46  ;;  %8922 = vmatprep.mubr.msk.bf16.mxu1 %vm2745_vm0, %v10779_v19  ;;  %v10783_v21 = vld [vmem:[#allocation19_spill] sm:$0xff] }
 0x3dc   : > { %10776 = vst [vmem:[#allocation15_spill] sm:$0xff] %v10113_v36 }
 0x3dd   : > { %10778 = vst [vmem:[#allocation14_spill] sm:$0xff] %v10117_v50  ;;  %v8812_v38 = vpop.f32.mrb[252].mxu1 }
 0x3de   : > { %v4172_v32 = vpop.f32.mrb[253].mxu1  ;;  %v4441_v52 = vmax.f32 %v8812_v38, 0.0 }
 0x3df   : > { %v8813_v20 = vpop.f32.mrb[254].mxu1  ;;  %v4439_v53 = vmax.f32 %v4172_v32, 0.0 }
 0x3e0   : > { %v4442_v10 = vmax.f32 %v8813_v20, 0.0  ;;  %v4175_v27 = vpop.f32.mrb[255].mxu1 }
 0x3e1   : > { %v4440_v16 = vmax.f32 %v4175_v27, 0.0  ;;  %v10785_v27 = vld [vmem:[#allocation21_spill] sm:$0xff] }
 0x3e2   : > { %v10121_v62 = vpack.c.bf16 %v4442_v10, %v4441_v52  ;;  %8923 = vmatmul.mubr.msk.bf16.gmra.mrb[104].mxu1 %vm2745_vm0, %v10781_v22  ;;  %v10784_v10 = vld [vmem:[#allocation18_spill] sm:$0xff] }
 0x3e3   : > { %v10125_v47 = vpack.c.bf16 %v4440_v16, %v4439_v53  ;;  %8926 = vmatprep.mubr.msk.bf16.mxu1 %vm2745_vm0, %v10783_v21 }
 0x3e4   : > { %10780 = vst [vmem:[#allocation17_spill] sm:$0xff] %v10121_v62 }
 0x3e5   : > { %10782 = vst [vmem:[#allocation16_spill] sm:$0xff] %v10125_v47  ;;  %v8820_v58 = vpop.f32.mrb[0].mxu1 }
 0x3e6   : > { %v5006_v46 = vpop.f32.mrb[1].mxu1  ;;  %v6031_v19 = vmax.f32 %v8820_v58, 0.0 }
 0x3e7   : > { %v8821_v24 = vpop.f32.mrb[2].mxu1  ;;  %v6029_v20 = vmax.f32 %v5006_v46, 0.0  ;;  %v10786_v46 = vld [vmem:[#allocation20_spill] sm:$0xff] }
 0x3e8   : > { %v6032_v36 = vmax.f32 %v8821_v24, 0.0  ;;  %v5009_v38 = vpop.f32.mrb[3].mxu1 }
 0x3e9   : > { %v6030_v50 = vmax.f32 %v5009_v38, 0.0 }
 0x3ea   : > { %v10129_v32 = vpack.c.bf16 %v6032_v36, %v6031_v19  ;;  %8927 = vmatmul.mubr.msk.bf16.gmra.mrb[108].mxu1 %vm2745_vm0, %v10784_v10  ;;  %v10787_v19 = vld [vmem:[#allocation23_spill] sm:$0xff] }
 0x3eb   : > { %v6285_v52 = vpack.c.bf16 %v6030_v50, %v6029_v20  ;;  %8930 = vmatprep.mubr.msk.bf16.mxu1 %vm2745_vm0, %v10785_v27 }
 0x3ed   : > { %v8824_v16 = vpop.f32.mrb[4].mxu1 }
 0x3ee   : > { %v5022_v53 = vpop.f32.mrb[5].mxu1  ;;  %v6035_v21 = vmax.f32 %v8824_v16, 0.0 }
 0x3ef   : > { %v8825_v22 = vpop.f32.mrb[6].mxu1  ;;  %v6033_v58 = vmax.f32 %v5022_v53, 0.0 }
 0x3f0   : > { %v6036_v62 = vmax.f32 %v8825_v22, 0.0  ;;  %v5025_v47 = vpop.f32.mrb[7].mxu1 }
 0x3f1   : > { %v6034_v24 = vmax.f32 %v5025_v47, 0.0 }
 0x3f2   : > { %v10135_v7 = vpack.c.bf16 %v6036_v62, %v6035_v21  ;;  %8931 = vmatmul.mubr.msk.bf16.gmra.mrb[112].mxu1 %vm2745_vm0, %v10786_v46  ;;  %v10788_v62 = vld [vmem:[#allocation22_spill] sm:$0xff]  ;;  %v10789_v21 = vld [vmem:[#allocation25_spill] sm:$0xff] }
 0x3f3   : > { %v10139_v36 = vpack.c.bf16 %v6034_v24, %v6033_v58  ;;  %8934 = vmatprep.mubr.msk.bf16.mxu1 %vm2745_vm0, %v10787_v19 }
 0x3f5   : > { %v8828_v50 = vpop.f32.mrb[8].mxu1 }
 0x3f6   : > { %v5038_v38 = vpop.f32.mrb[9].mxu1  ;;  %v6039_v10 = vmax.f32 %v8828_v50, 0.0 }
 0x3f7   : > { %v8829_v20 = vpop.f32.mrb[10].mxu1  ;;  %v6037_v22 = vmax.f32 %v5038_v38, 0.0 }
 0x3f8   : > { %v6040_v27 = vmax.f32 %v8829_v20, 0.0  ;;  %v5041_v16 = vpop.f32.mrb[11].mxu1 }
 0x3f9   : > { %v6038_v59 = vmax.f32 %v5041_v16, 0.0 }
 0x3fa   : > { %v10143_v53 = vpack.c.bf16 %v6040_v27, %v6039_v10  ;;  %8935 = vmatmul.mubr.msk.bf16.gmra.mrb[116].mxu1 %vm2745_vm0, %v10788_v62  ;;  %v10790_v10 = vld [vmem:[#allocation24_spill] sm:$0xff] }
 0x3fb   : > { %v10147_v47 = vpack.c.bf16 %v6038_v59, %v6037_v22  ;;  %8938 = vmatprep.mubr.msk.bf16.mxu1 %vm2745_vm0, %v10789_v21  ;;  %v10791_v59 = vld [vmem:[#allocation27_spill] sm:$0xff] }
 0x3fd   : > { %v8832_v58 = vpop.f32.mrb[12].mxu1 }
 0x3fe   : > { %v5054_v24 = vpop.f32.mrb[13].mxu1  ;;  %v6043_v19 = vmax.f32 %v8832_v58, 0.0 }
 0x3ff   : > { %v8833_v46 = vpop.f32.mrb[14].mxu1  ;;  %v6041_v20 = vmax.f32 %v5054_v24, 0.0 }
 0x400   : > { %v6044_v23 = vmax.f32 %v8833_v46, 0.0  ;;  %v5057_v50 = vpop.f32.mrb[15].mxu1 }
 0x401   : > { %v6042_v31 = vmax.f32 %v5057_v50, 0.0  ;;  %v10792_v50 = vld [vmem:[#allocation26_spill] sm:$0xff] }
 0x402   : > { %v10151_v38 = vpack.c.bf16 %v6044_v23, %v6043_v19  ;;  %8939 = vmatmul.mubr.msk.bf16.gmra.mrb[120].mxu1 %vm2745_vm0, %v10790_v10  ;;  %v10793_v19 = vld [vmem:[#allocation29_spill] sm:$0xff] }
 0x403   : > { %v10155_v27 = vpack.c.bf16 %v6042_v31, %v6041_v20  ;;  %8942 = vmatprep.mubr.msk.bf16.mxu1 %vm2745_vm0, %v10791_v59  ;;  %v6418_v20 = vsel %vm2745_vm0, %v6285_v52, 0  ;;  %v6421_v52 = vsel %vm2745_vm0, %v10129_v32, 0  ;;  %v6424_v32 = vsel %vm2745_vm0, %v10139_v36, 0 }
 0x404   : > { %v6427_v36 = vsel %vm2745_vm0, %v10135_v7, 0 }
 0x405   : > { %v8836_v16 = vpop.f32.mrb[16].mxu1 }
 0x406   : > { %v5070_v22 = vpop.f32.mrb[17].mxu1  ;;  %v6047_v21 = vmax.f32 %v8836_v16, 0.0 }
 0x407   : > { %v8837_v62 = vpop.f32.mrb[18].mxu1  ;;  %v6045_v46 = vmax.f32 %v5070_v22, 0.0 }
 0x408   : > { %v6048_v61 = vmax.f32 %v8837_v62, 0.0  ;;  %v5073_v58 = vpop.f32.mrb[19].mxu1 }
 0x409   : > { %v6046_v2 = vmax.f32 %v5073_v58, 0.0 }
 0x40a   : > { %v6294_v24 = vpack.c.bf16 %v6048_v61, %v6047_v21  ;;  %8943 = vmatmul.mubr.msk.bf16.gmra.mrb[124].mxu1 %vm2745_vm0, %v10792_v50  ;;  %v10795_v50 = vld [vmem:[#allocation31_spill] sm:$0xff] }
 0x40b   : > { %v6293_v23 = vpack.c.bf16 %v6046_v2, %v6045_v46  ;;  %8946 = vmatprep.mubr.msk.bf16.mxu1 %vm2745_vm0, %v10793_v19  ;;  %v10794_v2 = vld [vmem:[#allocation28_spill] sm:$0xff] }
 0x40d   : > { %v8840_v31 = vpop.f32.mrb[20].mxu1  ;;  %9074 = vmatprep.subr.msk.bf16.mxu0 %vm2745_vm0, %v6293_v23 }
 0x40e   : > { %v5086_v10 = vpop.f32.mrb[21].mxu1  ;;  %8139 = vmatpush3.bf16.xpose.msra.mxu0 %v6418_v20  ;;  %v6051_v16 = vmax.f32 %v8840_v31, 0.0 }
 0x40f   : > { %v8841_v59 = vpop.f32.mrb[22].mxu1  ;;  %9075 = vmatprep.subr.msk.bf16.mxu0 %vm2745_vm0, %v6294_v24  ;;  %v6049_v62 = vmax.f32 %v5086_v10, 0.0 }
 0x410   : > { %v6052_v22 = vmax.f32 %v8841_v59, 0.0  ;;  %v5089_v61 = vpop.f32.mrb[23].mxu1 }
 0x411   : > { %v6050_v21 = vmax.f32 %v5089_v61, 0.0  ;;  %v10796_v61 = vld [vmem:[#allocation30_spill] sm:$0xff] }
 0x412   : > { %v6296_v58 = vpack.c.bf16 %v6052_v22, %v6051_v16  ;;  %8947 = vmatmul.mubr.msk.bf16.gmra.mrb[128].mxu1 %vm2745_vm0, %v10794_v2 }
 0x413   : > { %v6295_v46 = vpack.c.bf16 %v6050_v21, %v6049_v62  ;;  %8950 = vmatprep.mubr.msk.bf16.mxu1 %vm2745_vm0, %v10795_v50 }
 0x415   : > { %v8844_v23 = vpop.f32.mrb[24].mxu1 }
 0x416   : > { %v5102_v19 = vpop.f32.mrb[25].mxu1  ;;  %8141 = vmatpush3.bf16.xpose.msra.mxu0 %v6421_v52  ;;  %v6055_v31 = vmax.f32 %v8844_v23, 0.0 }
 0x417   : > { %v8845_v24 = vpop.f32.mrb[26].mxu1  ;;  %9076 = vmatprep.subr.msk.bf16.mxu0 %vm2745_vm0, %v6295_v46  ;;  %v6053_v59 = vmax.f32 %v5102_v19, 0.0 }
 0x418   : > { %v6056_v20 = vmax.f32 %v8845_v24, 0.0  ;;  %v5105_v10 = vpop.f32.mrb[27].mxu1 }
 0x419   : > { %v6054_v16 = vmax.f32 %v5105_v10, 0.0 }
 0x41a   : > { %v6298_v22 = vpack.c.bf16 %v6056_v20, %v6055_v31  ;;  %8951 = vmatmul.mubr.msk.bf16.gmra.mrb[132].mxu1 %vm2745_vm0, %v10796_v61  ;;  %v10797_v20 = vld [vmem:[#allocation32_spill] sm:$0xff] }
 0x41b   : > { %v6297_v62 = vpack.c.bf16 %v6054_v16, %v6053_v59  ;;  %8954 = vmatprep.mubr.msk.bf16.mxu1 %vm2745_vm0, %v9890_v34 }
 0x41d   : > { %v8848_v21 = vpop.f32.mrb[28].mxu1 }
 0x41e   : > { %v5118_v2 = vpop.f32.mrb[29].mxu1  ;;  %8143 = vmatpush3.bf16.xpose.msra.mxu0 %v6424_v32  ;;  %v6059_v50 = vmax.f32 %v8848_v21, 0.0 }
 0x41f   : > { %v8849_v46 = vpop.f32.mrb[30].mxu1  ;;  %9077 = vmatprep.subr.msk.bf16.mxu0 %vm2745_vm0, %v6296_v58  ;;  %v6057_v19 = vmax.f32 %v5118_v2, 0.0 }
 0x420   : > { %v6060_v23 = vmax.f32 %v8849_v46, 0.0  ;;  %v5121_v52 = vpop.f32.mrb[31].mxu1 }
 0x421   : > { %v6058_v24 = vmax.f32 %v5121_v52, 0.0 }
 0x422   : > { %v6300_v31 = vpack.c.bf16 %v6060_v23, %v6059_v50  ;;  %8955 = vmatmul.mubr.msk.bf16.gmra.mrb[136].mxu1 %vm2745_vm0, %v10797_v20  ;;  %v10798_v50 = vld [vmem:[#allocation33_spill] sm:$0xff]  ;;  %v6430_v23 = vsel %vm2745_vm0, %v10147_v47, 0 }
 0x423   : > { %v6299_v10 = vpack.c.bf16 %v6058_v24, %v6057_v19  ;;  %8958 = vmatprep.mubr.msk.bf16.mxu1 %vm2745_vm0, %v9896_v25 }
 0x425   : > { %v8852_v34 = vpop.f32.mrb[32].mxu1 }
 0x426   : > { %v5134_v59 = vpop.f32.mrb[33].mxu1  ;;  %8145 = vmatpush3.bf16.xpose.msra.mxu0 %v6427_v36  ;;  %v6063_v16 = vmax.f32 %v8852_v34, 0.0 }
 0x427   : > { %v8853_v58 = vpop.f32.mrb[34].mxu1  ;;  %9078 = vmatprep.subr.msk.bf16.mxu0 %vm2745_vm0, %v6297_v62  ;;  %v6061_v32 = vmax.f32 %v5134_v59, 0.0 }
 0x428   : > { %v6064_v61 = vmax.f32 %v8853_v58, 0.0  ;;  %v5137_v21 = vpop.f32.mrb[35].mxu1  ;;  %v6433_v58 = vsel %vm2745_vm0, %v10143_v53, 0 }
 0x429   : > { %v6062_v2 = vmax.f32 %v5137_v21, 0.0 }
 0x42a   : > { %v10187_v46 = vpack.c.bf16 %v6064_v61, %v6063_v16  ;;  %8959 = vmatmul.mubr.msk.bf16.gmra.mrb[140].mxu1 %vm2745_vm0, %v10798_v50 }
 0x42b   : > { %v10191_v25 = vpack.c.bf16 %v6062_v2, %v6061_v32  ;;  %8962 = vmatprep.mubr.msk.bf16.mxu1 %vm2745_vm0, %v9902_v39 }
 0x42d   : > { %v8856_v7 = vpop.f32.mrb[36].mxu1 }
 0x42e   : > { %v5150_v62 = vpop.f32.mrb[37].mxu1  ;;  %8147 = vmatpush3.bf16.xpose.msra.mxu0 %v6430_v23  ;;  %v6067_v19 = vmax.f32 %v8856_v7, 0.0  ;;  %v6436_v7 = vsel %vm2745_vm0, %v10155_v27, 0 }
 0x42f   : > { %v8857_v52 = vpop.f32.mrb[38].mxu1  ;;  %9079 = vmatprep.subr.msk.bf16.mxu0 %vm2745_vm0, %v6298_v22  ;;  %v6065_v34 = vmax.f32 %v5150_v62, 0.0 }
 0x430   : > { %v6068_v24 = vmax.f32 %v8857_v52, 0.0  ;;  %v5153_v20 = vpop.f32.mrb[39].mxu1 }
 0x431   : > { %v6066_v36 = vmax.f32 %v5153_v20, 0.0 }
 0x432   : > { %v10198_v59 = vpack.c.bf16 %v6068_v24, %v6067_v19  ;;  %8963 = vmatmul.mubr.msk.bf16.gmra.mrb[144].mxu1 %vm2745_vm0, %v9899_v45 }
 0x433   : > { %v10202_v39 = vpack.c.bf16 %v6066_v36, %v6065_v34  ;;  %8966 = vmatprep.mubr.msk.bf16.mxu1 %vm2745_vm0, %v9910_v0  ;;  %v6439_v34 = vsel %vm2745_vm0, %v10151_v38, 0  ;;  %v6466_v38 = vsel %vm2745_vm0, %v10191_v25, 0 }
 0x435   : > { %v8860_v47 = vpop.f32.mrb[40].mxu1 }
 0x436   : > { %v5166_v22 = vpop.f32.mrb[41].mxu1  ;;  %8149 = vmatpush3.bf16.xpose.msra.mxu0 %v6433_v58  ;;  %v6071_v61 = vmax.f32 %v8860_v47, 0.0 }
 0x437   : > { %v8861_v16 = vpop.f32.mrb[42].mxu1  ;;  %9080 = vmatprep.subr.msk.bf16.mxu0 %vm2745_vm0, %v6299_v10  ;;  %v6069_v2 = vmax.f32 %v5166_v22, 0.0 }
 0x438   : > { %v6072_v21 = vmax.f32 %v8861_v16, 0.0  ;;  %v5169_v32 = vpop.f32.mrb[43].mxu1 }
 0x439   : > { %v6070_v50 = vmax.f32 %v5169_v32, 0.0 }
 0x43a   : > { %v10209_v45 = vpack.c.bf16 %v6072_v21, %v6071_v61  ;;  %8967 = vmatmul.mubr.msk.bf16.gmra.mrb[148].mxu1 %vm2745_vm0, %v9906_v8 }
 0x43b   : > { %v10213_v0 = vpack.c.bf16 %v6070_v50, %v6069_v2  ;;  %8970 = vmatprep.mubr.msk.bf16.mxu1 %vm2745_vm0, %v9918_v37 }
 0x43d   : > { %v8864_v53 = vpop.f32.mrb[44].mxu1 }
 0x43e   : > { %v5182_v10 = vpop.f32.mrb[45].mxu1  ;;  %8151 = vmatpush3.bf16.xpose.msra.mxu0 %v6436_v7  ;;  %v6075_v62 = vmax.f32 %v8864_v53, 0.0 }
 0x43f   : > { %v8865_v23 = vpop.f32.mrb[46].mxu1  ;;  %9081 = vmatprep.subr.msk.bf16.mxu0 %vm2745_vm0, %v6300_v31  ;;  %v6073_v24 = vmax.f32 %v5182_v10, 0.0 }
 0x440   : > { %v6076_v52 = vmax.f32 %v8865_v23, 0.0  ;;  %v5185_v19 = vpop.f32.mrb[47].mxu1 }
 0x441   : > { %v6074_v20 = vmax.f32 %v5185_v19, 0.0 }
 0x442   : > { %v10220_v8 = vpack.c.bf16 %v6076_v52, %v6075_v62  ;;  %8971 = vmatmul.mubr.msk.bf16.gmra.mrb[152].mxu1 %vm2745_vm0, %v9914_v60  ;;  %v6469_v62 = vsel %vm2745_vm0, %v10187_v46, 0  ;;  %v6472_v46 = vsel %vm2745_vm0, %v10202_v39, 0  ;;  %v6475_v39 = vsel %vm2745_vm0, %v10198_v59, 0 }
 0x443   : > { %v10224_v37 = vpack.c.bf16 %v6074_v20, %v6073_v24  ;;  %8974 = vmatprep.mubr.msk.bf16.mxu1 %vm2745_vm0, %v9926_v56  ;;  %v6478_v59 = vsel %vm2745_vm0, %v10213_v0, 0 }
 0x445   : > { %v8868_v27 = vpop.f32.mrb[48].mxu1 }
 0x446   : > { %v5198_v31 = vpop.f32.mrb[49].mxu1  ;;  %8153 = vmatpush3.bf16.xpose.msra.mxu0 %v6439_v34  ;;  %v6079_v47 = vmax.f32 %v8868_v27, 0.0 }
 0x447   : > { %v8869_v36 = vpop.f32.mrb[50].mxu1  ;;  %v6077_v16 = vmax.f32 %v5198_v31, 0.0 }
 0x448   : > { %v6080_v58 = vmax.f32 %v8869_v36, 0.0  ;;  %v5201_v22 = vpop.f32.mrb[51].mxu1 }
 0x449   : > { %v6078_v61 = vmax.f32 %v5201_v22, 0.0 }
 0x44a   : > { %v6310_v21 = vpack.c.bf16 %v6080_v58, %v6079_v47  ;;  %8975 = vmatmul.mubr.msk.bf16.gmra.mrb[156].mxu1 %vm2745_vm0, %v9922_v15 }
 0x44b   : > { %v6309_v60 = vpack.c.bf16 %v6078_v61, %v6077_v16  ;;  %8978 = vmatprep.mubr.msk.bf16.mxu1 %vm2745_vm0, %v9934_v28 }
 0x44d   : > { %v8872_v56 = vpop.f32.mrb[52].mxu1  ;;  %9082 = vmatprep.subr.msk.bf16.mxu0 %vm2745_vm0, %v6309_v60  ;;  %8155 = vmatmul.mubr.msk.bf16.vlgmr.msra.gmra.mrb[0].mxu0 %vm2745_vm0, %v10101_v55 }
 0x44e   : > { %v5214_v32 = vpop.f32.mrb[53].mxu1  ;;  %8157 = vmatpush3.bf16.xpose.msra.mxu0 %v6466_v38  ;;  %8172 = vmatprep.mubr.msk.bf16.mxu0 %vm2745_vm0, %v10101_v55  ;;  %v6083_v15 = vmax.f32 %v8872_v56, 0.0 }
 0x44f   : > { %v8873_v2 = vpop.f32.mrb[54].mxu1  ;;  %9083 = vmatprep.subr.msk.bf16.mxu0 %vm2745_vm0, %v6310_v21  ;;  %v6081_v53 = vmax.f32 %v5214_v32, 0.0 }
 0x450   : > { %v6084_v50 = vmax.f32 %v8873_v2, 0.0  ;;  %v5217_v28 = vpop.f32.mrb[55].mxu1 }
 0x451   : > { %v6082_v7 = vmax.f32 %v5217_v28, 0.0 }
 0x452   : > { %v6312_v10 = vpack.c.bf16 %v6084_v50, %v6083_v15  ;;  %8979 = vmatmul.mubr.msk.bf16.gmra.mrb[160].mxu1 %vm2745_vm0, %v9930_v1 }
 0x453   : > { %v6311_v23 = vpack.c.bf16 %v6082_v7, %v6081_v53  ;;  %8982 = vmatprep.mubr.msk.bf16.mxu1 %vm2745_vm0, %v9942_v49 }
 0x455   : > { %v8876_v25 = vpop.f32.mrb[56].mxu1 }
 0x456   : > { %v5230_v52 = vpop.f32.mrb[57].mxu1  ;;  %8159 = vmatpush3.bf16.xpose.msra.mxu0 %v6469_v62  ;;  %v6087_v24 = vmax.f32 %v8876_v25, 0.0 }
 0x457   : > { %v8877_v19 = vpop.f32.mrb[58].mxu1  ;;  %9084 = vmatprep.subr.msk.bf16.mxu0 %vm2745_vm0, %v6311_v23  ;;  %v6085_v34 = vmax.f32 %v5230_v52, 0.0 }
 0x458   : > { %v6088_v20 = vmax.f32 %v8877_v19, 0.0  ;;  %v5233_v27 = vpop.f32.mrb[59].mxu1 }
 0x459   : > { %v6086_v31 = vmax.f32 %v5233_v27, 0.0 }
 0x45a   : > { %v6314_v36 = vpack.c.bf16 %v6088_v20, %v6087_v24  ;;  %8983 = vmatmul.mubr.msk.bf16.gmra.mrb[164].mxu1 %vm2745_vm0, %v9938_v4  ;;  %v6481_v20 = vsel %vm2745_vm0, %v10209_v45, 0 }
 0x45b   : > { %v6313_v1 = vpack.c.bf16 %v6086_v31, %v6085_v34  ;;  %8986 = vmatprep.mubr.msk.bf16.mxu1 %vm2745_vm0, %v9950_v63 }
 0x45d   : > { %v8880_v49 = vpop.f32.mrb[60].mxu1 }
 0x45e   : > { %v5246_v47 = vpop.f32.mrb[61].mxu1  ;;  %8161 = vmatpush3.bf16.xpose.msra.mxu0 %v6472_v46  ;;  %v6091_v22 = vmax.f32 %v8880_v49, 0.0 }
 0x45f   : > { %v8881_v58 = vpop.f32.mrb[62].mxu1  ;;  %9085 = vmatprep.subr.msk.bf16.mxu0 %vm2745_vm0, %v6312_v10  ;;  %v6089_v21 = vmax.f32 %v5246_v47, 0.0  ;;  %v6484_v47 = vsel %vm2745_vm0, %v10224_v37, 0 }
 0x460   : > { %v6092_v16 = vmax.f32 %v8881_v58, 0.0  ;;  %v5249_v61 = vpop.f32.mrb[63].mxu1 }
 0x461   : > { %v6090_v60 = vmax.f32 %v5249_v61, 0.0 }
 0x462   : > { %v6316_v56 = vpack.c.bf16 %v6092_v16, %v6091_v22  ;;  %8987 = vmatmul.mubr.msk.bf16.gmra.mrb[168].mxu1 %vm2745_vm0, %v9946_v18 }
 0x463   : > { %v6315_v4 = vpack.c.bf16 %v6090_v60, %v6089_v21  ;;  %8990 = vmatprep.mubr.msk.bf16.mxu1 %vm2745_vm0, %v9958_v44 }
 0x465   : > { %v8884_v63 = vpop.f32.mrb[64].mxu1 }
 0x466   : > { %v5262_v38 = vpop.f32.mrb[65].mxu1  ;;  %8163 = vmatpush3.bf16.xpose.msra.mxu0 %v6475_v39  ;;  %v6095_v2 = vmax.f32 %v8884_v63, 0.0  ;;  %v6487_v63 = vsel %vm2745_vm0, %v10220_v8, 0 }
 0x467   : > { %v8885_v32 = vpop.f32.mrb[66].mxu1  ;;  %9086 = vmatprep.subr.msk.bf16.mxu0 %vm2745_vm0, %v6313_v1  ;;  %v6093_v28 = vmax.f32 %v5262_v38, 0.0 }
 0x468   : > { %v6096_v15 = vmax.f32 %v8885_v32, 0.0  ;;  %v5265_v50 = vpop.f32.mrb[67].mxu1 }
 0x469   : > { %v6094_v53 = vmax.f32 %v5265_v50, 0.0 }
 0x46a   : > { %v10263_v7 = vpack.c.bf16 %v6096_v15, %v6095_v2  ;;  %8991 = vmatmul.mubr.msk.bf16.gmra.mrb[172].mxu1 %vm2745_vm0, %v9954_v42 }
 0x46b   : > { %v10267_v18 = vpack.c.bf16 %v6094_v53, %v6093_v28  ;;  %8994 = vmatprep.mubr.msk.bf16.mxu1 %vm2745_vm0, %v9966_v11 }
 0x46d   : > { %v8888_v44 = vpop.f32.mrb[68].mxu1  ;;  %v6514_v8 = vsel %vm2745_vm0, %v10267_v18, 0 }
 0x46e   : > { %v5278_v10 = vpop.f32.mrb[69].mxu1  ;;  %8165 = vmatpush3.bf16.xpose.msra.mxu0 %v6478_v59  ;;  %v6099_v25 = vmax.f32 %v8888_v44, 0.0 }
 0x46f   : > { %v8889_v23 = vpop.f32.mrb[70].mxu1  ;;  %9087 = vmatprep.subr.msk.bf16.mxu0 %vm2745_vm0, %v6314_v36  ;;  %v6097_v19 = vmax.f32 %v5278_v10, 0.0 }
 0x470   : > { %v6100_v62 = vmax.f32 %v8889_v23, 0.0  ;;  %v5281_v52 = vpop.f32.mrb[71].mxu1 }
 0x471   : > { %v6098_v24 = vmax.f32 %v5281_v52, 0.0  ;;  %v6517_v52 = vsel %vm2745_vm0, %v10263_v7, 0 }
 0x472   : > { %v10274_v42 = vpack.c.bf16 %v6100_v62, %v6099_v25  ;;  %8995 = vmatmul.mubr.msk.bf16.gmra.mrb[176].mxu1 %vm2745_vm0, %v9962_v3 }
 0x473   : > { %v10278_v11 = vpack.c.bf16 %v6098_v24, %v6097_v19  ;;  %8998 = vmatprep.mubr.msk.bf16.mxu1 %vm2745_vm0, %v9974_v41 }
 0x475   : > { %v8892_v0 = vpop.f32.mrb[72].mxu1  ;;  %v6520_v7 = vsel %vm2745_vm0, %v10278_v11, 0  ;;  %v6523_v11 = vsel %vm2745_vm0, %v10274_v42, 0 }
 0x476   : > { %v5294_v27 = vpop.f32.mrb[73].mxu1  ;;  %8167 = vmatpush3.bf16.xpose.msra.mxu0 %v6481_v20  ;;  %v6103_v31 = vmax.f32 %v8892_v0, 0.0 }
 0x477   : > { %v8893_v34 = vpop.f32.mrb[74].mxu1  ;;  %9088 = vmatprep.subr.msk.bf16.mxu0 %vm2745_vm0, %v6315_v4  ;;  %v6101_v49 = vmax.f32 %v5294_v27, 0.0 }
 0x478   : > { %v6104_v36 = vmax.f32 %v8893_v34, 0.0  ;;  %v5297_v1 = vpop.f32.mrb[75].mxu1 }
 0x479   : > { %v6102_v46 = vmax.f32 %v5297_v1, 0.0 }
 0x47a   : > { %v10285_v3 = vpack.c.bf16 %v6104_v36, %v6103_v31  ;;  %8999 = vmatmul.mubr.msk.bf16.gmra.mrb[180].mxu1 %vm2745_vm0, %v9970_v13 }
 0x47b   : > { %v10289_v41 = vpack.c.bf16 %v6102_v46, %v6101_v49  ;;  %9002 = vmatprep.mubr.msk.bf16.mxu1 %vm2745_vm0, %v9982_v29 }
 0x47d   : > { %v8896_v45 = vpop.f32.mrb[76].mxu1  ;;  %v6526_v42 = vsel %vm2745_vm0, %v10289_v41, 0 }
 0x47e   : > { %v5310_v58 = vpop.f32.mrb[77].mxu1  ;;  %8169 = vmatpush3.bf16.xpose.msra.mxu0 %v6484_v47  ;;  %v6107_v16 = vmax.f32 %v8896_v45, 0.0 }
 0x47f   : > { %v8897_v22 = vpop.f32.mrb[78].mxu1  ;;  %9089 = vmatprep.subr.msk.bf16.mxu0 %vm2745_vm0, %v6316_v56  ;;  %v6105_v60 = vmax.f32 %v5310_v58, 0.0 }
 0x480   : > { %v6108_v61 = vmax.f32 %v8897_v22, 0.0  ;;  %v5313_v21 = vpop.f32.mrb[79].mxu1 }
 0x481   : > { %v6106_v4 = vmax.f32 %v5313_v21, 0.0 }
 0x482   : > { %v10296_v13 = vpack.c.bf16 %v6108_v61, %v6107_v16  ;;  %9003 = vmatmul.mubr.msk.bf16.gmra.mrb[184].mxu1 %vm2745_vm0, %v9978_v12 }
 0x483   : > { %v10300_v29 = vpack.c.bf16 %v6106_v4, %v6105_v60  ;;  %9006 = vmatprep.mubr.msk.bf16.mxu1 %vm2745_vm0, %v9990_v51 }
 0x485   : > { %v8900_v37 = vpop.f32.mrb[80].mxu1 }
 0x486   : > { %v5326_v56 = vpop.f32.mrb[81].mxu1  ;;  %8171 = vmatpush3.bf16.xpose.msra.mxu0 %v6487_v63  ;;  %v6111_v38 = vmax.f32 %v8900_v37, 0.0 }
 0x487   : > { %v8901_v39 = vpop.f32.mrb[82].mxu1  ;;  %v6109_v15 = vmax.f32 %v5326_v56, 0.0 }
 0x488   : > { %v6112_v32 = vmax.f32 %v8901_v39, 0.0  ;;  %v5329_v2 = vpop.f32.mrb[83].mxu1 }
 0x489   : > { %v6110_v50 = vmax.f32 %v5329_v2, 0.0 }
 0x48a   : > { %v6326_v28 = vpack.c.bf16 %v6112_v32, %v6111_v38  ;;  %9007 = vmatmul.mubr.msk.bf16.gmra.mrb[188].mxu1 %vm2745_vm0, %v9986_v26 }
 0x48b   : > { %v6325_v12 = vpack.c.bf16 %v6110_v50, %v6109_v15  ;;  %9010 = vmatprep.mubr.msk.bf16.mxu1 %vm2745_vm0, %v9998_v9 }
 0x48d   : > { %v8904_v51 = vpop.f32.mrb[84].mxu1  ;;  %9090 = vmatprep.subr.msk.bf16.mxu0 %vm2745_vm0, %v6325_v12  ;;  %8173 = vmatmul.mubr.msk.bf16.vlgmr.msra.gmra.mrb[4].mxu0 %vm2745_vm0, %v10101_v55 }
 0x48e   : > { %v5342_v53 = vpop.f32.mrb[85].mxu1  ;;  %8175 = vmatpush3.bf16.xpose.msra.mxu0 %v6514_v8  ;;  %8190 = vmatprep.mubr.msk.bf16.mxu0 %vm2745_vm0, %v10101_v55  ;;  %v6115_v26 = vmax.f32 %v8904_v51, 0.0  ;;  %v6529_v51 = vsel %vm2745_vm0, %v10285_v3, 0 }
 0x48f   : > { %v8905_v44 = vpop.f32.mrb[86].mxu1  ;;  %9091 = vmatprep.subr.msk.bf16.mxu0 %vm2745_vm0, %v6326_v28  ;;  %v6113_v10 = vmax.f32 %v5342_v53, 0.0 }
 0x490   : > { %v6116_v59 = vmax.f32 %v8905_v44, 0.0  ;;  %v5345_v9 = vpop.f32.mrb[87].mxu1 }
 0x491   : > { %v6114_v23 = vmax.f32 %v5345_v9, 0.0 }
 0x492   : > { %v6328_v25 = vpack.c.bf16 %v6116_v59, %v6115_v26  ;;  %9011 = vmatmul.mubr.msk.bf16.gmra.mrb[192].mxu1 %vm2745_vm0, %v9994_v48 }
 0x493   : > { %v6327_v62 = vpack.c.bf16 %v6114_v23, %v6113_v10  ;;  %9014 = vmatprep.mubr.msk.bf16.mxu1 %vm2745_vm0, %v10006_v33  ;;  %v6532_v23 = vsel %vm2745_vm0, %v10300_v29, 0 }
 0x495   : > { %v8908_v18 = vpop.f32.mrb[88].mxu1 }
 0x496   : > { %v5358_v19 = vpop.f32.mrb[89].mxu1  ;;  %8177 = vmatpush3.bf16.xpose.msra.mxu0 %v6517_v52  ;;  %v6119_v0 = vmax.f32 %v8908_v18, 0.0 }
 0x497   : > { %v8909_v24 = vpop.f32.mrb[90].mxu1  ;;  %9092 = vmatprep.subr.msk.bf16.mxu0 %vm2745_vm0, %v6327_v62  ;;  %v6117_v34 = vmax.f32 %v5358_v19, 0.0 }
 0x498   : > { %v6120_v20 = vmax.f32 %v8909_v24, 0.0  ;;  %v5361_v27 = vpop.f32.mrb[91].mxu1 }
 0x499   : > { %v6118_v31 = vmax.f32 %v5361_v27, 0.0  ;;  %v10800_v27 = vld [vmem:[#allocation36_spill] sm:$0xff] }
 0x49a   : > { %v6330_v36 = vpack.c.bf16 %v6120_v20, %v6119_v0  ;;  %9015 = vmatmul.mubr.msk.bf16.gmra.mrb[196].mxu1 %vm2745_vm0, %v10002_v6  ;;  %v10799_v20 = vld [vmem:[#allocation34_spill] sm:$0xff] }
 0x49b   : > { %v6329_v48 = vpack.c.bf16 %v6118_v31, %v6117_v34  ;;  %9018 = vmatprep.mubr.msk.bf16.mxu1 %vm2745_vm0, %v10014_v57  ;;  %v6535_v34 = vsel %vm2745_vm0, %v10296_v13, 0 }
 0x49d   : > { %v8912_v33 = vpop.f32.mrb[92].mxu1 }
 0x49e   : > { %v5374_v1 = vpop.f32.mrb[93].mxu1  ;;  %8179 = vmatpush3.bf16.xpose.msra.mxu0 %v6520_v7  ;;  %v6123_v46 = vmax.f32 %v8912_v33, 0.0 }
 0x49f   : > { %v8913_v49 = vpop.f32.mrb[94].mxu1  ;;  %9093 = vmatprep.subr.msk.bf16.mxu0 %vm2745_vm0, %v6328_v25  ;;  %v6121_v58 = vmax.f32 %v5374_v1, 0.0 }
 0x4a0   : > { %v6124_v45 = vmax.f32 %v8913_v49, 0.0  ;;  %v5377_v47 = vpop.f32.mrb[95].mxu1 }
 0x4a1   : > { %v6122_v22 = vmax.f32 %v5377_v47, 0.0 }
 0x4a2   : > { %v6332_v16 = vpack.c.bf16 %v6124_v45, %v6123_v46  ;;  %9019 = vmatmul.mubr.msk.bf16.gmra.mrb[200].mxu1 %vm2745_vm0, %v10010_v30  ;;  %v10801_v45 = vld [vmem:[#allocation35_spill] sm:$0xff] }
 0x4a3   : > { %v6331_v6 = vpack.c.bf16 %v6122_v22, %v6121_v58  ;;  %9022 = vmatprep.mubr.msk.bf16.mxu1 %vm2745_vm0, %v10022_v17  ;;  %v10802_v58 = vld [vmem:[#allocation38_spill] sm:$0xff] }
 0x4a5   : > { %v8916_v57 = vpop.f32.mrb[96].mxu1 }
 0x4a6   : > { %v5390_v61 = vpop.f32.mrb[97].mxu1  ;;  %8181 = vmatpush3.bf16.xpose.msra.mxu0 %v6523_v11  ;;  %v6127_v60 = vmax.f32 %v8916_v57, 0.0 }
 0x4a7   : > { %v8917_v21 = vpop.f32.mrb[98].mxu1  ;;  %9094 = vmatprep.subr.msk.bf16.mxu0 %vm2745_vm0, %v6329_v48  ;;  %v6125_v63 = vmax.f32 %v5390_v61, 0.0 }
 0x4a8   : > { %v6128_v4 = vmax.f32 %v8917_v21, 0.0  ;;  %v5393_v37 = vpop.f32.mrb[99].mxu1 }
 0x4a9   : > { %v6126_v56 = vmax.f32 %v5393_v37, 0.0  ;;  %v10803_v37 = vld [vmem:[#allocation37_spill] sm:$0xff] }
 0x4aa   : > { %v10339_v39 = vpack.c.bf16 %v6128_v4, %v6127_v60  ;;  %9023 = vmatmul.mubr.msk.bf16.gmra.mrb[204].mxu1 %vm2745_vm0, %v10018_v54 }
 0x4ab   : > { %v10343_v30 = vpack.c.bf16 %v6126_v56, %v6125_v63  ;;  %9026 = vmatprep.mubr.msk.bf16.mxu1 %vm2745_vm0, %v10030_v43  ;;  %v10804_v56 = vld [vmem:[#allocation5_spill] sm:$0xff] }
 0x4ad   : > { %v8920_v17 = vpop.f32.mrb[100].mxu1  ;;  %v6562_v13 = vsel %vm2745_vm0, %v10343_v30, 0 }
 0x4ae   : > { %v5406_v38 = vpop.f32.mrb[101].mxu1  ;;  %8183 = vmatpush3.bf16.xpose.msra.mxu0 %v6526_v42  ;;  %v6131_v2 = vmax.f32 %v8920_v17, 0.0 }
 0x4af   : > { %v8921_v32 = vpop.f32.mrb[102].mxu1  ;;  %9095 = vmatprep.subr.msk.bf16.mxu0 %vm2745_vm0, %v6330_v36  ;;  %v6129_v28 = vmax.f32 %v5406_v38, 0.0 }
 0x4b0   : > { %v6132_v15 = vmax.f32 %v8921_v32, 0.0  ;;  %v5409_v50 = vpop.f32.mrb[103].mxu1 }
 0x4b1   : > { %v6130_v12 = vmax.f32 %v5409_v50, 0.0 }
 0x4b2   : > { %v10350_v54 = vpack.c.bf16 %v6132_v15, %v6131_v2  ;;  %9027 = vmatmul.mubr.msk.bf16.gmra.mrb[208].mxu1 %vm2745_vm0, %v10026_v14 }
 0x4b3   : > { %v10354_v43 = vpack.c.bf16 %v6130_v12, %v6129_v28  ;;  %9030 = vmatprep.mubr.msk.bf16.mxu1 %vm2745_vm0, %v10038_v5  ;;  %v10805_v12 = vld [vmem:[#allocation39_spill] sm:$0xff] }
 0x4b5   : > { %v8924_v41 = vpop.f32.mrb[104].mxu1 }
 0x4b6   : > { %v5422_v8 = vpop.f32.mrb[105].mxu1  ;;  %8185 = vmatpush3.bf16.xpose.msra.mxu0 %v6529_v51  ;;  %v6135_v44 = vmax.f32 %v8924_v41, 0.0  ;;  %v10806_v51 = vld [vmem:[#allocation6_spill] sm:$0xff] }
 0x4b7   : > { %v8925_v53 = vpop.f32.mrb[106].mxu1  ;;  %9096 = vmatprep.subr.msk.bf16.mxu0 %vm2745_vm0, %v6331_v6  ;;  %v6133_v9 = vmax.f32 %v5422_v8, 0.0 }
 0x4b8   : > { %v6136_v26 = vmax.f32 %v8925_v53, 0.0  ;;  %v5425_v59 = vpop.f32.mrb[107].mxu1 }
 0x4b9   : > { %v6134_v10 = vmax.f32 %v5425_v59, 0.0 }
 0x4ba   : > { %v10361_v14 = vpack.c.bf16 %v6136_v26, %v6135_v44  ;;  %9031 = vmatmul.mubr.msk.bf16.gmra.mrb[212].mxu1 %vm2745_vm0, %v10034_v40 }
 0x4bb   : > { %v10365_v5 = vpack.c.bf16 %v6134_v10, %v6133_v9  ;;  %9034 = vmatprep.mubr.msk.bf16.mxu1 %vm2745_vm0, %v10046_v35 }
 0x4bd   : > { %v8928_v3 = vpop.f32.mrb[108].mxu1 }
 0x4be   : > { %v5438_v25 = vpop.f32.mrb[109].mxu1  ;;  %8187 = vmatpush3.bf16.xpose.msra.mxu0 %v6532_v23  ;;  %v6139_v18 = vmax.f32 %v8928_v3, 0.0 }
 0x4bf   : > { %v8929_v62 = vpop.f32.mrb[110].mxu1  ;;  %9097 = vmatprep.subr.msk.bf16.mxu0 %vm2745_vm0, %v6332_v16  ;;  %v6137_v24 = vmax.f32 %v5438_v25, 0.0  ;;  %v10807_v25 = vld [vmem:[#allocation7_spill] sm:$0xff] }
 0x4c0   : > { %v6140_v52 = vmax.f32 %v8929_v62, 0.0  ;;  %v5441_v19 = vpop.f32.mrb[111].mxu1 }
 0x4c1   : > { %v6138_v0 = vmax.f32 %v5441_v19, 0.0 }
 0x4c2   : > { %v10372_v40 = vpack.c.bf16 %v6140_v52, %v6139_v18  ;;  %9035 = vmatmul.mubr.msk.bf16.gmra.mrb[216].mxu1 %vm2745_vm0, %v10799_v20  ;;  %v10808_v18 = vld [vmem:[#allocation8_spill] sm:$0xff] }
 0x4c3   : > { %v10376_v35 = vpack.c.bf16 %v6138_v0, %v6137_v24  ;;  %9038 = vmatprep.mubr.msk.bf16.mxu1 %vm2745_vm0, %v10800_v27 }
 0x4c5   : > { %v8932_v29 = vpop.f32.mrb[112].mxu1 }
 0x4c6   : > { %v5454_v31 = vpop.f32.mrb[113].mxu1  ;;  %8189 = vmatpush3.bf16.xpose.msra.mxu0 %v6535_v34  ;;  %v6143_v48 = vmax.f32 %v8932_v29, 0.0 }
 0x4c7   : > { %v8933_v36 = vpop.f32.mrb[114].mxu1  ;;  %v6141_v1 = vmax.f32 %v5454_v31, 0.0 }
 0x4c8   : > { %v6144_v33 = vmax.f32 %v8933_v36, 0.0  ;;  %v5457_v7 = vpop.f32.mrb[115].mxu1  ;;  %v10809_v36 = vld [vmem:[#allocation9_spill] sm:$0xff] }
 0x4c9   : > { %v6142_v49 = vmax.f32 %v5457_v7, 0.0  ;;  %v6574_v7 = vsel %vm2745_vm0, %v10365_v5, 0 }
 0x4ca   : > { %v6342_v46 = vpack.c.bf16 %v6144_v33, %v6143_v48  ;;  %9039 = vmatmul.mubr.msk.bf16.gmra.mrb[220].mxu1 %vm2745_vm0, %v10801_v45  ;;  %v10810_v33 = vld [vmem:[#allocation10_spill] sm:$0xff] }
 0x4cb   : > { %v6341_v47 = vpack.c.bf16 %v6142_v49, %v6141_v1  ;;  %9042 = vmatprep.mubr.msk.bf16.mxu1 %vm2745_vm0, %v10802_v58 }
 0x4cd   : > { %v8936_v22 = vpop.f32.mrb[116].mxu1  ;;  %9098 = vmatprep.subr.msk.bf16.mxu0 %vm2745_vm0, %v6341_v47  ;;  %8191 = vmatmul.mubr.msk.bf16.vlgmr.msra.gmra.mrb[8].mxu0 %vm2745_vm0, %v10101_v55 }
 0x4ce   : > { %v5470_v16 = vpop.f32.mrb[117].mxu1  ;;  %8193 = vmatpush3.bf16.xpose.msra.mxu0 %v6562_v13  ;;  %8208 = vmatprep.mubr.msk.bf16.mxu0 %vm2745_vm0, %v10101_v55  ;;  %v6147_v57 = vmax.f32 %v8936_v22, 0.0  ;;  %v6565_v55 = vsel %vm2745_vm0, %v10339_v39, 0  ;;  %v6568_v39 = vsel %vm2745_vm0, %v10354_v43, 0  ;;  %v6571_v43 = vsel %vm2745_vm0, %v10350_v54, 0 }
 0x4cf   : > { %v8937_v6 = vpop.f32.mrb[118].mxu1  ;;  %9099 = vmatprep.subr.msk.bf16.mxu0 %vm2745_vm0, %v6342_v46  ;;  %v6145_v21 = vmax.f32 %v5470_v16, 0.0  ;;  %v10811_v16 = vld [vmem:[#allocation11_spill] sm:$0xff] }
 0x4d0   : > { %v6148_v11 = vmax.f32 %v8937_v6, 0.0  ;;  %v5473_v61 = vpop.f32.mrb[119].mxu1 }
 0x4d1   : > { %v6146_v60 = vmax.f32 %v5473_v61, 0.0 }
 0x4d2   : > { %v6344_v4 = vpack.c.bf16 %v6148_v11, %v6147_v57  ;;  %9043 = vmatmul.mubr.msk.bf16.gmra.mrb[224].mxu1 %vm2745_vm0, %v10803_v37  ;;  %v10812_v57 = vld [vmem:[#allocation12_spill] sm:$0xff]  ;;  %v6577_v11 = vsel %vm2745_vm0, %v10361_v14, 0 }
 0x4d3   : > { %v6343_v63 = vpack.c.bf16 %v6146_v60, %v6145_v21  ;;  %9046 = vmatprep.mubr.msk.bf16.mxu1 %vm2745_vm0, %v10804_v56 }
 0x4d5   : > { %v8940_v30 = vpop.f32.mrb[120].mxu1 }
 0x4d6   : > { %v5486_v17 = vpop.f32.mrb[121].mxu1  ;;  %8195 = vmatpush3.bf16.xpose.msra.mxu0 %v6565_v55  ;;  %v6151_v38 = vmax.f32 %v8940_v30, 0.0  ;;  %v10813_v55 = vld [vmem:[#allocation13_spill] sm:$0xff] }
 0x4d7   : > { %v8941_v42 = vpop.f32.mrb[122].mxu1  ;;  %9100 = vmatprep.subr.msk.bf16.mxu0 %vm2745_vm0, %v6343_v63  ;;  %v6149_v15 = vmax.f32 %v5486_v17, 0.0 }
 0x4d8   : > { %v6152_v32 = vmax.f32 %v8941_v42, 0.0  ;;  %v5489_v2 = vpop.f32.mrb[123].mxu1  ;;  %v10814_v42 = vld [vmem:[#allocation14_spill] sm:$0xff] }
 0x4d9   : > { %v6150_v50 = vmax.f32 %v5489_v2, 0.0 }
 0x4da   : > { %v6346_v28 = vpack.c.bf16 %v6152_v32, %v6151_v38  ;;  %9047 = vmatmul.mubr.msk.bf16.gmra.mrb[228].mxu1 %vm2745_vm0, %v10805_v12  ;;  %v6580_v38 = vsel %vm2745_vm0, %v10376_v35, 0 }
 0x4db   : > { %v6345_v41 = vpack.c.bf16 %v6150_v50, %v6149_v15  ;;  %9050 = vmatprep.mubr.msk.bf16.mxu1 %vm2745_vm0, %v10806_v51 }
 0x4dd   : > { %v8944_v8 = vpop.f32.mrb[124].mxu1 }
 0x4de   : > { %v5502_v53 = vpop.f32.mrb[125].mxu1  ;;  %8197 = vmatpush3.bf16.xpose.msra.mxu0 %v6568_v39  ;;  %v6155_v26 = vmax.f32 %v8944_v8, 0.0  ;;  %v10815_v8 = vld [vmem:[#allocation15_spill] sm:$0xff] }
 0x4df   : > { %v8945_v44 = vpop.f32.mrb[126].mxu1  ;;  %9101 = vmatprep.subr.msk.bf16.mxu0 %vm2745_vm0, %v6344_v4  ;;  %v6153_v10 = vmax.f32 %v5502_v53, 0.0  ;;  %v10816_v53 = vld [vmem:[#allocation16_spill] sm:$0xff] }
 0x4e0   : > { %v6156_v59 = vmax.f32 %v8945_v44, 0.0  ;;  %v5505_v9 = vpop.f32.mrb[127].mxu1  ;;  %v6583_v44 = vsel %vm2745_vm0, %v10372_v40, 0  ;;  %v10464_v40 = vld [vmem:[%s10718_s3] sm:$0x1] }
 0x4e1   : > { %v6154_v3 = vmax.f32 %v5505_v9, 0.0 }
 0x4e2   : > { %v6348_v23 = vpack.c.bf16 %v6156_v59, %v6155_v26  ;;  %9051 = vmatmul.mubr.msk.bf16.gmra.mrb[232].mxu1 %vm2745_vm0, %v10807_v25 }
 0x4e3   : > { %v6347_v62 = vpack.c.bf16 %v6154_v3, %v6153_v10  ;;  %9054 = vmatprep.mubr.msk.bf16.mxu1 %vm2745_vm0, %v10808_v18  ;;  %v10817_v18 = vld [vmem:[#allocation17_spill] sm:$0xff] }
 0x4e5   : > { %v8948_v52 = vpop.f32.mrb[128].mxu1 }
 0x4e6   : > { %v5518_v19 = vpop.f32.mrb[129].mxu1  ;;  %8199 = vmatpush3.bf16.xpose.msra.mxu0 %v6571_v43  ;;  %v6159_v0 = vmax.f32 %v8948_v52, 0.0 }
 0x4e7   : > { %v8949_v24 = vpop.f32.mrb[130].mxu1  ;;  %9102 = vmatprep.subr.msk.bf16.mxu0 %vm2745_vm0, %v6345_v41  ;;  %v6157_v29 = vmax.f32 %v5518_v19, 0.0 }
 0x4e8   : > { %v6160_v20 = vmax.f32 %v8949_v24, 0.0  ;;  %v5521_v27 = vpop.f32.mrb[131].mxu1 }
 0x4e9   : > { %v6158_v34 = vmax.f32 %v5521_v27, 0.0 }
 0x4ea   : > { %v10415_v31 = vpack.c.bf16 %v6160_v20, %v6159_v0  ;;  %9055 = vmatmul.mubr.msk.bf16.gmra.mrb[236].mxu1 %vm2745_vm0, %v10809_v36 }
 0x4eb   : > { %v10419_v48 = vpack.c.bf16 %v6158_v34, %v6157_v29  ;;  %9058 = vmatprep.mubr.msk.bf16.mxu1 %vm2745_vm0, %v10810_v33 }
 0x4ed   : > { %v8952_v54 = vpop.f32.mrb[132].mxu1  ;;  %v6610_v19 = vsel %vm2745_vm0, %v10419_v48, 0 }
 0x4ee   : > { %v5534_v1 = vpop.f32.mrb[133].mxu1  ;;  %8201 = vmatpush3.bf16.xpose.msra.mxu0 %v6574_v7  ;;  %v6163_v46 = vmax.f32 %v8952_v54, 0.0 }
 0x4ef   : > { %v8953_v49 = vpop.f32.mrb[134].mxu1  ;;  %9103 = vmatprep.subr.msk.bf16.mxu0 %vm2745_vm0, %v6346_v28  ;;  %v6161_v58 = vmax.f32 %v5534_v1, 0.0  ;;  %v6613_v1 = vsel %vm2745_vm0, %v10415_v31, 0 }
 0x4f0   : > { %v6164_v45 = vmax.f32 %v8953_v49, 0.0  ;;  %v5537_v47 = vpop.f32.mrb[135].mxu1 }
 0x4f1   : > { %v6162_v22 = vmax.f32 %v5537_v47, 0.0 }
 0x4f2   : > { %v10426_v13 = vpack.c.bf16 %v6164_v45, %v6163_v46  ;;  %9059 = vmatmul.mubr.msk.bf16.gmra.mrb[240].mxu1 %vm2745_vm0, %v10811_v16 }
 0x4f3   : > { %v10430_v6 = vpack.c.bf16 %v6162_v22, %v6161_v58  ;;  %9062 = vmatprep.mubr.msk.bf16.mxu1 %vm2745_vm0, %v10812_v57 }
 0x4f5   : > { %v8956_v5 = vpop.f32.mrb[136].mxu1 }
 0x4f6   : > { %v5550_v61 = vpop.f32.mrb[137].mxu1  ;;  %8203 = vmatpush3.bf16.xpose.msra.mxu0 %v6577_v11  ;;  %v6167_v60 = vmax.f32 %v8956_v5, 0.0  ;;  %v6616_v11 = vsel %vm2745_vm0, %v10430_v6, 0 }
 0x4f7   : > { %v8957_v21 = vpop.f32.mrb[138].mxu1  ;;  %9104 = vmatprep.subr.msk.bf16.mxu0 %vm2745_vm0, %v6347_v62  ;;  %v6165_v63 = vmax.f32 %v5550_v61, 0.0 }
 0x4f8   : > { %v6168_v4 = vmax.f32 %v8957_v21, 0.0  ;;  %v5553_v37 = vpop.f32.mrb[139].mxu1 }
 0x4f9   : > { %v6166_v56 = vmax.f32 %v5553_v37, 0.0 }
 0x4fa   : > { %v10437_v30 = vpack.c.bf16 %v6168_v4, %v6167_v60  ;;  %9063 = vmatmul.mubr.msk.bf16.gmra.mrb[244].mxu1 %vm2745_vm0, %v10813_v55 }
 0x4fb   : > { %v10441_v17 = vpack.c.bf16 %v6166_v56, %v6165_v63  ;;  %9066 = vmatprep.mubr.msk.bf16.mxu1 %vm2745_vm0, %v10814_v42 }
 0x4fd   : > { %v8960_v14 = vpop.f32.mrb[140].mxu1 }
 0x4fe   : > { %v5566_v32 = vpop.f32.mrb[141].mxu1  ;;  %8205 = vmatpush3.bf16.xpose.msra.mxu0 %v6580_v38  ;;  %v6171_v15 = vmax.f32 %v8960_v14, 0.0 }
 0x4ff   : > { %v8961_v2 = vpop.f32.mrb[142].mxu1  ;;  %9105 = vmatprep.subr.msk.bf16.mxu0 %vm2745_vm0, %v6348_v23  ;;  %v6169_v12 = vmax.f32 %v5566_v32, 0.0 }
 0x500   : > { %v6172_v50 = vmax.f32 %v8961_v2, 0.0  ;;  %v5569_v28 = vpop.f32.mrb[143].mxu1 }
 0x501   : > { %v6170_v41 = vmax.f32 %v5569_v28, 0.0 }
 0x502   : > { %v10448_v51 = vpack.c.bf16 %v6172_v50, %v6171_v15  ;;  %9067 = vmatmul.mubr.msk.bf16.gmra.mrb[248].mxu1 %vm2745_vm0, %v10815_v8  ;;  %v6619_v15 = vsel %vm2745_vm0, %v10426_v13, 0 }
 0x503   : > { %v10452_v39 = vpack.c.bf16 %v6170_v41, %v6169_v12  ;;  %9070 = vmatprep.mubr.msk.bf16.mxu1 %vm2745_vm0, %v10816_v53 }
 0x505   : > { %v8964_v35 = vpop.f32.mrb[144].mxu1 }
 0x506   : > { %v5582_v26 = vpop.f32.mrb[145].mxu1  ;;  %8207 = vmatpush3.bf16.xpose.msra.mxu0 %v6583_v44  ;;  %v6175_v9 = vmax.f32 %v8964_v35, 0.0 }
 0x507   : > { %v8965_v59 = vpop.f32.mrb[146].mxu1  ;;  %v6173_v23 = vmax.f32 %v5582_v26, 0.0 }
 0x508   : > { %v6176_v10 = vmax.f32 %v8965_v59, 0.0  ;;  %v5585_v3 = vpop.f32.mrb[147].mxu1 }
 0x509   : > { %v6174_v25 = vmax.f32 %v5585_v3, 0.0 }
 0x50a   : > { %v6358_v62 = vpack.c.bf16 %v6176_v10, %v6175_v9  ;;  %9071 = vmatmul.mubr.msk.bf16.gmra.mrb[252].mxu1 %vm2745_vm0, %v10817_v18  ;;  %v6622_v9 = vsel %vm2745_vm0, %v10441_v17, 0 }
 0x50b   : > { %v6357_v52 = vpack.c.bf16 %v6174_v25, %v6173_v23 }
 0x50d   : > { %v8968_v43 = vpop.f32.mrb[148].mxu1  ;;  %9106 = vmatprep.subr.msk.bf16.mxu0 %vm2745_vm0, %v6357_v52  ;;  %8209 = vmatmul.mubr.msk.bf16.vlgmr.msra.gmra.mrb[12].mxu0 %vm2745_vm0, %v10464_v40 }
 0x50e   : > { %v5598_v24 = vpop.f32.mrb[149].mxu1  ;;  %8211 = vmatpush3.bf16.xpose.msra.mxu0 %v6610_v19  ;;  %8226 = vmatprep.mubr.msk.bf16.mxu0 %vm2745_vm0, %v10464_v40  ;;  %v6179_v20 = vmax.f32 %v8968_v43, 0.0 }
 0x50f   : > { %v8969_v0 = vpop.f32.mrb[150].mxu1  ;;  %9107 = vmatprep.subr.msk.bf16.mxu0 %vm2745_vm0, %v6358_v62  ;;  %v6177_v34 = vmax.f32 %v5598_v24, 0.0  ;;  %v6625_v24 = vsel %vm2745_vm0, %v10437_v30, 0 }
 0x510   : > { %v6180_v27 = vmax.f32 %v8969_v0, 0.0  ;;  %v5601_v29 = vpop.f32.mrb[151].mxu1 }
 0x511   : > { %v6178_v36 = vmax.f32 %v5601_v29, 0.0 }
 0x512   : > { %v6360_v33 = vpack.c.bf16 %v6180_v27, %v6179_v20 }
 0x513   : > { %v6359_v54 = vpack.c.bf16 %v6178_v36, %v6177_v34 }
 0x515   : > { %v8972_v7 = vpop.f32.mrb[152].mxu1 }
 0x516   : > { %v5614_v48 = vpop.f32.mrb[153].mxu1  ;;  %8213 = vmatpush3.bf16.xpose.msra.mxu0 %v6613_v1  ;;  %v6183_v46 = vmax.f32 %v8972_v7, 0.0  ;;  %v6628_v1 = vsel %vm2745_vm0, %v10452_v39, 0 }
 0x517   : > { %v8973_v49 = vpop.f32.mrb[154].mxu1  ;;  %9108 = vmatprep.subr.msk.bf16.mxu0 %vm2745_vm0, %v6359_v54  ;;  %v6181_v58 = vmax.f32 %v5614_v48, 0.0 }
 0x518   : > { %v6184_v45 = vmax.f32 %v8973_v49, 0.0  ;;  %v5617_v47 = vpop.f32.mrb[155].mxu1 }
 0x519   : > { %v6182_v22 = vmax.f32 %v5617_v47, 0.0 }
 0x51a   : > { %v6362_v16 = vpack.c.bf16 %v6184_v45, %v6183_v46 }
 0x51b   : > { %v6361_v57 = vpack.c.bf16 %v6182_v22, %v6181_v58 }
 0x51d   : > { %v8976_v5 = vpop.f32.mrb[156].mxu1 }
 0x51e   : > { %v5630_v61 = vpop.f32.mrb[157].mxu1  ;;  %8215 = vmatpush3.bf16.xpose.msra.mxu0 %v6616_v11  ;;  %v6187_v31 = vmax.f32 %v8976_v5, 0.0  ;;  %v6631_v5 = vsel %vm2745_vm0, %v10448_v51, 0 }
 0x51f   : > { %v8977_v21 = vpop.f32.mrb[158].mxu1  ;;  %9109 = vmatprep.subr.msk.bf16.mxu0 %vm2745_vm0, %v6360_v33  ;;  %v6185_v63 = vmax.f32 %v5630_v61, 0.0 }
 0x520   : > { %v6188_v60 = vmax.f32 %v8977_v21, 0.0  ;;  %v5633_v4 = vpop.f32.mrb[159].mxu1  ;;  %v10479_v37 = vpop.f32.mrb[0].mxu0 }
 0x521   : > { %v6186_v56 = vmax.f32 %v5633_v4, 0.0  ;;  %v10481_v55 = vpop.f32.mrb[1].mxu0 }
 0x522   : > { %v6364_v42 = vpack.c.bf16 %v6188_v60, %v6187_v31  ;;  %v7145_v14 = vcombine.low %v10479_v37, %v10481_v55  ;;  %v6839_v38 = vpop.f32.mrb[2].mxu0 }
 0x523   : > { %v6363_v6 = vpack.c.bf16 %v6186_v56, %v6185_v63  ;;  %v6840_v32 = vpop.f32.mrb[3].mxu0 }
 0x525   : > { %v8980_v2 = vpop.f32.mrb[160].mxu1 }
 0x526   : > { %v5646_v50 = vpop.f32.mrb[161].mxu1  ;;  %8217 = vmatpush3.bf16.xpose.msra.mxu0 %v6619_v15  ;;  %v6191_v12 = vmax.f32 %v8980_v2, 0.0 }
 0x527   : > { %v8981_v28 = vpop.f32.mrb[162].mxu1  ;;  %9110 = vmatprep.subr.msk.bf16.mxu0 %vm2745_vm0, %v6361_v57  ;;  %v6189_v53 = vmax.f32 %v5646_v50, 0.0 }
 0x528   : > { %v6192_v41 = vmax.f32 %v8981_v28, 0.0  ;;  %v5649_v8 = vpop.f32.mrb[163].mxu1 }
 0x529   : > { %v6190_v35 = vmax.f32 %v5649_v8, 0.0 }
 0x52a   : > { %v10488_v44 = vpack.c.bf16 %v6192_v41, %v6191_v12 }
 0x52b   : > { %v6365_v26 = vpack.c.bf16 %v6190_v35, %v6189_v53 }
 0x52c   : > { %v6661_v53 = vsel %vm2745_vm0, %v10488_v44, 0 }
 0x52d   : > { %v8984_v59 = vpop.f32.mrb[164].mxu1  ;;  %v6658_v38 = vsel %vm2745_vm0, %v6365_v26, 0 }
 0x52e   : > { %v5662_v10 = vpop.f32.mrb[165].mxu1  ;;  %8219 = vmatpush3.bf16.xpose.msra.mxu0 %v6622_v9  ;;  %v6195_v3 = vmax.f32 %v8984_v59, 0.0 }
 0x52f   : > { %v8985_v13 = vpop.f32.mrb[166].mxu1  ;;  %9111 = vmatprep.subr.msk.bf16.mxu0 %vm2745_vm0, %v6362_v16  ;;  %v6193_v62 = vmax.f32 %v5662_v10, 0.0 }
 0x530   : > { %v6196_v23 = vmax.f32 %v8985_v13, 0.0  ;;  %v5665_v25 = vpop.f32.mrb[167].mxu1  ;;  %v9383_v13 = vmov 1966171168  }
 0x531   : > { %v6194_v18 = vmax.f32 %v5665_v25, 0.0 }
 0x532   : > { %v10493_v52 = vpack.c.bf16 %v6196_v23, %v6195_v3  ;;  %v7150_v3 = vunpack.c.l.s4 %v9383_v13  ;;  %v7152_v23 = vlaneseq }
 0x533   : > { %v10495_v43 = vpack.c.bf16 %v6194_v18, %v6193_v62 }
 0x535   : > { %v8988_v19 = vpop.f32.mrb[168].mxu1  ;;  %v6664_v44 = vsel %vm2745_vm0, %v10495_v43, 0 }
 0x536   : > { %v5678_v0 = vpop.f32.mrb[169].mxu1  ;;  %8221 = vmatpush3.bf16.xpose.msra.mxu0 %v6625_v24  ;;  %v6199_v20 = vmax.f32 %v8988_v19, 0.0  ;;  %v7151_v24 = vunpack.c.0.s8 %v7150_v3 }
 0x537   : > { %v8989_v17 = vpop.f32.mrb[170].mxu1  ;;  %9112 = vmatprep.subr.msk.bf16.mxu0 %vm2745_vm0, %v6363_v6  ;;  %v6197_v34 = vmax.f32 %v5678_v0, 0.0  ;;  %v7153_v0 = vshrl.u32 %v7152_v23, 7 }
 0x538   : > { %v6200_v27 = vmax.f32 %v8989_v17, 0.0  ;;  %v5681_v29 = vpop.f32.mrb[171].mxu1 }
 0x539   : > { %v6198_v36 = vmax.f32 %v5681_v29, 0.0 }
 0x53a   : > { %v10500_v33 = vpack.c.bf16 %v6200_v27, %v6199_v20 }
 0x53b   : > { %v10502_v54 = vpack.c.bf16 %v6198_v36, %v6197_v34 }
 0x53d   : > { %v8992_v7 = vpop.f32.mrb[172].mxu1 }
 0x53e   : > { %v5694_v48 = vpop.f32.mrb[173].mxu1  ;;  %8223 = vmatpush3.bf16.xpose.msra.mxu0 %v6628_v1  ;;  %v6203_v49 = vmax.f32 %v8992_v7, 0.0  ;;  %v10526_v7 = vsub.s32 %v7151_v24, %v7153_v0 }
 0x53f   : > { %v8993_v30 = vpop.f32.mrb[174].mxu1  ;;  %9113 = vmatprep.subr.msk.bf16.mxu0 %vm2745_vm0, %v6364_v42  ;;  %v6201_v47 = vmax.f32 %v5694_v48, 0.0 }
 0x540   : > { %v6204_v46 = vmax.f32 %v8993_v30, 0.0  ;;  %v5697_v45 = vpop.f32.mrb[175].mxu1  ;;  %v10532_v43 = vrot.slane %v7145_v14, %v10526_v7 }
 0x541   : > { %v6202_v58 = vmax.f32 %v5697_v45, 0.0 }
 0x542   : > { %v10507_v22 = vpack.c.bf16 %v6204_v46, %v6203_v49 }
 0x543   : > { %v10509_v16 = vpack.c.bf16 %v6202_v58, %v6201_v47 }
 0x545   : > { %v8996_v57 = vpop.f32.mrb[176].mxu1 }
 0x546   : > { %v5710_v11 = vpop.f32.mrb[177].mxu1  ;;  %8225 = vmatpush3.bf16.xpose.msra.mxu0 %v6631_v5  ;;  %v6207_v61 = vmax.f32 %v8996_v57, 0.0 }
 0x547   : > { %v8997_v39 = vpop.f32.mrb[178].mxu1  ;;  %v6205_v60 = vmax.f32 %v5710_v11, 0.0 }
 0x548   : > { %v6208_v21 = vmax.f32 %v8997_v39, 0.0  ;;  %v5713_v31 = vpop.f32.mrb[179].mxu1  ;;  %v6667_v39 = vsel %vm2745_vm0, %v10493_v52, 0  ;;  %v6670_v52 = vsel %vm2745_vm0, %v10502_v54, 0 }
 0x549   : > { %v6206_v4 = vmax.f32 %v5713_v31, 0.0 }
 0x54a   : > { %v6374_v63 = vpack.c.bf16 %v6208_v21, %v6207_v61 }
 0x54b   : > { %v6373_v56 = vpack.c.bf16 %v6206_v4, %v6205_v60 }
 0x54d   : > { %v9000_v42 = vpop.f32.mrb[180].mxu1  ;;  %9114 = vmatprep.subr.msk.bf16.mxu0 %vm2745_vm0, %v6373_v56  ;;  %8227 = vmatmul.mubr.msk.bf16.vlgmr.msra.gmra.mrb[16].mxu0 %vm2745_vm0, %v10464_v40 }
 0x54e   : > { %v5726_v6 = vpop.f32.mrb[181].mxu1  ;;  %8229 = vmatpush3.bf16.xpose.msra.mxu0 %v6658_v38  ;;  %8244 = vmatprep.mubr.msk.bf16.mxu0 %vm2745_vm0, %v10464_v40  ;;  %v6211_v32 = vmax.f32 %v9000_v42, 0.0 }
 0x54f   : > { %v9001_v51 = vpop.f32.mrb[182].mxu1  ;;  %9115 = vmatprep.subr.msk.bf16.mxu0 %vm2745_vm0, %v6374_v63  ;;  %v6209_v50 = vmax.f32 %v5726_v6, 0.0 }
 0x550   : > { %v6212_v2 = vmax.f32 %v9001_v51, 0.0  ;;  %v5729_v15 = vpop.f32.mrb[183].mxu1 }
 0x551   : > { %v6210_v28 = vmax.f32 %v5729_v15, 0.0 }
 0x552   : > { %v6376_v12 = vpack.c.bf16 %v6212_v2, %v6211_v32 }
 0x553   : > { %v6375_v41 = vpack.c.bf16 %v6210_v28, %v6209_v50 }
 0x555   : > { %v9004_v8 = vpop.f32.mrb[184].mxu1 }
 0x556   : > { %v5742_v35 = vpop.f32.mrb[185].mxu1  ;;  %8231 = vmatpush3.bf16.xpose.msra.mxu0 %v6661_v53  ;;  %v6215_v59 = vmax.f32 %v9004_v8, 0.0  ;;  %v6673_v8 = vsel %vm2745_vm0, %v10500_v33, 0 }
 0x557   : > { %v9005_v26 = vpop.f32.mrb[186].mxu1  ;;  %9116 = vmatprep.subr.msk.bf16.mxu0 %vm2745_vm0, %v6375_v41  ;;  %v6213_v25 = vmax.f32 %v5742_v35, 0.0 }
 0x558   : > { %v6216_v9 = vmax.f32 %v9005_v26, 0.0  ;;  %v5745_v10 = vpop.f32.mrb[187].mxu1 }
 0x559   : > { %v6214_v62 = vmax.f32 %v5745_v10, 0.0 }
 0x55a   : > { %v6378_v18 = vpack.c.bf16 %v6216_v9, %v6215_v59 }
 0x55b   : > { %v6377_v19 = vpack.c.bf16 %v6214_v62, %v6213_v25  ;;  %v6676_v25 = vsel %vm2745_vm0, %v10509_v16, 0 }
 0x55d   : > { %v9008_v17 = vpop.f32.mrb[188].mxu1 }
 0x55e   : > { %v5758_v20 = vpop.f32.mrb[189].mxu1  ;;  %8233 = vmatpush3.bf16.xpose.msra.mxu0 %v6664_v44  ;;  %v6219_v29 = vmax.f32 %v9008_v17, 0.0 }
 0x55f   : > { %v9009_v27 = vpop.f32.mrb[190].mxu1  ;;  %9117 = vmatprep.subr.msk.bf16.mxu0 %vm2745_vm0, %v6376_v12  ;;  %v6217_v48 = vmax.f32 %v5758_v20, 0.0 }
 0x560   : > { %v6220_v34 = vmax.f32 %v9009_v27, 0.0  ;;  %v5761_v36 = vpop.f32.mrb[191].mxu1  ;;  %v6876_v1 = vpop.f32.mrb[4].mxu0 }
 0x561   : > { %v6218_v30 = vmax.f32 %v5761_v36, 0.0  ;;  %v6878_v49 = vpop.f32.mrb[5].mxu0 }
 0x562   : > { %v6380_v46 = vpack.c.bf16 %v6220_v34, %v6219_v29  ;;  %v7146_v45 = vcombine.low %v6876_v1, %v6878_v49  ;;  %v6880_v47 = vpop.f32.mrb[6].mxu0  ;;  %v6679_v29 = vsel %vm2745_vm0, %v10507_v22, 0 }
 0x563   : > { %v6379_v58 = vpack.c.bf16 %v6218_v30, %v6217_v48  ;;  %v6881_v57 = vpop.f32.mrb[7].mxu0 }
 0x564   : > { %v10535_v5 = vrot.slane %v7146_v45, %v10526_v7 }
 0x565   : > { %v9012_v11 = vpop.f32.mrb[192].mxu1 }
 0x566   : > { %v5774_v61 = vpop.f32.mrb[193].mxu1  ;;  %8235 = vmatpush3.bf16.xpose.msra.mxu0 %v6667_v39  ;;  %v7177_v21 = vcombine.low %v10532_v43, %v10535_v5  ;;  %v6223_v60 = vmax.f32 %v9012_v11, 0.0 }
 0x567   : > { %v9013_v31 = vpop.f32.mrb[194].mxu1  ;;  %9118 = vmatprep.subr.msk.bf16.mxu0 %vm2745_vm0, %v6377_v19  ;;  %v6221_v55 = vmax.f32 %v5774_v61, 0.0 }
 0x568   : > { %v6224_v4 = vmax.f32 %v9013_v31, 0.0  ;;  %v5777_v37 = vpop.f32.mrb[195].mxu1 }
 0x569   : > { %v6222_v14 = vmax.f32 %v5777_v37, 0.0 }
 0x56a   : > { %v10542_v63 = vpack.c.bf16 %v6224_v4, %v6223_v60 }
 0x56b   : > { %v6381_v56 = vpack.c.bf16 %v6222_v14, %v6221_v55 }
 0x56c   : > { %v6709_v14 = vsel %vm2745_vm0, %v10542_v63, 0 }
 0x56d   : > { %v9016_v42 = vpop.f32.mrb[196].mxu1 }
 0x56e   : > { %v5790_v38 = vpop.f32.mrb[197].mxu1  ;;  %8237 = vmatpush3.bf16.xpose.msra.mxu0 %v6670_v52  ;;  %v6227_v51 = vmax.f32 %v9016_v42, 0.0 }
 0x56f   : > { %v9017_v6 = vpop.f32.mrb[198].mxu1  ;;  %9119 = vmatprep.subr.msk.bf16.mxu0 %vm2745_vm0, %v6378_v18  ;;  %v6225_v15 = vmax.f32 %v5790_v38, 0.0 }
 0x570   : > { %v6228_v32 = vmax.f32 %v9017_v6, 0.0  ;;  %v5793_v2 = vpop.f32.mrb[199].mxu1 }
 0x571   : > { %v6226_v50 = vmax.f32 %v5793_v2, 0.0 }
 0x572   : > { %v10547_v28 = vpack.c.bf16 %v6228_v32, %v6227_v51 }
 0x573   : > { %v10549_v12 = vpack.c.bf16 %v6226_v50, %v6225_v15 }
 0x575   : > { %v9020_v41 = vpop.f32.mrb[200].mxu1 }
 0x576   : > { %v5806_v53 = vpop.f32.mrb[201].mxu1  ;;  %8239 = vmatpush3.bf16.xpose.msra.mxu0 %v6673_v8  ;;  %v6231_v35 = vmax.f32 %v9020_v41, 0.0  ;;  %v6712_v41 = vsel %vm2745_vm0, %v10549_v12, 0 }
 0x577   : > { %v9021_v54 = vpop.f32.mrb[202].mxu1  ;;  %9120 = vmatprep.subr.msk.bf16.mxu0 %vm2745_vm0, %v6379_v58  ;;  %v6229_v9 = vmax.f32 %v5806_v53, 0.0  ;;  %v6706_v58 = vsel %vm2745_vm0, %v6381_v56, 0 }
 0x578   : > { %v6232_v26 = vmax.f32 %v9021_v54, 0.0  ;;  %v5809_v59 = vpop.f32.mrb[203].mxu1 }
 0x579   : > { %v6230_v10 = vmax.f32 %v5809_v59, 0.0 }
 0x57a   : > { %v10554_v13 = vpack.c.bf16 %v6232_v26, %v6231_v35 }
 0x57b   : > { %v10556_v3 = vpack.c.bf16 %v6230_v10, %v6229_v9 }
 0x57d   : > { %v9024_v23 = vpop.f32.mrb[204].mxu1 }
 0x57e   : > { %v5822_v62 = vpop.f32.mrb[205].mxu1  ;;  %8241 = vmatpush3.bf16.xpose.msra.mxu0 %v6676_v25  ;;  %v6235_v18 = vmax.f32 %v9024_v23, 0.0 }
 0x57f   : > { %v9025_v33 = vpop.f32.mrb[206].mxu1  ;;  %9121 = vmatprep.subr.msk.bf16.mxu0 %vm2745_vm0, %v6380_v46  ;;  %v6233_v0 = vmax.f32 %v5822_v62, 0.0 }
 0x580   : > { %v6236_v19 = vmax.f32 %v9025_v33, 0.0  ;;  %v5825_v24 = vpop.f32.mrb[207].mxu1 }
 0x581   : > { %v6234_v17 = vmax.f32 %v5825_v24, 0.0 }
 0x582   : > { %v10561_v44 = vpack.c.bf16 %v6236_v19, %v6235_v18  ;;  %v6715_v19 = vsel %vm2745_vm0, %v10547_v28, 0 }
 0x583   : > { %v10563_v20 = vpack.c.bf16 %v6234_v17, %v6233_v0 }
 0x585   : > { %v9028_v27 = vpop.f32.mrb[208].mxu1 }
 0x586   : > { %v5838_v34 = vpop.f32.mrb[209].mxu1  ;;  %8243 = vmatpush3.bf16.xpose.msra.mxu0 %v6679_v29  ;;  %v6239_v36 = vmax.f32 %v9028_v27, 0.0 }
 0x587   : > { %v9029_v16 = vpop.f32.mrb[210].mxu1  ;;  %v6237_v30 = vmax.f32 %v5838_v34, 0.0 }
 0x588   : > { %v6240_v1 = vmax.f32 %v9029_v16, 0.0  ;;  %v5841_v48 = vpop.f32.mrb[211].mxu1 }
 0x589   : > { %v6238_v49 = vmax.f32 %v5841_v48, 0.0 }
 0x58a   : > { %v6390_v46 = vpack.c.bf16 %v6240_v1, %v6239_v36 }
 0x58b   : > { %v6389_v45 = vpack.c.bf16 %v6238_v49, %v6237_v30  ;;  %v6718_v30 = vsel %vm2745_vm0, %v10556_v3, 0 }
 0x58d   : > { %v9032_v47 = vpop.f32.mrb[212].mxu1  ;;  %9122 = vmatprep.subr.msk.bf16.mxu0 %vm2745_vm0, %v6389_v45  ;;  %8245 = vmatmul.mubr.msk.bf16.vlgmr.msra.gmra.mrb[20].mxu0 %vm2745_vm0, %v10464_v40 }
 0x58e   : > { %v5854_v57 = vpop.f32.mrb[213].mxu1  ;;  %8247 = vmatpush3.bf16.xpose.msra.mxu0 %v6706_v58  ;;  %8262 = vmatprep.mubr.msk.bf16.mxu0 %vm2745_vm0, %v10464_v40  ;;  %v6243_v11 = vmax.f32 %v9032_v47, 0.0 }
 0x58f   : > { %v9033_v22 = vpop.f32.mrb[214].mxu1  ;;  %9123 = vmatprep.subr.msk.bf16.mxu0 %vm2745_vm0, %v6390_v46  ;;  %v6241_v31 = vmax.f32 %v5854_v57, 0.0 }
 0x590   : > { %v6244_v39 = vmax.f32 %v9033_v22, 0.0  ;;  %v5857_v61 = vpop.f32.mrb[215].mxu1 }
 0x591   : > { %v6242_v60 = vmax.f32 %v5857_v61, 0.0  ;;  %v6721_v61 = vsel %vm2745_vm0, %v10554_v13, 0 }
 0x592   : > { %v6392_v4 = vpack.c.bf16 %v6244_v39, %v6243_v11 }
 0x593   : > { %v6391_v37 = vpack.c.bf16 %v6242_v60, %v6241_v31 }
 0x595   : > { %v9036_v55 = vpop.f32.mrb[216].mxu1 }
 0x596   : > { %v5870_v56 = vpop.f32.mrb[217].mxu1  ;;  %8249 = vmatpush3.bf16.xpose.msra.mxu0 %v6709_v14  ;;  %v6247_v52 = vmax.f32 %v9036_v55, 0.0 }
 0x597   : > { %v9037_v42 = vpop.f32.mrb[218].mxu1  ;;  %9124 = vmatprep.subr.msk.bf16.mxu0 %vm2745_vm0, %v6391_v37  ;;  %v6245_v51 = vmax.f32 %v5870_v56, 0.0 }
 0x598   : > { %v6248_v38 = vmax.f32 %v9037_v42, 0.0  ;;  %v5873_v6 = vpop.f32.mrb[219].mxu1 }
 0x599   : > { %v6246_v32 = vmax.f32 %v5873_v6, 0.0 }
 0x59a   : > { %v6394_v2 = vpack.c.bf16 %v6248_v38, %v6247_v52  ;;  %v6724_v38 = vsel %vm2745_vm0, %v10563_v20, 0 }
 0x59b   : > { %v6393_v15 = vpack.c.bf16 %v6246_v32, %v6245_v51 }
 0x59d   : > { %v9040_v50 = vpop.f32.mrb[220].mxu1 }
 0x59e   : > { %v5886_v8 = vpop.f32.mrb[221].mxu1  ;;  %8251 = vmatpush3.bf16.xpose.msra.mxu0 %v6712_v41  ;;  %v6251_v63 = vmax.f32 %v9040_v50, 0.0 }
 0x59f   : > { %v9041_v53 = vpop.f32.mrb[222].mxu1  ;;  %9125 = vmatprep.subr.msk.bf16.mxu0 %vm2745_vm0, %v6392_v4  ;;  %v6249_v59 = vmax.f32 %v5886_v8, 0.0 }
 0x5a0   : > { %v6252_v54 = vmax.f32 %v9041_v53, 0.0  ;;  %v5889_v35 = vpop.f32.mrb[223].mxu1  ;;  %v10580_v26 = vpop.f32.mrb[8].mxu0 }
 0x5a1   : > { %v6250_v9 = vmax.f32 %v5889_v35, 0.0  ;;  %v10582_v10 = vpop.f32.mrb[9].mxu0 }
 0x5a2   : > { %v6396_v23 = vpack.c.bf16 %v6252_v54, %v6251_v63  ;;  %v7147_v25 = vcombine.low %v10580_v26, %v10582_v10  ;;  %v6921_v62 = vpop.f32.mrb[10].mxu0  ;;  %v6727_v63 = vsel %vm2745_vm0, %v10561_v44, 0 }
 0x5a3   : > { %v6395_v12 = vpack.c.bf16 %v6250_v9, %v6249_v59  ;;  %v6922_v33 = vpop.f32.mrb[11].mxu0 }
 0x5a5   : > { %v9044_v18 = vpop.f32.mrb[224].mxu1 }
 0x5a6   : > { %v5902_v24 = vpop.f32.mrb[225].mxu1  ;;  %8253 = vmatpush3.bf16.xpose.msra.mxu0 %v6715_v19  ;;  %v6255_v17 = vmax.f32 %v9044_v18, 0.0 }
 0x5a7   : > { %v9045_v0 = vpop.f32.mrb[226].mxu1  ;;  %9126 = vmatprep.subr.msk.bf16.mxu0 %vm2745_vm0, %v6393_v15  ;;  %v6253_v34 = vmax.f32 %v5902_v24, 0.0 }
 0x5a8   : > { %v6256_v27 = vmax.f32 %v9045_v0, 0.0  ;;  %v5905_v29 = vpop.f32.mrb[227].mxu1 }
 0x5a9   : > { %v6254_v16 = vmax.f32 %v5905_v29, 0.0 }
 0x5aa   : > { %v10589_v36 = vpack.c.bf16 %v6256_v27, %v6255_v17 }
 0x5ab   : > { %v6397_v1 = vpack.c.bf16 %v6254_v16, %v6253_v34 }
 0x5ad   : > { %v9048_v48 = vpop.f32.mrb[228].mxu1  ;;  %v6754_v19 = vsel %vm2745_vm0, %v6397_v1, 0 }
 0x5ae   : > { %v5918_v49 = vpop.f32.mrb[229].mxu1  ;;  %8255 = vmatpush3.bf16.xpose.msra.mxu0 %v6718_v30  ;;  %v6259_v46 = vmax.f32 %v9048_v48, 0.0 }
 0x5af   : > { %v9049_v28 = vpop.f32.mrb[230].mxu1  ;;  %9127 = vmatprep.subr.msk.bf16.mxu0 %vm2745_vm0, %v6394_v2  ;;  %v6257_v58 = vmax.f32 %v5918_v49, 0.0  ;;  %v6757_v49 = vsel %vm2745_vm0, %v10589_v36, 0 }
 0x5b0   : > { %v6260_v45 = vmax.f32 %v9049_v28, 0.0  ;;  %v5921_v47 = vpop.f32.mrb[231].mxu1 }
 0x5b1   : > { %v6258_v57 = vmax.f32 %v5921_v47, 0.0 }
 0x5b2   : > { %v10594_v22 = vpack.c.bf16 %v6260_v45, %v6259_v46 }
 0x5b3   : > { %v10596_v11 = vpack.c.bf16 %v6258_v57, %v6257_v58 }
 0x5b5   : > { %v9052_v39 = vpop.f32.mrb[232].mxu1 }
 0x5b6   : > { %v5934_v31 = vpop.f32.mrb[233].mxu1  ;;  %8257 = vmatpush3.bf16.xpose.msra.mxu0 %v6721_v61  ;;  %v6263_v60 = vmax.f32 %v9052_v39, 0.0 }
 0x5b7   : > { %v9053_v3 = vpop.f32.mrb[234].mxu1  ;;  %9128 = vmatprep.subr.msk.bf16.mxu0 %vm2745_vm0, %v6395_v12  ;;  %v6261_v55 = vmax.f32 %v5934_v31, 0.0 }
 0x5b8   : > { %v6264_v4 = vmax.f32 %v9053_v3, 0.0  ;;  %v5937_v37 = vpop.f32.mrb[235].mxu1  ;;  %v6760_v3 = vsel %vm2745_vm0, %v10596_v11, 0  ;;  %v7169_v11 = vrot.slane %v7147_v25, %v10526_v7 }
 0x5b9   : > { %v6262_v14 = vmax.f32 %v5937_v37, 0.0 }
 0x5ba   : > { %v10601_v56 = vpack.c.bf16 %v6264_v4, %v6263_v60 }
 0x5bb   : > { %v10603_v42 = vpack.c.bf16 %v6262_v14, %v6261_v55 }
 0x5bc   : > { %v6769_v25 = vsel %vm2745_vm0, %v10601_v56, 0 }
 0x5bd   : > { %v9056_v52 = vpop.f32.mrb[236].mxu1  ;;  %v6766_v10 = vsel %vm2745_vm0, %v10603_v42, 0 }
 0x5be   : > { %v5950_v6 = vpop.f32.mrb[237].mxu1  ;;  %8259 = vmatpush3.bf16.xpose.msra.mxu0 %v6724_v38  ;;  %v6267_v51 = vmax.f32 %v9056_v52, 0.0 }
 0x5bf   : > { %v9057_v13 = vpop.f32.mrb[238].mxu1  ;;  %9129 = vmatprep.subr.msk.bf16.mxu0 %vm2745_vm0, %v6396_v23  ;;  %v6265_v15 = vmax.f32 %v5950_v6, 0.0 }
 0x5c0   : > { %v6268_v32 = vmax.f32 %v9057_v13, 0.0  ;;  %v5953_v2 = vpop.f32.mrb[239].mxu1 }
 0x5c1   : > { %v6266_v50 = vmax.f32 %v5953_v2, 0.0 }
 0x5c2   : > { %v10608_v41 = vpack.c.bf16 %v6268_v32, %v6267_v51 }
 0x5c3   : > { %v10610_v8 = vpack.c.bf16 %v6266_v50, %v6265_v15 }
 0x5c4   : > { %v6775_v5 = vsel %vm2745_vm0, %v10608_v41, 0 }
 0x5c5   : > { %v9060_v53 = vpop.f32.mrb[240].mxu1  ;;  %v6772_v43 = vsel %vm2745_vm0, %v10610_v8, 0 }
 0x5c6   : > { %v5966_v54 = vpop.f32.mrb[241].mxu1  ;;  %8261 = vmatpush3.bf16.xpose.msra.mxu0 %v6727_v63  ;;  %v6271_v35 = vmax.f32 %v9060_v53, 0.0  ;;  %v6763_v53 = vsel %vm2745_vm0, %v10594_v22, 0 }
 0x5c7   : > { %v9061_v20 = vpop.f32.mrb[242].mxu1  ;;  %v6269_v23 = vmax.f32 %v5966_v54, 0.0  ;;  %v7185_v54 = vrot.slane %v7177_v21, %v10526_v7 }
 0x5c8   : > { %v6272_v59 = vmax.f32 %v9061_v20, 0.0  ;;  %v5969_v9 = vpop.f32.mrb[243].mxu1 }
 0x5c9   : > { %v6270_v62 = vmax.f32 %v5969_v9, 0.0 }
 0x5ca   : > { %v6406_v12 = vpack.c.bf16 %v6272_v59, %v6271_v35 }
 0x5cb   : > { %v6405_v33 = vpack.c.bf16 %v6270_v62, %v6269_v23 }
 0x5cd   : > { %v9064_v18 = vpop.f32.mrb[244].mxu1  ;;  %9130 = vmatprep.subr.msk.bf16.mxu0 %vm2745_vm0, %v6405_v33  ;;  %8263 = vmatmul.mubr.msk.bf16.vlgmr.msra.gmra.mrb[24].mxu0 %vm2745_vm0, %v10464_v40 }
 0x5ce   : > { %v5982_v24 = vpop.f32.mrb[245].mxu1  ;;  %8265 = vmatpush3.bf16.xpose.msra.mxu0 %v6754_v19  ;;  %8280 = vmatprep.mubr.msk.bf16.mxu0 %vm2745_vm0, %v10464_v40  ;;  %v6275_v0 = vmax.f32 %v9064_v18, 0.0 }
 0x5cf   : > { %v9065_v44 = vpop.f32.mrb[246].mxu1  ;;  %9131 = vmatprep.subr.msk.bf16.mxu0 %vm2745_vm0, %v6406_v12  ;;  %v6273_v29 = vmax.f32 %v5982_v24, 0.0 }
 0x5d0   : > { %v6276_v17 = vmax.f32 %v9065_v44, 0.0  ;;  %v5985_v27 = vpop.f32.mrb[247].mxu1 }
 0x5d1   : > { %v6274_v34 = vmax.f32 %v5985_v27, 0.0 }
 0x5d2   : > { %v6408_v16 = vpack.c.bf16 %v6276_v17, %v6275_v0 }
 0x5d3   : > { %v6407_v48 = vpack.c.bf16 %v6274_v34, %v6273_v29 }
 0x5d5   : > { %v9068_v30 = vpop.f32.mrb[248].mxu1 }
 0x5d6   : > { %v5998_v1 = vpop.f32.mrb[249].mxu1  ;;  %8267 = vmatpush3.bf16.xpose.msra.mxu0 %v6757_v49  ;;  %v6279_v46 = vmax.f32 %v9068_v30, 0.0 }
 0x5d7   : > { %v9069_v28 = vpop.f32.mrb[250].mxu1  ;;  %9132 = vmatprep.subr.msk.bf16.mxu0 %vm2745_vm0, %v6407_v48  ;;  %v6277_v58 = vmax.f32 %v5998_v1, 0.0 }
 0x5d8   : > { %v6280_v45 = vmax.f32 %v9069_v28, 0.0  ;;  %v6001_v47 = vpop.f32.mrb[251].mxu1 }
 0x5d9   : > { %v6278_v57 = vmax.f32 %v6001_v47, 0.0 }
 0x5da   : > { %v6410_v39 = vpack.c.bf16 %v6280_v45, %v6279_v46 }
 0x5db   : > { %v6409_v61 = vpack.c.bf16 %v6278_v57, %v6277_v58 }
 0x5dd   : > { %v9072_v31 = vpop.f32.mrb[252].mxu1 }
 0x5de   : > { %v6014_v60 = vpop.f32.mrb[253].mxu1  ;;  %8269 = vmatpush3.bf16.xpose.msra.mxu0 %v6760_v3  ;;  %v6283_v4 = vmax.f32 %v9072_v31, 0.0 }
 0x5df   : > { %v9073_v36 = vpop.f32.mrb[254].mxu1  ;;  %9133 = vmatprep.subr.msk.bf16.mxu0 %vm2745_vm0, %v6408_v16  ;;  %v6281_v52 = vmax.f32 %v6014_v60, 0.0 }
 0x5e0   : > { %v6284_v37 = vmax.f32 %v9073_v36, 0.0  ;;  %v6017_v55 = vpop.f32.mrb[255].mxu1  ;;  %v6958_v14 = vpop.f32.mrb[12].mxu0 }
 0x5e1   : > { %v6282_v38 = vmax.f32 %v6017_v55, 0.0  ;;  %v6960_v6 = vpop.f32.mrb[13].mxu0 }
 0x5e2   : > { %v6412_v13 = vpack.c.bf16 %v6284_v37, %v6283_v4  ;;  %v7148_v51 = vcombine.low %v6958_v14, %v6960_v6  ;;  %v6962_v32 = vpop.f32.mrb[14].mxu0 }
 0x5e3   : > { %v6411_v2 = vpack.c.bf16 %v6282_v38, %v6281_v52  ;;  %v6963_v15 = vpop.f32.mrb[15].mxu0 }
 0x5e4   : > { %v7176_v50 = vrot.slane %v7148_v51, %v10526_v7 }
 0x5e6   : > { %8271 = vmatpush3.bf16.xpose.msra.mxu0 %v6763_v53  ;;  %v7178_v63 = vcombine.low %v7169_v11, %v7176_v50 }
 0x5e7   : > { %9134 = vmatprep.subr.msk.bf16.mxu0 %vm2745_vm0, %v6409_v61 }
 0x5e8   : > { %v7192_v20 = vrot.slane %v7178_v63, %v10526_v7 }
 0x5ea   : > { %v7193_v26 = vcombine.low %v7185_v54, %v7192_v20 }
 0x5ec   : > { %7245 = vst [vmem:[%s10643_s28] sm:$0xff] %v7193_v26 }
 0x5ee   : > { %8273 = vmatpush3.bf16.xpose.msra.mxu0 %v6766_v10 }
 0x5ef   : > { %9135 = vmatprep.subr.msk.bf16.mxu0 %vm2745_vm0, %v6410_v39 }
 0x5f6   : > { %8275 = vmatpush3.bf16.xpose.msra.mxu0 %v6769_v25 }
 0x5f7   : > { %9136 = vmatprep.subr.msk.bf16.mxu0 %vm2745_vm0, %v6411_v2 }
 0x5fe   : > { %8277 = vmatpush3.bf16.xpose.msra.mxu0 %v6772_v43 }
 0x5ff   : > { %9137 = vmatprep.subr.msk.bf16.mxu0 %vm2745_vm0, %v6412_v13 }
 0x606   : > { %8279 = vmatpush3.bf16.xpose.msra.mxu0 %v6775_v5 }
 0x60d   : > { %8281 = vmatmul.mubr.msk.bf16.vlgmr.msra.gmra.mrb[28].mxu0 %vm2745_vm0, %v10464_v40 }
 0x620   : > { %v6999_v21 = vpop.f32.mrb[16].mxu0 }
 0x621   : > { %v7001_v22 = vpop.f32.mrb[17].mxu0 }
 0x622   : > { %v7194_v42 = vcombine.low %v6999_v21, %v7001_v22  ;;  %v7003_v56 = vpop.f32.mrb[18].mxu0 }
 0x623   : > { %v7004_v35 = vpop.f32.mrb[19].mxu0 }
 0x624   : > { %v7204_v12 = vrot.slane %v7194_v42, %v10526_v7 }
 0x660   : > { %v7040_v59 = vpop.f32.mrb[20].mxu0 }
 0x661   : > { %v7042_v9 = vpop.f32.mrb[21].mxu0 }
 0x662   : > { %v7195_v23 = vcombine.low %v7040_v59, %v7042_v9  ;;  %v7044_v62 = vpop.f32.mrb[22].mxu0 }
 0x663   : > { %v7045_v8 = vpop.f32.mrb[23].mxu0 }
 0x664   : > { %v7211_v33 = vrot.slane %v7195_v23, %v10526_v7 }
 0x666   : > { %v7226_v41 = vcombine.low %v7204_v12, %v7211_v33 }
 0x668   : > { %v7234_v49 = vrot.slane %v7226_v41, %v10526_v7 }
 0x6a0   : > { %v7081_v18 = vpop.f32.mrb[24].mxu0 }
 0x6a1   : > { %v7083_v19 = vpop.f32.mrb[25].mxu0 }
 0x6a2   : > { %v7196_v40 = vcombine.low %v7081_v18, %v7083_v19  ;;  %v7085_v24 = vpop.f32.mrb[26].mxu0 }
 0x6a3   : > { %v7086_v44 = vpop.f32.mrb[27].mxu0 }
 0x6a4   : > { %v7218_v16 = vrot.slane %v7196_v40, %v10526_v7 }
 0x6e0   : > { %v7122_v0 = vpop.f32.mrb[28].mxu0 }
 0x6e1   : > { %v7124_v17 = vpop.f32.mrb[29].mxu0 }
 0x6e2   : > { %v7197_v27 = vcombine.low %v7122_v0, %v7124_v17  ;;  %v7126_v29 = vpop.f32.mrb[30].mxu0 }
 0x6e3   : > { %v7127_v34 = vpop.f32.mrb[31].mxu0 }
 0x6e4   : > { %v7225_v48 = vrot.slane %v7197_v27, %v10526_v7 }
 0x6e6   : > { %v7227_v30 = vcombine.low %v7218_v16, %v7225_v48 }
 0x6e8   : > { %v7241_v1 = vrot.slane %v7227_v30, %v10526_v7 }
 0x6ea   : > { %v7242_v28 = vcombine.low %v7234_v49, %v7241_v1 }
 0x6ec   : > { %7246 = vst [vmem:[%s10643_s28 + $0x8] sm:$0xff] %v7242_v28 }
 0x6ed   : > { %9332 = shalt.err (!%p9329_p3)
}
 0x6ee   : > { %s9333_s29 = scalar_lea.hbm %s10670_s7, 256  ;;  %s9337_s19 = scalar_lea.hbm %s10719_s4, 512 }
 0x6ef   : > { %p9334_p4 = scmp.ne.s32.totalorder %s10670_s7, %s9333_s29  ;;  %p9338_p9 = scmp.lt.u32.totalorder %s10670_s7, %s10719_s4 }
 0x6f0   : > { %p9339_p10 = scmp.lt.u32.totalorder %s9337_s19, %s9333_s29  ;;  %p9341_p12 = scmp.lt.u32.totalorder %s9333_s29, %s10670_s7 }
 0x6f1   : > { %p9335_p7 = pnand %p9334_p4, %p9445_p5 }
 0x6f2   : > { %p9340_p11 = por %p9339_p10, %p9338_p9 }
 0x6f3   : > { %p9336_p8 = pneg %p9335_p7 }
 0x6f4   : > { %p9342_p13 = por %p9341_p12, %p9340_p11 }
 0x6f6   : > { %p9343_p0 = pnand %p9342_p13, %p9336_p8 }
 0x6f8   : > { %9346 = shalt.err (!%p9343_p0)
}
 0x6f9   : > { %9138 = dma.vmem_to_hbm [thread:$0]  (%p9445_p5), %s10672_s30, 256, %s10670_s7, %s7248_s8  }
 0x6fa PF: > { %p9144_p1 = scmp.ge.s32.totalorder %s9381_s18, 2  ;;  %s7274_s23 = sand.u32 1, %s9369_s15  }
 0x6fb   : > { %s7275_s27 = scalar_lea.sflag [#allocation3], %s7274_s23 }
 0x6fc   : > { %p9141_p2 = pnand %p9144_p1, %p9449_p6 }
 0x6fe   : > { %9364 = dma.done.wait (!%p9141_p2), %s7275_s27, 256  }
 0x6ff   : > { %9366 = vsyncadd (!%p9141_p2), %s7275_s27, 4294967040  ;;  %p14_p3 = scmp.ge.s32.totalorder %s9433_s21, 4   ;;  %s10818_s15 = smov %s9373_s16 }
 0x700   : > { %s10819_s16 = smov %s9377_s17  ;;  %s10820_s17 = smov %s9443_s24 }
 0x701   : > { %s10821_s18 = smov %s9433_s21  ;;  %16 = sbr.rel (!%p14_p3) target bundleno = 3 (0x3), region = 72 }
 0x708   :  { %7280 = vsyncpa [#allocation3], 1 }
 0x709   :  { %7282 = vsyncpa [#allocation3 + $0x1], 1 }

</bundles_post_ra>
